<compile_context>
chip_gen: v7x
topology: tpu7x:2x2x1
jax: 0.10.0
libtpu: 0.0.40
codegen_flags: <defaults>
</compile_context>

<pallas_src>
import math
import functools

import jax
import jax.numpy as jnp
from jax import lax
from jax.experimental import pallas as pl
from jax.experimental.pallas import tpu as pltpu


# ------------------------- BlockSpec helpers -------------------------

def _batched_spec(shape):
    """Block the leading (batch) dim to 1, keep trailing dims whole."""
    nd = len(shape)
    return pl.BlockSpec((1,) + tuple(shape[1:]),
                        lambda b, _n=nd: (b,) + (0,) * (_n - 1))


def _const_spec(shape):
    """Whole array, same block for every grid step (weights / biases)."""
    nd = len(shape)
    return pl.BlockSpec(tuple(shape), lambda b, _n=nd: (0,) * _n)


# ------------------------- in-kernel math helpers -------------------------

def _layernorm(x, w, b, eps):
    u = jnp.mean(x, axis=-1, keepdims=True)
    s = jnp.mean((x - u) ** 2, axis=-1, keepdims=True)
    return w * ((x - u) / jnp.sqrt(s + eps)) + b


def _softmax_lastdim(s):
    s = s - jnp.max(s, axis=-1, keepdims=True)
    p = jnp.exp(s)
    return p * pl.reciprocal(jnp.sum(p, axis=-1, keepdims=True), approx=True)


def _qkt(q, k):
    # q @ k^T without materializing an explicit transpose.
    return lax.dot_general(q, k, (((1,), (1,)), ((), ())),
                           preferred_element_type=jnp.float32)


def _gelu(x):
    # exact erf-based gelu (same as the torch reference)
    return x * 0.5 * (1.0 + lax.erf(x / math.sqrt(2.0)))


# ------------------------- fused TransformerLayer (+ bmm + convert) kernel -------------------------

def _transformer_layer_kernel(
        x_ref, mask_ref, npos_ref, nh_ref,
        qkv_w_ref, qkv_b_ref, fc_w_ref, fc_b_ref,
        n1w_ref, n1b_ref,
        ffn1_w_ref, ffn1_b_ref, ffn2_w_ref, ffn2_b_ref,
        n2w_ref, n2b_ref,
        cwx_ref, cwh_ref, cb_ref,
        o_ref, *, n_head):
    x = x_ref[0]                       # (L, D) f32
    L, D = x.shape
    dh = D // n_head
    mask_row = mask_ref[0]             # (1, L), 1 = valid, 0 = pad

    # --- MultiHeadAttn (scale=False -> no 1/sqrt(dh); masked_fill(-inf)) ---
    qkv = jnp.dot(x, qkv_w_ref[...], preferred_element_type=jnp.float32) + qkv_b_ref[...]
    q, k, v = qkv[:, :D], qkv[:, D:2 * D], qkv[:, 2 * D:]

    acc = jnp.zeros((L, D), jnp.float32)
    for h in range(n_head):
        sl = slice(h * dh, (h + 1) * dh)
        s = _qkt(q[:, sl], k[:, sl])                           # (L, L)
        s = jnp.where(mask_row == 0.0, -jnp.inf, s)            # mask key positions
        p = _softmax_lastdim(s)
        ctx_h = jnp.dot(p, v[:, sl], preferred_element_type=jnp.float32)   # (L, dh)
        acc = acc + jnp.dot(ctx_h, fc_w_ref[sl, :], preferred_element_type=jnp.float32)
    attn_out = acc + fc_b_ref[...]

    # --- post-LN transformer layer (after_norm=True) ---
    x = _layernorm(attn_out + x, n1w_ref[...], n1b_ref[...], 1e-5)
    res = x
    h1 = jnp.maximum(
        jnp.dot(x, ffn1_w_ref[...], preferred_element_type=jnp.float32) + ffn1_b_ref[...],
        0.0)
    h2 = jnp.dot(h1, ffn2_w_ref[...], preferred_element_type=jnp.float32) + ffn2_b_ref[...]
    x = _layernorm(res + h2, n2w_ref[...], n2b_ref[...], 1e-5)

    # --- w_hidden = ngram_position_matrix @ ngram_hidden_states (per batch) ---
    w_hidden = jnp.dot(npos_ref[0], nh_ref[0], preferred_element_type=jnp.float32)  # (L, D)

    # --- convert(Linear(2D, D)) on concat([x, w_hidden]) without the concat ---
    out = (jnp.dot(x, cwx_ref[...], preferred_element_type=jnp.float32)
           + jnp.dot(w_hidden, cwh_ref[...], preferred_element_type=jnp.float32)
           + cb_ref[...])
    o_ref[0] = out


def transformer_layer_fused(x, mask, npos, ngram_hidden, lp, cwx, cwh, cb, *, n_head):
    B, L, D = x.shape
    mask3 = mask.reshape(B, 1, L)
    r = lambda a: a.reshape(1, -1)
    inputs = [
        x, mask3, npos, ngram_hidden,
        lp["qkv_w"], r(lp["qkv_b"]), lp["fc_w"], r(lp["fc_b"]),
        r(lp["norm1_w"]), r(lp["norm1_b"]),
        lp["ffn1_w"], r(lp["ffn1_b"]), lp["ffn2_w"], r(lp["ffn2_b"]),
        r(lp["norm2_w"]), r(lp["norm2_b"]),
        cwx, cwh, r(cb),
    ]
    in_specs = ([_batched_spec(a.shape) for a in inputs[:4]]
                + [_const_spec(a.shape) for a in inputs[4:]])
    return pl.pallas_call(
        functools.partial(_transformer_layer_kernel, n_head=n_head),
        grid=(B,),
        in_specs=in_specs,
        out_specs=_batched_spec((B, L, D)),
        out_shape=jax.ShapeDtypeStruct((B, L, D), jnp.float32),
        compiler_params=pltpu.CompilerParams(dimension_semantics=("parallel",)),
    )(*inputs)


# ------------------------- fused BertLayer kernel -------------------------

def _bert_layer_kernel(
        h_ref, am_ref,
        q_w_ref, q_b_ref, k_w_ref, k_b_ref, v_w_ref, v_b_ref,
        so_w_ref, so_b_ref, so_ln_w_ref, so_ln_b_ref,
        int_w_ref, int_b_ref, out_w_ref, out_b_ref,
        out_ln_w_ref, out_ln_b_ref,
        o_ref, *, n_head):
    h = h_ref[0]                       # (Lg, H) f32
    Lg, H = h.shape
    dh = H // n_head
    inv_sqrt_dh = 1.0 / math.sqrt(dh)
    am = am_ref[0]                     # (1, Lg) additive mask (BERT style)

    q = jnp.dot(h, q_w_ref[...], preferred_element_type=jnp.float32) + q_b_ref[...]
    k = jnp.dot(h, k_w_ref[...], preferred_element_type=jnp.float32) + k_b_ref[...]
    v = jnp.dot(h, v_w_ref[...], preferred_element_type=jnp.float32) + v_b_ref[...]

    acc = jnp.zeros((Lg, H), jnp.float32)
    for hd in range(n_head):
        sl = slice(hd * dh, (hd + 1) * dh)
        s = _qkt(q[:, sl], k[:, sl]) * inv_sqrt_dh + am
        p = _softmax_lastdim(s)
        ctx_h = jnp.dot(p, v[:, sl], preferred_element_type=jnp.float32)
        acc = acc + jnp.dot(ctx_h, so_w_ref[sl, :], preferred_element_type=jnp.float32)
    so = acc + so_b_ref[...]
    att = _layernorm(so + h, so_ln_w_ref[...], so_ln_b_ref[...], 1e-12)

    # 3072-wide intermediate stays in VMEM; bf16 MXU operands, f32 accumulate.
    inter = jnp.dot(att.astype(jnp.bfloat16), int_w_ref[...],
                    preferred_element_type=jnp.float32) + int_b_ref[...]
    inter = _gelu(inter)                                            # f32
    out = jnp.dot(inter.astype(jnp.bfloat16), out_w_ref[...],
                  preferred_element_type=jnp.float32) + out_b_ref[...]
    out = _layernorm(out + att, out_ln_w_ref[...], out_ln_b_ref[...], 1e-12)
    o_ref[0] = out


def bert_layer_fused(h, add_mask, p, *, n_head=4):
    B, Lg, H = h.shape
    am3 = add_mask.reshape(B, 1, Lg)
    r = lambda a: a.reshape(1, -1)
    inputs = [
        h, am3,
        p["q_w"], r(p["q_b"]), p["k_w"], r(p["k_b"]), p["v_w"], r(p["v_b"]),
        p["so_w"], r(p["so_b"]), r(p["so_ln_w"]), r(p["so_ln_b"]),
        p["int_w"].astype(jnp.bfloat16), r(p["int_b"]),
        p["out_w"].astype(jnp.bfloat16), r(p["out_b"]),
        r(p["out_ln_w"]), r(p["out_ln_b"]),
    ]
    in_specs = ([_batched_spec(a.shape) for a in inputs[:2]]
                + [_const_spec(a.shape) for a in inputs[2:]])
    return pl.pallas_call(
        functools.partial(_bert_layer_kernel, n_head=n_head),
        grid=(B,),
        in_specs=in_specs,
        out_specs=_batched_spec((B, Lg, H)),
        out_shape=jax.ShapeDtypeStruct((B, Lg, H), jnp.float32),
        compiler_params=pltpu.CompilerParams(dimension_semantics=("parallel",)),
    )(*inputs)


# ------------------------- encoder forward -------------------------

def adapted_transformer_encoder(x, mask, ngram_hidden_states, ngram_add_mask,
                                ngram_position_matrix, params, n_head):
    D = x.shape[-1]
    cw = params["convert_w"]
    cwx, cwh = cw[:D, :], cw[D:, :]          # split so no HBM concat is needed
    cb = params["convert_b"]
    # pos_embed is None in the default config -> no positional embedding added.
    # num_hidden_ngram_layers == 1: the single BertLayer update of the ngram
    # hidden states runs at i==0 before the first bmm and depends only on the
    # ngram inputs, so run it once up front (mathematically identical ordering).
    ngram_hidden_states = bert_layer_fused(ngram_hidden_states, ngram_add_mask,
                                           params["word_layer"], n_head=4)
    for lp in params["layers"]:
        # convert_dropout / all dropouts: identity in eval mode.
        x = transformer_layer_fused(x, mask, ngram_position_matrix,
                                    ngram_hidden_states, lp, cwx, cwh, cb,
                                    n_head=n_head)
    return x


# ------------------------- deterministic parameter init -------------------------

def init_params(seed, num_layers, d_model, n_head, feedforward_dim,
                ngram_embed_size, bert_intermediate_size):
    key = jax.random.PRNGKey(seed)
    counter = [0]

    def nxt():
        counter[0] += 1
        return jax.random.fold_in(key, counter[0])

    def dense(din, dout):
        w = jax.random.normal(nxt(), (din, dout), jnp.float32) * 0.02
        b = jax.random.normal(nxt(), (dout,), jnp.float32) * 0.02
        return w, b

    layers = []
    for _ in range(num_layers):
        lp = {}
        lp["qkv_w"], lp["qkv_b"] = dense(d_model, 3 * d_model)
        lp["fc_w"], lp["fc_b"] = dense(d_model, d_model)
        lp["norm1_w"] = jnp.ones((d_model,), jnp.float32)
        lp["norm1_b"] = jnp.zeros((d_model,), jnp.float32)
        lp["norm2_w"] = jnp.ones((d_model,), jnp.float32)
        lp["norm2_b"] = jnp.zeros((d_model,), jnp.float32)
        lp["ffn1_w"], lp["ffn1_b"] = dense(d_model, feedforward_dim)
        lp["ffn2_w"], lp["ffn2_b"] = dense(feedforward_dim, d_model)
        layers.append(lp)

    H = ngram_embed_size
    wl = {}
    wl["q_w"], wl["q_b"] = dense(H, H)
    wl["k_w"], wl["k_b"] = dense(H, H)
    wl["v_w"], wl["v_b"] = dense(H, H)
    wl["so_w"], wl["so_b"] = dense(H, H)
    wl["so_ln_w"] = jnp.ones((H,), jnp.float32)
    wl["so_ln_b"] = jnp.zeros((H,), jnp.float32)
    wl["int_w"], wl["int_b"] = dense(H, bert_intermediate_size)
    wl["out_w"], wl["out_b"] = dense(bert_intermediate_size, H)
    wl["out_ln_w"] = jnp.ones((H,), jnp.float32)
    wl["out_ln_b"] = jnp.zeros((H,), jnp.float32)

    cw, cb = dense(d_model * 2, d_model)
    return {"layers": layers, "word_layer": wl, "convert_w": cw, "convert_b": cb}


# ------------------------- main -------------------------

if __name__ == "__main__":
    # Small config consistent with the module:
    #   num_layers=2, d_model=32, n_head=4, feedforward_dim=64,
    #   ngram_embed_size = d_model (required by cat + convert Linear(2*d_model, d_model)),
    #   BERT intermediate size fixed at 3072 (BertIntermediate default).
    B, L, D = 2, 8, 32
    Lg = 8
    n_head = 4
    feedforward_dim = 64
    num_layers = 2
    ngram_embed_size = D
    bert_intermediate = 3072

    key = jax.random.PRNGKey(0)
    kx, kn, kp = jax.random.split(key, 3)
    x = jax.random.normal(kx, (B, L, D), jnp.float32)
    mask = jnp.ones((B, L), jnp.float32).at[1, 6:].set(0.0)            # 1 = valid, 0 = pad

    ngram_hidden_states = jax.random.normal(kn, (B, Lg, ngram_embed_size), jnp.float32)
    ngram_valid = jnp.ones((B, Lg), jnp.float32).at[0, 7:].set(0.0)
    ngram_add_mask = (1.0 - ngram_valid) * -10000.0                    # BERT-style additive mask
    ngram_position_matrix = (jax.random.uniform(kp, (B, L, Lg)) > 0.5).astype(jnp.float32)

    params = init_params(0, num_layers, D, n_head, feedforward_dim,
                         ngram_embed_size, bert_intermediate)

    fwd = jax.jit(functools.partial(adapted_transformer_encoder, n_head=n_head))
    out = fwd(x, mask, ngram_hidden_states, ngram_add_mask, ngram_position_matrix, params)
    out = jax.block_until_ready(out)
    assert out.shape == (B, L, D) and out.dtype == jnp.float32
    assert bool(jnp.all(jnp.isfinite(out)))
    # TODO(synk): pos_embed ('sin'/'fix') and attn_type='adatrans' (RelativeMultiHeadAttn,
    # undefined in the reference source) branches are not exercised by the default config.
    print("KERNEL_OK")
</pallas_src>

<mosaic_0001>
module attributes {stable_mosaic.version = 11 : i64} {
  func.func @_bert_layer_kernel(%arg0: i32, %arg1: memref<1x8x32xf32, #tpu.memory_space<vmem>>, %arg2: memref<1x1x8xf32, #tpu.memory_space<vmem>>, %arg3: memref<32x32xf32, #tpu.memory_space<vmem>>, %arg4: memref<1x32xf32, #tpu.memory_space<vmem>>, %arg5: memref<32x32xf32, #tpu.memory_space<vmem>>, %arg6: memref<1x32xf32, #tpu.memory_space<vmem>>, %arg7: memref<32x32xf32, #tpu.memory_space<vmem>>, %arg8: memref<1x32xf32, #tpu.memory_space<vmem>>, %arg9: memref<32x32xf32, #tpu.memory_space<vmem>>, %arg10: memref<1x32xf32, #tpu.memory_space<vmem>>, %arg11: memref<1x32xf32, #tpu.memory_space<vmem>>, %arg12: memref<1x32xf32, #tpu.memory_space<vmem>>, %arg13: memref<32x3072xbf16, #tpu.memory_space<vmem>>, %arg14: memref<1x3072xf32, #tpu.memory_space<vmem>>, %arg15: memref<3072x32xbf16, #tpu.memory_space<vmem>>, %arg16: memref<1x32xf32, #tpu.memory_space<vmem>>, %arg17: memref<1x32xf32, #tpu.memory_space<vmem>>, %arg18: memref<1x32xf32, #tpu.memory_space<vmem>>, %arg19: memref<1x8x32xf32, #tpu.memory_space<vmem>>) attributes {dimension_semantics = [#tpu.dimension_semantics<parallel>], iteration_bounds = array<i64: 2>, scalar_prefetch = 0 : i64, scratch_operands = 0 : i64, tpu.core_type = #tpu.core_type<tc>, window_params = [{transform_indices = @transform_0, window_bounds = array<i64: 1, 8, 32>}, {transform_indices = @transform_1, window_bounds = array<i64: 1, 1, 8>}, {pipeline_mode = #tpu.pipeline_mode<synchronous>, transform_indices = @transform_2, window_bounds = array<i64: 32, 32>}, {pipeline_mode = #tpu.pipeline_mode<synchronous>, transform_indices = @transform_3, window_bounds = array<i64: 1, 32>}, {pipeline_mode = #tpu.pipeline_mode<synchronous>, transform_indices = @transform_4, window_bounds = array<i64: 32, 32>}, {pipeline_mode = #tpu.pipeline_mode<synchronous>, transform_indices = @transform_5, window_bounds = array<i64: 1, 32>}, {pipeline_mode = #tpu.pipeline_mode<synchronous>, transform_indices = @transform_6, window_bounds = array<i64: 32, 32>}, {pipeline_mode = #tpu.pipeline_mode<synchronous>, transform_indices = @transform_7, window_bounds = array<i64: 1, 32>}, {pipeline_mode = #tpu.pipeline_mode<synchronous>, transform_indices = @transform_8, window_bounds = array<i64: 32, 32>}, {pipeline_mode = #tpu.pipeline_mode<synchronous>, transform_indices = @transform_9, window_bounds = array<i64: 1, 32>}, {pipeline_mode = #tpu.pipeline_mode<synchronous>, transform_indices = @transform_10, window_bounds = array<i64: 1, 32>}, {pipeline_mode = #tpu.pipeline_mode<synchronous>, transform_indices = @transform_11, window_bounds = array<i64: 1, 32>}, {pipeline_mode = #tpu.pipeline_mode<synchronous>, transform_indices = @transform_12, window_bounds = array<i64: 32, 3072>}, {pipeline_mode = #tpu.pipeline_mode<synchronous>, transform_indices = @transform_13, window_bounds = array<i64: 1, 3072>}, {pipeline_mode = #tpu.pipeline_mode<synchronous>, transform_indices = @transform_14, window_bounds = array<i64: 3072, 32>}, {pipeline_mode = #tpu.pipeline_mode<synchronous>, transform_indices = @transform_15, window_bounds = array<i64: 1, 32>}, {pipeline_mode = #tpu.pipeline_mode<synchronous>, transform_indices = @transform_16, window_bounds = array<i64: 1, 32>}, {pipeline_mode = #tpu.pipeline_mode<synchronous>, transform_indices = @transform_17, window_bounds = array<i64: 1, 32>}, {transform_indices = @transform_18, window_bounds = array<i64: 1, 8, 32>}]} {
    %c0 = arith.constant 0 : index
    %c0_0 = arith.constant 0 : index
    %c0_1 = arith.constant 0 : index
    %0 = vector.load %arg1[%c0, %c0_0, %c0_1] : memref<1x8x32xf32, #tpu.memory_space<vmem>>, vector<1x8x32xf32>
    %1 = vector.shape_cast %0 : vector<1x8x32xf32> to vector<8x32xf32>
    %c0_2 = arith.constant 0 : index
    %c0_3 = arith.constant 0 : index
    %c0_4 = arith.constant 0 : index
    %2 = vector.load %arg2[%c0_2, %c0_3, %c0_4] : memref<1x1x8xf32, #tpu.memory_space<vmem>>, vector<1x1x8xf32>
    %3 = vector.shape_cast %2 : vector<1x1x8xf32> to vector<1x8xf32>
    %c0_5 = arith.constant 0 : index
    %c0_6 = arith.constant 0 : index
    %4 = vector.load %arg3[%c0_5, %c0_6] : memref<32x32xf32, #tpu.memory_space<vmem>>, vector<32x32xf32>
    %cst = arith.constant dense<0.000000e+00> : vector<8x32xf32>
    %5 = tpu.matmul %1, %4, %cst {dimension_numbers = #tpu.dot_dimension_numbers<[1], [0], [0], [1], [0, 0, 1, 1], [], []>} : vector<8x32xf32>, vector<32x32xf32>, vector<8x32xf32> -> vector<8x32xf32>
    %c0_7 = arith.constant 0 : index
    %c0_8 = arith.constant 0 : index
    %6 = vector.load %arg4[%c0_7, %c0_8] : memref<1x32xf32, #tpu.memory_space<vmem>>, vector<1x32xf32>
    %7 = vector.broadcast %6 : vector<1x32xf32> to vector<8x32xf32>
    %8 = arith.addf %5, %7 : vector<8x32xf32>
    %c0_9 = arith.constant 0 : index
    %c0_10 = arith.constant 0 : index
    %9 = vector.load %arg5[%c0_9, %c0_10] : memref<32x32xf32, #tpu.memory_space<vmem>>, vector<32x32xf32>
    %cst_11 = arith.constant dense<0.000000e+00> : vector<8x32xf32>
    %10 = tpu.matmul %1, %9, %cst_11 {dimension_numbers = #tpu.dot_dimension_numbers<[1], [0], [0], [1], [0, 0, 1, 1], [], []>} : vector<8x32xf32>, vector<32x32xf32>, vector<8x32xf32> -> vector<8x32xf32>
    %c0_12 = arith.constant 0 : index
    %c0_13 = arith.constant 0 : index
    %11 = vector.load %arg6[%c0_12, %c0_13] : memref<1x32xf32, #tpu.memory_space<vmem>>, vector<1x32xf32>
    %12 = vector.broadcast %11 : vector<1x32xf32> to vector<8x32xf32>
    %13 = arith.addf %10, %12 : vector<8x32xf32>
    %c0_14 = arith.constant 0 : index
    %c0_15 = arith.constant 0 : index
    %14 = vector.load %arg7[%c0_14, %c0_15] : memref<32x32xf32, #tpu.memory_space<vmem>>, vector<32x32xf32>
    %cst_16 = arith.constant dense<0.000000e+00> : vector<8x32xf32>
    %15 = tpu.matmul %1, %14, %cst_16 {dimension_numbers = #tpu.dot_dimension_numbers<[1], [0], [0], [1], [0, 0, 1, 1], [], []>} : vector<8x32xf32>, vector<32x32xf32>, vector<8x32xf32> -> vector<8x32xf32>
    %c0_17 = arith.constant 0 : index
    %c0_18 = arith.constant 0 : index
    %16 = vector.load %arg8[%c0_17, %c0_18] : memref<1x32xf32, #tpu.memory_space<vmem>>, vector<1x32xf32>
    %17 = vector.broadcast %16 : vector<1x32xf32> to vector<8x32xf32>
    %18 = arith.addf %15, %17 : vector<8x32xf32>
    %cst_19 = arith.constant 0.000000e+00 : f32
    %19 = vector.broadcast %cst_19 : f32 to vector<8x32xf32>
    %20 = vector.extract_strided_slice %8 {offsets = [0, 0], sizes = [8, 8], strides = [1, 1]} : vector<8x32xf32> to vector<8x8xf32>
    %21 = vector.extract_strided_slice %13 {offsets = [0, 0], sizes = [8, 8], strides = [1, 1]} : vector<8x32xf32> to vector<8x8xf32>
    %cst_20 = arith.constant dense<0.000000e+00> : vector<8x8xf32>
    %22 = tpu.matmul %20, %21, %cst_20 {dimension_numbers = #tpu.dot_dimension_numbers<[1], [1], [0], [0], [0, 0, 1, 0], [], []>} : vector<8x8xf32>, vector<8x8xf32>, vector<8x8xf32> -> vector<8x8xf32>
    %cst_21 = arith.constant 0.353553385 : f32
    %23 = vector.broadcast %cst_21 : f32 to vector<8x8xf32>
    %24 = arith.mulf %22, %23 : vector<8x8xf32>
    %25 = vector.broadcast %3 : vector<1x8xf32> to vector<8x8xf32>
    %26 = arith.addf %24, %25 : vector<8x8xf32>
    %cst_22 = arith.constant dense<0xFF800000> : vector<8xf32>
    %27 = vector.multi_reduction <maximumf>, %26, %cst_22 [1] : vector<8x8xf32> to vector<8xf32>
    %28 = vector.shape_cast %27 : vector<8xf32> to vector<8x1xf32>
    %29 = vector.broadcast %28 : vector<8x1xf32> to vector<8x8xf32>
    %30 = arith.subf %26, %29 : vector<8x8xf32>
    %31 = math.exp %30 : vector<8x8xf32>
    %cst_23 = arith.constant dense<0.000000e+00> : vector<8xf32>
    %32 = vector.multi_reduction <add>, %31, %cst_23 [1] : vector<8x8xf32> to vector<8xf32>
    %33 = vector.shape_cast %32 : vector<8xf32> to vector<8x1xf32>
    %34 = tpu.reciprocal %33 {approx = true} : vector<8x1xf32> -> vector<8x1xf32>
    %35 = vector.broadcast %34 : vector<8x1xf32> to vector<8x8xf32>
    %36 = arith.mulf %31, %35 : vector<8x8xf32>
    %37 = vector.extract_strided_slice %18 {offsets = [0, 0], sizes = [8, 8], strides = [1, 1]} : vector<8x32xf32> to vector<8x8xf32>
    %cst_24 = arith.constant dense<0.000000e+00> : vector<8x8xf32>
    %38 = tpu.matmul %36, %37, %cst_24 {dimension_numbers = #tpu.dot_dimension_numbers<[1], [0], [0], [1], [0, 0, 1, 1], [], []>} : vector<8x8xf32>, vector<8x8xf32>, vector<8x8xf32> -> vector<8x8xf32>
    %c0_25 = arith.constant 0 : index
    %c0_26 = arith.constant 0 : index
    %39 = vector.load %arg9[%c0_25, %c0_26] : memref<32x32xf32, #tpu.memory_space<vmem>>, vector<8x32xf32>
    %cst_27 = arith.constant dense<0.000000e+00> : vector<8x32xf32>
    %40 = tpu.matmul %38, %39, %cst_27 {dimension_numbers = #tpu.dot_dimension_numbers<[1], [0], [0], [1], [0, 0, 1, 1], [], []>} : vector<8x8xf32>, vector<8x32xf32>, vector<8x32xf32> -> vector<8x32xf32>
    %41 = arith.addf %19, %40 : vector<8x32xf32>
    %42 = vector.extract_strided_slice %8 {offsets = [0, 8], sizes = [8, 8], strides = [1, 1]} : vector<8x32xf32> to vector<8x8xf32>
    %43 = vector.extract_strided_slice %13 {offsets = [0, 8], sizes = [8, 8], strides = [1, 1]} : vector<8x32xf32> to vector<8x8xf32>
    %cst_28 = arith.constant dense<0.000000e+00> : vector<8x8xf32>
    %44 = tpu.matmul %42, %43, %cst_28 {dimension_numbers = #tpu.dot_dimension_numbers<[1], [1], [0], [0], [0, 0, 1, 0], [], []>} : vector<8x8xf32>, vector<8x8xf32>, vector<8x8xf32> -> vector<8x8xf32>
    %cst_29 = arith.constant 0.353553385 : f32
    %45 = vector.broadcast %cst_29 : f32 to vector<8x8xf32>
    %46 = arith.mulf %44, %45 : vector<8x8xf32>
    %47 = vector.broadcast %3 : vector<1x8xf32> to vector<8x8xf32>
    %48 = arith.addf %46, %47 : vector<8x8xf32>
    %cst_30 = arith.constant dense<0xFF800000> : vector<8xf32>
    %49 = vector.multi_reduction <maximumf>, %48, %cst_30 [1] : vector<8x8xf32> to vector<8xf32>
    %50 = vector.shape_cast %49 : vector<8xf32> to vector<8x1xf32>
    %51 = vector.broadcast %50 : vector<8x1xf32> to vector<8x8xf32>
    %52 = arith.subf %48, %51 : vector<8x8xf32>
    %53 = math.exp %52 : vector<8x8xf32>
    %cst_31 = arith.constant dense<0.000000e+00> : vector<8xf32>
    %54 = vector.multi_reduction <add>, %53, %cst_31 [1] : vector<8x8xf32> to vector<8xf32>
    %55 = vector.shape_cast %54 : vector<8xf32> to vector<8x1xf32>
    %56 = tpu.reciprocal %55 {approx = true} : vector<8x1xf32> -> vector<8x1xf32>
    %57 = vector.broadcast %56 : vector<8x1xf32> to vector<8x8xf32>
    %58 = arith.mulf %53, %57 : vector<8x8xf32>
    %59 = vector.extract_strided_slice %18 {offsets = [0, 8], sizes = [8, 8], strides = [1, 1]} : vector<8x32xf32> to vector<8x8xf32>
    %cst_32 = arith.constant dense<0.000000e+00> : vector<8x8xf32>
    %60 = tpu.matmul %58, %59, %cst_32 {dimension_numbers = #tpu.dot_dimension_numbers<[1], [0], [0], [1], [0, 0, 1, 1], [], []>} : vector<8x8xf32>, vector<8x8xf32>, vector<8x8xf32> -> vector<8x8xf32>
    %c8 = arith.constant 8 : index
    %c0_33 = arith.constant 0 : index
    %61 = vector.load %arg9[%c8, %c0_33] : memref<32x32xf32, #tpu.memory_space<vmem>>, vector<8x32xf32>
    %cst_34 = arith.constant dense<0.000000e+00> : vector<8x32xf32>
    %62 = tpu.matmul %60, %61, %cst_34 {dimension_numbers = #tpu.dot_dimension_numbers<[1], [0], [0], [1], [0, 0, 1, 1], [], []>} : vector<8x8xf32>, vector<8x32xf32>, vector<8x32xf32> -> vector<8x32xf32>
    %63 = arith.addf %41, %62 : vector<8x32xf32>
    %64 = vector.extract_strided_slice %8 {offsets = [0, 16], sizes = [8, 8], strides = [1, 1]} : vector<8x32xf32> to vector<8x8xf32>
    %65 = vector.extract_strided_slice %13 {offsets = [0, 16], sizes = [8, 8], strides = [1, 1]} : vector<8x32xf32> to vector<8x8xf32>
    %cst_35 = arith.constant dense<0.000000e+00> : vector<8x8xf32>
    %66 = tpu.matmul %64, %65, %cst_35 {dimension_numbers = #tpu.dot_dimension_numbers<[1], [1], [0], [0], [0, 0, 1, 0], [], []>} : vector<8x8xf32>, vector<8x8xf32>, vector<8x8xf32> -> vector<8x8xf32>
    %cst_36 = arith.constant 0.353553385 : f32
    %67 = vector.broadcast %cst_36 : f32 to vector<8x8xf32>
    %68 = arith.mulf %66, %67 : vector<8x8xf32>
    %69 = vector.broadcast %3 : vector<1x8xf32> to vector<8x8xf32>
    %70 = arith.addf %68, %69 : vector<8x8xf32>
    %cst_37 = arith.constant dense<0xFF800000> : vector<8xf32>
    %71 = vector.multi_reduction <maximumf>, %70, %cst_37 [1] : vector<8x8xf32> to vector<8xf32>
    %72 = vector.shape_cast %71 : vector<8xf32> to vector<8x1xf32>
    %73 = vector.broadcast %72 : vector<8x1xf32> to vector<8x8xf32>
    %74 = arith.subf %70, %73 : vector<8x8xf32>
    %75 = math.exp %74 : vector<8x8xf32>
    %cst_38 = arith.constant dense<0.000000e+00> : vector<8xf32>
    %76 = vector.multi_reduction <add>, %75, %cst_38 [1] : vector<8x8xf32> to vector<8xf32>
    %77 = vector.shape_cast %76 : vector<8xf32> to vector<8x1xf32>
    %78 = tpu.reciprocal %77 {approx = true} : vector<8x1xf32> -> vector<8x1xf32>
    %79 = vector.broadcast %78 : vector<8x1xf32> to vector<8x8xf32>
    %80 = arith.mulf %75, %79 : vector<8x8xf32>
    %81 = vector.extract_strided_slice %18 {offsets = [0, 16], sizes = [8, 8], strides = [1, 1]} : vector<8x32xf32> to vector<8x8xf32>
    %cst_39 = arith.constant dense<0.000000e+00> : vector<8x8xf32>
    %82 = tpu.matmul %80, %81, %cst_39 {dimension_numbers = #tpu.dot_dimension_numbers<[1], [0], [0], [1], [0, 0, 1, 1], [], []>} : vector<8x8xf32>, vector<8x8xf32>, vector<8x8xf32> -> vector<8x8xf32>
    %c16 = arith.constant 16 : index
    %c0_40 = arith.constant 0 : index
    %83 = vector.load %arg9[%c16, %c0_40] : memref<32x32xf32, #tpu.memory_space<vmem>>, vector<8x32xf32>
    %cst_41 = arith.constant dense<0.000000e+00> : vector<8x32xf32>
    %84 = tpu.matmul %82, %83, %cst_41 {dimension_numbers = #tpu.dot_dimension_numbers<[1], [0], [0], [1], [0, 0, 1, 1], [], []>} : vector<8x8xf32>, vector<8x32xf32>, vector<8x32xf32> -> vector<8x32xf32>
    %85 = arith.addf %63, %84 : vector<8x32xf32>
    %86 = vector.extract_strided_slice %8 {offsets = [0, 24], sizes = [8, 8], strides = [1, 1]} : vector<8x32xf32> to vector<8x8xf32>
    %87 = vector.extract_strided_slice %13 {offsets = [0, 24], sizes = [8, 8], strides = [1, 1]} : vector<8x32xf32> to vector<8x8xf32>
    %cst_42 = arith.constant dense<0.000000e+00> : vector<8x8xf32>
    %88 = tpu.matmul %86, %87, %cst_42 {dimension_numbers = #tpu.dot_dimension_numbers<[1], [1], [0], [0], [0, 0, 1, 0], [], []>} : vector<8x8xf32>, vector<8x8xf32>, vector<8x8xf32> -> vector<8x8xf32>
    %cst_43 = arith.constant 0.353553385 : f32
    %89 = vector.broadcast %cst_43 : f32 to vector<8x8xf32>
    %90 = arith.mulf %88, %89 : vector<8x8xf32>
    %91 = vector.broadcast %3 : vector<1x8xf32> to vector<8x8xf32>
    %92 = arith.addf %90, %91 : vector<8x8xf32>
    %cst_44 = arith.constant dense<0xFF800000> : vector<8xf32>
    %93 = vector.multi_reduction <maximumf>, %92, %cst_44 [1] : vector<8x8xf32> to vector<8xf32>
    %94 = vector.shape_cast %93 : vector<8xf32> to vector<8x1xf32>
    %95 = vector.broadcast %94 : vector<8x1xf32> to vector<8x8xf32>
    %96 = arith.subf %92, %95 : vector<8x8xf32>
    %97 = math.exp %96 : vector<8x8xf32>
    %cst_45 = arith.constant dense<0.000000e+00> : vector<8xf32>
    %98 = vector.multi_reduction <add>, %97, %cst_45 [1] : vector<8x8xf32> to vector<8xf32>
    %99 = vector.shape_cast %98 : vector<8xf32> to vector<8x1xf32>
    %100 = tpu.reciprocal %99 {approx = true} : vector<8x1xf32> -> vector<8x1xf32>
    %101 = vector.broadcast %100 : vector<8x1xf32> to vector<8x8xf32>
    %102 = arith.mulf %97, %101 : vector<8x8xf32>
    %103 = vector.extract_strided_slice %18 {offsets = [0, 24], sizes = [8, 8], strides = [1, 1]} : vector<8x32xf32> to vector<8x8xf32>
    %cst_46 = arith.constant dense<0.000000e+00> : vector<8x8xf32>
    %104 = tpu.matmul %102, %103, %cst_46 {dimension_numbers = #tpu.dot_dimension_numbers<[1], [0], [0], [1], [0, 0, 1, 1], [], []>} : vector<8x8xf32>, vector<8x8xf32>, vector<8x8xf32> -> vector<8x8xf32>
    %c24 = arith.constant 24 : index
    %c0_47 = arith.constant 0 : index
    %105 = vector.load %arg9[%c24, %c0_47] : memref<32x32xf32, #tpu.memory_space<vmem>>, vector<8x32xf32>
    %cst_48 = arith.constant dense<0.000000e+00> : vector<8x32xf32>
    %106 = tpu.matmul %104, %105, %cst_48 {dimension_numbers = #tpu.dot_dimension_numbers<[1], [0], [0], [1], [0, 0, 1, 1], [], []>} : vector<8x8xf32>, vector<8x32xf32>, vector<8x32xf32> -> vector<8x32xf32>
    %107 = arith.addf %85, %106 : vector<8x32xf32>
    %c0_49 = arith.constant 0 : index
    %c0_50 = arith.constant 0 : index
    %108 = vector.load %arg10[%c0_49, %c0_50] : memref<1x32xf32, #tpu.memory_space<vmem>>, vector<1x32xf32>
    %109 = vector.broadcast %108 : vector<1x32xf32> to vector<8x32xf32>
    %110 = arith.addf %107, %109 : vector<8x32xf32>
    %111 = arith.addf %110, %1 : vector<8x32xf32>
    %c0_51 = arith.constant 0 : index
    %c0_52 = arith.constant 0 : index
    %112 = vector.load %arg11[%c0_51, %c0_52] : memref<1x32xf32, #tpu.memory_space<vmem>>, vector<1x32xf32>
    %c0_53 = arith.constant 0 : index
    %c0_54 = arith.constant 0 : index
    %113 = vector.load %arg12[%c0_53, %c0_54] : memref<1x32xf32, #tpu.memory_space<vmem>>, vector<1x32xf32>
    %cst_55 = arith.constant dense<0.000000e+00> : vector<8xf32>
    %114 = vector.multi_reduction <add>, %111, %cst_55 [1] : vector<8x32xf32> to vector<8xf32>
    %115 = vector.shape_cast %114 : vector<8xf32> to vector<8x1xf32>
    %cst_56 = arith.constant 3.200000e+01 : f32
    %116 = vector.broadcast %cst_56 : f32 to vector<8x1xf32>
    %117 = arith.divf %115, %116 : vector<8x1xf32>
    %118 = vector.broadcast %117 : vector<8x1xf32> to vector<8x32xf32>
    %119 = arith.subf %111, %118 : vector<8x32xf32>
    %120 = arith.mulf %119, %119 : vector<8x32xf32>
    %cst_57 = arith.constant dense<0.000000e+00> : vector<8xf32>
    %121 = vector.multi_reduction <add>, %120, %cst_57 [1] : vector<8x32xf32> to vector<8xf32>
    %122 = vector.shape_cast %121 : vector<8xf32> to vector<8x1xf32>
    %cst_58 = arith.constant 3.200000e+01 : f32
    %123 = vector.broadcast %cst_58 : f32 to vector<8x1xf32>
    %124 = arith.divf %122, %123 : vector<8x1xf32>
    %125 = vector.broadcast %117 : vector<8x1xf32> to vector<8x32xf32>
    %126 = arith.subf %111, %125 : vector<8x32xf32>
    %cst_59 = arith.constant 9.99999996E-13 : f32
    %127 = vector.broadcast %cst_59 : f32 to vector<8x1xf32>
    %128 = arith.addf %124, %127 : vector<8x1xf32>
    %129 = math.sqrt %128 : vector<8x1xf32>
    %130 = vector.broadcast %129 : vector<8x1xf32> to vector<8x32xf32>
    %131 = arith.divf %126, %130 : vector<8x32xf32>
    %132 = vector.broadcast %112 : vector<1x32xf32> to vector<8x32xf32>
    %133 = arith.mulf %132, %131 : vector<8x32xf32>
    %134 = vector.broadcast %113 : vector<1x32xf32> to vector<8x32xf32>
    %135 = arith.addf %133, %134 : vector<8x32xf32>
    %136 = arith.truncf %135 : vector<8x32xf32> to vector<8x32xbf16>
    %c0_60 = arith.constant 0 : index
    %c0_61 = arith.constant 0 : index
    %137 = vector.load %arg13[%c0_60, %c0_61] : memref<32x3072xbf16, #tpu.memory_space<vmem>>, vector<32x3072xbf16>
    %cst_62 = arith.constant dense<0.000000e+00> : vector<8x3072xf32>
    %138 = tpu.matmul %136, %137, %cst_62 {dimension_numbers = #tpu.dot_dimension_numbers<[1], [0], [0], [1], [0, 0, 1, 1], [], []>} : vector<8x32xbf16>, vector<32x3072xbf16>, vector<8x3072xf32> -> vector<8x3072xf32>
    %c0_63 = arith.constant 0 : index
    %c0_64 = arith.constant 0 : index
    %139 = vector.load %arg14[%c0_63, %c0_64] : memref<1x3072xf32, #tpu.memory_space<vmem>>, vector<1x3072xf32>
    %140 = vector.broadcast %139 : vector<1x3072xf32> to vector<8x3072xf32>
    %141 = arith.addf %138, %140 : vector<8x3072xf32>
    %cst_65 = arith.constant 5.000000e-01 : f32
    %142 = vector.broadcast %cst_65 : f32 to vector<8x3072xf32>
    %143 = arith.mulf %141, %142 : vector<8x3072xf32>
    %cst_66 = arith.constant 1.41421354 : f32
    %144 = vector.broadcast %cst_66 : f32 to vector<8x3072xf32>
    %145 = arith.divf %141, %144 : vector<8x3072xf32>
    %146 = math.erf %145 : vector<8x3072xf32>
    %cst_67 = arith.constant 1.000000e+00 : f32
    %147 = vector.broadcast %cst_67 : f32 to vector<8x3072xf32>
    %148 = arith.addf %147, %146 : vector<8x3072xf32>
    %149 = arith.mulf %143, %148 : vector<8x3072xf32>
    %150 = arith.truncf %149 : vector<8x3072xf32> to vector<8x3072xbf16>
    %c0_68 = arith.constant 0 : index
    %c0_69 = arith.constant 0 : index
    %151 = vector.load %arg15[%c0_68, %c0_69] : memref<3072x32xbf16, #tpu.memory_space<vmem>>, vector<3072x32xbf16>
    %cst_70 = arith.constant dense<0.000000e+00> : vector<8x32xf32>
    %152 = tpu.matmul %150, %151, %cst_70 {dimension_numbers = #tpu.dot_dimension_numbers<[1], [0], [0], [1], [0, 0, 1, 1], [], []>} : vector<8x3072xbf16>, vector<3072x32xbf16>, vector<8x32xf32> -> vector<8x32xf32>
    %c0_71 = arith.constant 0 : index
    %c0_72 = arith.constant 0 : index
    %153 = vector.load %arg16[%c0_71, %c0_72] : memref<1x32xf32, #tpu.memory_space<vmem>>, vector<1x32xf32>
    %154 = vector.broadcast %153 : vector<1x32xf32> to vector<8x32xf32>
    %155 = arith.addf %152, %154 : vector<8x32xf32>
    %156 = arith.addf %155, %135 : vector<8x32xf32>
    %c0_73 = arith.constant 0 : index
    %c0_74 = arith.constant 0 : index
    %157 = vector.load %arg17[%c0_73, %c0_74] : memref<1x32xf32, #tpu.memory_space<vmem>>, vector<1x32xf32>
    %c0_75 = arith.constant 0 : index
    %c0_76 = arith.constant 0 : index
    %158 = vector.load %arg18[%c0_75, %c0_76] : memref<1x32xf32, #tpu.memory_space<vmem>>, vector<1x32xf32>
    %cst_77 = arith.constant dense<0.000000e+00> : vector<8xf32>
    %159 = vector.multi_reduction <add>, %156, %cst_77 [1] : vector<8x32xf32> to vector<8xf32>
    %160 = vector.shape_cast %159 : vector<8xf32> to vector<8x1xf32>
    %cst_78 = arith.constant 3.200000e+01 : f32
    %161 = vector.broadcast %cst_78 : f32 to vector<8x1xf32>
    %162 = arith.divf %160, %161 : vector<8x1xf32>
    %163 = vector.broadcast %162 : vector<8x1xf32> to vector<8x32xf32>
    %164 = arith.subf %156, %163 : vector<8x32xf32>
    %165 = arith.mulf %164, %164 : vector<8x32xf32>
    %cst_79 = arith.constant dense<0.000000e+00> : vector<8xf32>
    %166 = vector.multi_reduction <add>, %165, %cst_79 [1] : vector<8x32xf32> to vector<8xf32>
    %167 = vector.shape_cast %166 : vector<8xf32> to vector<8x1xf32>
    %cst_80 = arith.constant 3.200000e+01 : f32
    %168 = vector.broadcast %cst_80 : f32 to vector<8x1xf32>
    %169 = arith.divf %167, %168 : vector<8x1xf32>
    %170 = vector.broadcast %162 : vector<8x1xf32> to vector<8x32xf32>
    %171 = arith.subf %156, %170 : vector<8x32xf32>
    %cst_81 = arith.constant 9.99999996E-13 : f32
    %172 = vector.broadcast %cst_81 : f32 to vector<8x1xf32>
    %173 = arith.addf %169, %172 : vector<8x1xf32>
    %174 = math.sqrt %173 : vector<8x1xf32>
    %175 = vector.broadcast %174 : vector<8x1xf32> to vector<8x32xf32>
    %176 = arith.divf %171, %175 : vector<8x32xf32>
    %177 = vector.broadcast %157 : vector<1x32xf32> to vector<8x32xf32>
    %178 = arith.mulf %177, %176 : vector<8x32xf32>
    %179 = vector.broadcast %158 : vector<1x32xf32> to vector<8x32xf32>
    %180 = arith.addf %178, %179 : vector<8x32xf32>
    %c0_82 = arith.constant 0 : index
    %c0_83 = arith.constant 0 : index
    %c0_84 = arith.constant 0 : index
    %181 = vector.load %arg19[%c0_82, %c0_83, %c0_84] : memref<1x8x32xf32, #tpu.memory_space<vmem>>, vector<1x8x32xf32>
    %182 = vector.shape_cast %181 : vector<1x8x32xf32> to vector<8x32xf32>
    %183 = vector.shape_cast %180 : vector<8x32xf32> to vector<1x8x32xf32>
    tpu.vector_store %arg19[%c0_82, %c0_83, %c0_84], %183 {strides = array<i32>} : memref<1x8x32xf32, #tpu.memory_space<vmem>>, vector<1x8x32xf32>,
    return
  }
  func.func @transform_0(%arg0: i32) -> (i32, i32, i32) {
    %c0_i32 = arith.constant 0 : i32
    %c0_i32_0 = arith.constant 0 : i32
    %c0_i32_1 = arith.constant 0 : i32
    return %arg0, %c0_i32, %c0_i32_0 : i32, i32, i32
  }
  func.func @transform_1(%arg0: i32) -> (i32, i32, i32) {
    %c0_i32 = arith.constant 0 : i32
    %c0_i32_0 = arith.constant 0 : i32
    %c0_i32_1 = arith.constant 0 : i32
    return %arg0, %c0_i32, %c0_i32_0 : i32, i32, i32
  }
  func.func @transform_2(%arg0: i32) -> (i32, i32) {
    %c0_i32 = arith.constant 0 : i32
    %c0_i32_0 = arith.constant 0 : i32
    %c0_i32_1 = arith.constant 0 : i32
    return %c0_i32, %c0_i32_0 : i32, i32
  }
  func.func @transform_3(%arg0: i32) -> (i32, i32) {
    %c0_i32 = arith.constant 0 : i32
    %c0_i32_0 = arith.constant 0 : i32
    %c0_i32_1 = arith.constant 0 : i32
    return %c0_i32, %c0_i32_0 : i32, i32
  }
  func.func @transform_4(%arg0: i32) -> (i32, i32) {
    %c0_i32 = arith.constant 0 : i32
    %c0_i32_0 = arith.constant 0 : i32
    %c0_i32_1 = arith.constant 0 : i32
    return %c0_i32, %c0_i32_0 : i32, i32
  }
  func.func @transform_5(%arg0: i32) -> (i32, i32) {
    %c0_i32 = arith.constant 0 : i32
    %c0_i32_0 = arith.constant 0 : i32
    %c0_i32_1 = arith.constant 0 : i32
    return %c0_i32, %c0_i32_0 : i32, i32
  }
  func.func @transform_6(%arg0: i32) -> (i32, i32) {
    %c0_i32 = arith.constant 0 : i32
    %c0_i32_0 = arith.constant 0 : i32
    %c0_i32_1 = arith.constant 0 : i32
    return %c0_i32, %c0_i32_0 : i32, i32
  }
  func.func @transform_7(%arg0: i32) -> (i32, i32) {
    %c0_i32 = arith.constant 0 : i32
    %c0_i32_0 = arith.constant 0 : i32
    %c0_i32_1 = arith.constant 0 : i32
    return %c0_i32, %c0_i32_0 : i32, i32
  }
  func.func @transform_8(%arg0: i32) -> (i32, i32) {
    %c0_i32 = arith.constant 0 : i32
    %c0_i32_0 = arith.constant 0 : i32
    %c0_i32_1 = arith.constant 0 : i32
    return %c0_i32, %c0_i32_0 : i32, i32
  }
  func.func @transform_9(%arg0: i32) -> (i32, i32) {
    %c0_i32 = arith.constant 0 : i32
    %c0_i32_0 = arith.constant 0 : i32
    %c0_i32_1 = arith.constant 0 : i32
    return %c0_i32, %c0_i32_0 : i32, i32
  }
  func.func @transform_10(%arg0: i32) -> (i32, i32) {
    %c0_i32 = arith.constant 0 : i32
    %c0_i32_0 = arith.constant 0 : i32
    %c0_i32_1 = arith.constant 0 : i32
    return %c0_i32, %c0_i32_0 : i32, i32
  }
  func.func @transform_11(%arg0: i32) -> (i32, i32) {
    %c0_i32 = arith.constant 0 : i32
    %c0_i32_0 = arith.constant 0 : i32
    %c0_i32_1 = arith.constant 0 : i32
    return %c0_i32, %c0_i32_0 : i32, i32
  }
  func.func @transform_12(%arg0: i32) -> (i32, i32) {
    %c0_i32 = arith.constant 0 : i32
    %c0_i32_0 = arith.constant 0 : i32
    %c0_i32_1 = arith.constant 0 : i32
    return %c0_i32, %c0_i32_0 : i32, i32
  }
  func.func @transform_13(%arg0: i32) -> (i32, i32) {
    %c0_i32 = arith.constant 0 : i32
    %c0_i32_0 = arith.constant 0 : i32
    %c0_i32_1 = arith.constant 0 : i32
    return %c0_i32, %c0_i32_0 : i32, i32
  }
  func.func @transform_14(%arg0: i32) -> (i32, i32) {
    %c0_i32 = arith.constant 0 : i32
    %c0_i32_0 = arith.constant 0 : i32
    %c0_i32_1 = arith.constant 0 : i32
    return %c0_i32, %c0_i32_0 : i32, i32
  }
  func.func @transform_15(%arg0: i32) -> (i32, i32) {
    %c0_i32 = arith.constant 0 : i32
    %c0_i32_0 = arith.constant 0 : i32
    %c0_i32_1 = arith.constant 0 : i32
    return %c0_i32, %c0_i32_0 : i32, i32
  }
  func.func @transform_16(%arg0: i32) -> (i32, i32) {
    %c0_i32 = arith.constant 0 : i32
    %c0_i32_0 = arith.constant 0 : i32
    %c0_i32_1 = arith.constant 0 : i32
    return %c0_i32, %c0_i32_0 : i32, i32
  }
  func.func @transform_17(%arg0: i32) -> (i32, i32) {
    %c0_i32 = arith.constant 0 : i32
    %c0_i32_0 = arith.constant 0 : i32
    %c0_i32_1 = arith.constant 0 : i32
    return %c0_i32, %c0_i32_0 : i32, i32
  }
  func.func @transform_18(%arg0: i32) -> (i32, i32, i32) {
    %c0_i32 = arith.constant 0 : i32
    %c0_i32_0 = arith.constant 0 : i32
    %c0_i32_1 = arith.constant 0 : i32
    return %arg0, %c0_i32, %c0_i32_0 : i32, i32, i32
  }
}

module attributes {stable_mosaic.version = 11 : i64} {
  func.func @_transformer_layer_kernel(%arg0: i32, %arg1: memref<1x8x32xf32, #tpu.memory_space<vmem>>, %arg2: memref<1x1x8xf32, #tpu.memory_space<vmem>>, %arg3: memref<1x8x8xf32, #tpu.memory_space<vmem>>, %arg4: memref<1x8x32xf32, #tpu.memory_space<vmem>>, %arg5: memref<32x96xf32, #tpu.memory_space<vmem>>, %arg6: memref<1x96xf32, #tpu.memory_space<vmem>>, %arg7: memref<32x32xf32, #tpu.memory_space<vmem>>, %arg8: memref<1x32xf32, #tpu.memory_space<vmem>>, %arg9: memref<1x32xf32, #tpu.memory_space<vmem>>, %arg10: memref<1x32xf32, #tpu.memory_space<vmem>>, %arg11: memref<32x64xf32, #tpu.memory_space<vmem>>, %arg12: memref<1x64xf32, #tpu.memory_space<vmem>>, %arg13: memref<64x32xf32, #tpu.memory_space<vmem>>, %arg14: memref<1x32xf32, #tpu.memory_space<vmem>>, %arg15: memref<1x32xf32, #tpu.memory_space<vmem>>, %arg16: memref<1x32xf32, #tpu.memory_space<vmem>>, %arg17: memref<32x32xf32, #tpu.memory_space<vmem>>, %arg18: memref<32x32xf32, #tpu.memory_space<vmem>>, %arg19: memref<1x32xf32, #tpu.memory_space<vmem>>, %arg20: memref<1x8x32xf32, #tpu.memory_space<vmem>>) attributes {dimension_semantics = [#tpu.dimension_semantics<parallel>], iteration_bounds = array<i64: 2>, scalar_prefetch = 0 : i64, scratch_operands = 0 : i64, tpu.core_type = #tpu.core_type<tc>, window_params = [{transform_indices = @transform_0, window_bounds = array<i64: 1, 8, 32>}, {transform_indices = @transform_1, window_bounds = array<i64: 1, 1, 8>}, {transform_indices = @transform_2, window_bounds = array<i64: 1, 8, 8>}, {transform_indices = @transform_3, window_bounds = array<i64: 1, 8, 32>}, {pipeline_mode = #tpu.pipeline_mode<synchronous>, transform_indices = @transform_4, window_bounds = array<i64: 32, 96>}, {pipeline_mode = #tpu.pipeline_mode<synchronous>, transform_indices = @transform_5, window_bounds = array<i64: 1, 96>}, {pipeline_mode = #tpu.pipeline_mode<synchronous>, transform_indices = @transform_6, window_bounds = array<i64: 32, 32>}, {pipeline_mode = #tpu.pipeline_mode<synchronous>, transform_indices = @transform_7, window_bounds = array<i64: 1, 32>}, {pipeline_mode = #tpu.pipeline_mode<synchronous>, transform_indices = @transform_8, window_bounds = array<i64: 1, 32>}, {pipeline_mode = #tpu.pipeline_mode<synchronous>, transform_indices = @transform_9, window_bounds = array<i64: 1, 32>}, {pipeline_mode = #tpu.pipeline_mode<synchronous>, transform_indices = @transform_10, window_bounds = array<i64: 32, 64>}, {pipeline_mode = #tpu.pipeline_mode<synchronous>, transform_indices = @transform_11, window_bounds = array<i64: 1, 64>}, {pipeline_mode = #tpu.pipeline_mode<synchronous>, transform_indices = @transform_12, window_bounds = array<i64: 64, 32>}, {pipeline_mode = #tpu.pipeline_mode<synchronous>, transform_indices = @transform_13, window_bounds = array<i64: 1, 32>}, {pipeline_mode = #tpu.pipeline_mode<synchronous>, transform_indices = @transform_14, window_bounds = array<i64: 1, 32>}, {pipeline_mode = #tpu.pipeline_mode<synchronous>, transform_indices = @transform_15, window_bounds = array<i64: 1, 32>}, {pipeline_mode = #tpu.pipeline_mode<synchronous>, transform_indices = @transform_16, window_bounds = array<i64: 32, 32>}, {pipeline_mode = #tpu.pipeline_mode<synchronous>, transform_indices = @transform_17, window_bounds = array<i64: 32, 32>}, {pipeline_mode = #tpu.pipeline_mode<synchronous>, transform_indices = @transform_18, window_bounds = array<i64: 1, 32>}, {transform_indices = @transform_19, window_bounds = array<i64: 1, 8, 32>}]} {
    %c0 = arith.constant 0 : index
    %c0_0 = arith.constant 0 : index
    %c0_1 = arith.constant 0 : index
    %0 = vector.load %arg1[%c0, %c0_0, %c0_1] : memref<1x8x32xf32, #tpu.memory_space<vmem>>, vector<1x8x32xf32>
    %1 = vector.shape_cast %0 : vector<1x8x32xf32> to vector<8x32xf32>
    %c0_2 = arith.constant 0 : index
    %c0_3 = arith.constant 0 : index
    %c0_4 = arith.constant 0 : index
    %2 = vector.load %arg2[%c0_2, %c0_3, %c0_4] : memref<1x1x8xf32, #tpu.memory_space<vmem>>, vector<1x1x8xf32>
    %3 = vector.shape_cast %2 : vector<1x1x8xf32> to vector<1x8xf32>
    %c0_5 = arith.constant 0 : index
    %c0_6 = arith.constant 0 : index
    %4 = vector.load %arg5[%c0_5, %c0_6] : memref<32x96xf32, #tpu.memory_space<vmem>>, vector<32x96xf32>
    %cst = arith.constant dense<0.000000e+00> : vector<8x96xf32>
    %5 = tpu.matmul %1, %4, %cst {dimension_numbers = #tpu.dot_dimension_numbers<[1], [0], [0], [1], [0, 0, 1, 1], [], []>} : vector<8x32xf32>, vector<32x96xf32>, vector<8x96xf32> -> vector<8x96xf32>
    %c0_7 = arith.constant 0 : index
    %c0_8 = arith.constant 0 : index
    %6 = vector.load %arg6[%c0_7, %c0_8] : memref<1x96xf32, #tpu.memory_space<vmem>>, vector<1x96xf32>
    %7 = vector.broadcast %6 : vector<1x96xf32> to vector<8x96xf32>
    %8 = arith.addf %5, %7 : vector<8x96xf32>
    %9 = vector.extract_strided_slice %8 {offsets = [0, 0], sizes = [8, 32], strides = [1, 1]} : vector<8x96xf32> to vector<8x32xf32>
    %10 = vector.extract_strided_slice %8 {offsets = [0, 32], sizes = [8, 32], strides = [1, 1]} : vector<8x96xf32> to vector<8x32xf32>
    %11 = vector.extract_strided_slice %8 {offsets = [0, 64], sizes = [8, 32], strides = [1, 1]} : vector<8x96xf32> to vector<8x32xf32>
    %cst_9 = arith.constant 0.000000e+00 : f32
    %12 = vector.broadcast %cst_9 : f32 to vector<8x32xf32>
    %13 = vector.extract_strided_slice %9 {offsets = [0, 0], sizes = [8, 8], strides = [1, 1]} : vector<8x32xf32> to vector<8x8xf32>
    %14 = vector.extract_strided_slice %10 {offsets = [0, 0], sizes = [8, 8], strides = [1, 1]} : vector<8x32xf32> to vector<8x8xf32>
    %cst_10 = arith.constant dense<0.000000e+00> : vector<8x8xf32>
    %15 = tpu.matmul %13, %14, %cst_10 {dimension_numbers = #tpu.dot_dimension_numbers<[1], [1], [0], [0], [0, 0, 1, 0], [], []>} : vector<8x8xf32>, vector<8x8xf32>, vector<8x8xf32> -> vector<8x8xf32>
    %cst_11 = arith.constant 0.000000e+00 : f32
    %16 = vector.broadcast %cst_11 : f32 to vector<1x8xf32>
    %17 = arith.cmpf oeq, %3, %16 : vector<1x8xf32>
    %cst_12 = arith.constant 0xFF800000 : f32
    %18 = vector.shape_cast %17 : vector<1x8xi1> to vector<1x8xi1>
    %19 = vector.broadcast %18 : vector<1x8xi1> to vector<8x8xi1>
    %20 = vector.broadcast %cst_12 : f32 to vector<8x8xf32>
    %21 = arith.select %19, %20, %15 : vector<8x8xi1>, vector<8x8xf32>
    %cst_13 = arith.constant dense<0xFF800000> : vector<8xf32>
    %22 = vector.multi_reduction <maximumf>, %21, %cst_13 [1] : vector<8x8xf32> to vector<8xf32>
    %23 = vector.shape_cast %22 : vector<8xf32> to vector<8x1xf32>
    %24 = vector.broadcast %23 : vector<8x1xf32> to vector<8x8xf32>
    %25 = arith.subf %21, %24 : vector<8x8xf32>
    %26 = math.exp %25 : vector<8x8xf32>
    %cst_14 = arith.constant dense<0.000000e+00> : vector<8xf32>
    %27 = vector.multi_reduction <add>, %26, %cst_14 [1] : vector<8x8xf32> to vector<8xf32>
    %28 = vector.shape_cast %27 : vector<8xf32> to vector<8x1xf32>
    %29 = tpu.reciprocal %28 {approx = true} : vector<8x1xf32> -> vector<8x1xf32>
    %30 = vector.broadcast %29 : vector<8x1xf32> to vector<8x8xf32>
    %31 = arith.mulf %26, %30 : vector<8x8xf32>
    %32 = vector.extract_strided_slice %11 {offsets = [0, 0], sizes = [8, 8], strides = [1, 1]} : vector<8x32xf32> to vector<8x8xf32>
    %cst_15 = arith.constant dense<0.000000e+00> : vector<8x8xf32>
    %33 = tpu.matmul %31, %32, %cst_15 {dimension_numbers = #tpu.dot_dimension_numbers<[1], [0], [0], [1], [0, 0, 1, 1], [], []>} : vector<8x8xf32>, vector<8x8xf32>, vector<8x8xf32> -> vector<8x8xf32>
    %c0_16 = arith.constant 0 : index
    %c0_17 = arith.constant 0 : index
    %34 = vector.load %arg7[%c0_16, %c0_17] : memref<32x32xf32, #tpu.memory_space<vmem>>, vector<8x32xf32>
    %cst_18 = arith.constant dense<0.000000e+00> : vector<8x32xf32>
    %35 = tpu.matmul %33, %34, %cst_18 {dimension_numbers = #tpu.dot_dimension_numbers<[1], [0], [0], [1], [0, 0, 1, 1], [], []>} : vector<8x8xf32>, vector<8x32xf32>, vector<8x32xf32> -> vector<8x32xf32>
    %36 = arith.addf %12, %35 : vector<8x32xf32>
    %37 = vector.extract_strided_slice %9 {offsets = [0, 8], sizes = [8, 8], strides = [1, 1]} : vector<8x32xf32> to vector<8x8xf32>
    %38 = vector.extract_strided_slice %10 {offsets = [0, 8], sizes = [8, 8], strides = [1, 1]} : vector<8x32xf32> to vector<8x8xf32>
    %cst_19 = arith.constant dense<0.000000e+00> : vector<8x8xf32>
    %39 = tpu.matmul %37, %38, %cst_19 {dimension_numbers = #tpu.dot_dimension_numbers<[1], [1], [0], [0], [0, 0, 1, 0], [], []>} : vector<8x8xf32>, vector<8x8xf32>, vector<8x8xf32> -> vector<8x8xf32>
    %cst_20 = arith.constant 0.000000e+00 : f32
    %40 = vector.broadcast %cst_20 : f32 to vector<1x8xf32>
    %41 = arith.cmpf oeq, %3, %40 : vector<1x8xf32>
    %cst_21 = arith.constant 0xFF800000 : f32
    %42 = vector.shape_cast %41 : vector<1x8xi1> to vector<1x8xi1>
    %43 = vector.broadcast %42 : vector<1x8xi1> to vector<8x8xi1>
    %44 = vector.broadcast %cst_21 : f32 to vector<8x8xf32>
    %45 = arith.select %43, %44, %39 : vector<8x8xi1>, vector<8x8xf32>
    %cst_22 = arith.constant dense<0xFF800000> : vector<8xf32>
    %46 = vector.multi_reduction <maximumf>, %45, %cst_22 [1] : vector<8x8xf32> to vector<8xf32>
    %47 = vector.shape_cast %46 : vector<8xf32> to vector<8x1xf32>
    %48 = vector.broadcast %47 : vector<8x1xf32> to vector<8x8xf32>
    %49 = arith.subf %45, %48 : vector<8x8xf32>
    %50 = math.exp %49 : vector<8x8xf32>
    %cst_23 = arith.constant dense<0.000000e+00> : vector<8xf32>
    %51 = vector.multi_reduction <add>, %50, %cst_23 [1] : vector<8x8xf32> to vector<8xf32>
    %52 = vector.shape_cast %51 : vector<8xf32> to vector<8x1xf32>
    %53 = tpu.reciprocal %52 {approx = true} : vector<8x1xf32> -> vector<8x1xf32>
    %54 = vector.broadcast %53 : vector<8x1xf32> to vector<8x8xf32>
    %55 = arith.mulf %50, %54 : vector<8x8xf32>
    %56 = vector.extract_strided_slice %11 {offsets = [0, 8], sizes = [8, 8], strides = [1, 1]} : vector<8x32xf32> to vector<8x8xf32>
    %cst_24 = arith.constant dense<0.000000e+00> : vector<8x8xf32>
    %57 = tpu.matmul %55, %56, %cst_24 {dimension_numbers = #tpu.dot_dimension_numbers<[1], [0], [0], [1], [0, 0, 1, 1], [], []>} : vector<8x8xf32>, vector<8x8xf32>, vector<8x8xf32> -> vector<8x8xf32>
    %c8 = arith.constant 8 : index
    %c0_25 = arith.constant 0 : index
    %58 = vector.load %arg7[%c8, %c0_25] : memref<32x32xf32, #tpu.memory_space<vmem>>, vector<8x32xf32>
    %cst_26 = arith.constant dense<0.000000e+00> : vector<8x32xf32>
    %59 = tpu.matmul %57, %58, %cst_26 {dimension_numbers = #tpu.dot_dimension_numbers<[1], [0], [0], [1], [0, 0, 1, 1], [], []>} : vector<8x8xf32>, vector<8x32xf32>, vector<8x32xf32> -> vector<8x32xf32>
    %60 = arith.addf %36, %59 : vector<8x32xf32>
    %61 = vector.extract_strided_slice %9 {offsets = [0, 16], sizes = [8, 8], strides = [1, 1]} : vector<8x32xf32> to vector<8x8xf32>
    %62 = vector.extract_strided_slice %10 {offsets = [0, 16], sizes = [8, 8], strides = [1, 1]} : vector<8x32xf32> to vector<8x8xf32>
    %cst_27 = arith.constant dense<0.000000e+00> : vector<8x8xf32>
    %63 = tpu.matmul %61, %62, %cst_27 {dimension_numbers = #tpu.dot_dimension_numbers<[1], [1], [0], [0], [0, 0, 1, 0], [], []>} : vector<8x8xf32>, vector<8x8xf32>, vector<8x8xf32> -> vector<8x8xf32>
    %cst_28 = arith.constant 0.000000e+00 : f32
    %64 = vector.broadcast %cst_28 : f32 to vector<1x8xf32>
    %65 = arith.cmpf oeq, %3, %64 : vector<1x8xf32>
    %cst_29 = arith.constant 0xFF800000 : f32
    %66 = vector.shape_cast %65 : vector<1x8xi1> to vector<1x8xi1>
    %67 = vector.broadcast %66 : vector<1x8xi1> to vector<8x8xi1>
    %68 = vector.broadcast %cst_29 : f32 to vector<8x8xf32>
    %69 = arith.select %67, %68, %63 : vector<8x8xi1>, vector<8x8xf32>
    %cst_30 = arith.constant dense<0xFF800000> : vector<8xf32>
    %70 = vector.multi_reduction <maximumf>, %69, %cst_30 [1] : vector<8x8xf32> to vector<8xf32>
    %71 = vector.shape_cast %70 : vector<8xf32> to vector<8x1xf32>
    %72 = vector.broadcast %71 : vector<8x1xf32> to vector<8x8xf32>
    %73 = arith.subf %69, %72 : vector<8x8xf32>
    %74 = math.exp %73 : vector<8x8xf32>
    %cst_31 = arith.constant dense<0.000000e+00> : vector<8xf32>
    %75 = vector.multi_reduction <add>, %74, %cst_31 [1] : vector<8x8xf32> to vector<8xf32>
    %76 = vector.shape_cast %75 : vector<8xf32> to vector<8x1xf32>
    %77 = tpu.reciprocal %76 {approx = true} : vector<8x1xf32> -> vector<8x1xf32>
    %78 = vector.broadcast %77 : vector<8x1xf32> to vector<8x8xf32>
    %79 = arith.mulf %74, %78 : vector<8x8xf32>
    %80 = vector.extract_strided_slice %11 {offsets = [0, 16], sizes = [8, 8], strides = [1, 1]} : vector<8x32xf32> to vector<8x8xf32>
    %cst_32 = arith.constant dense<0.000000e+00> : vector<8x8xf32>
    %81 = tpu.matmul %79, %80, %cst_32 {dimension_numbers = #tpu.dot_dimension_numbers<[1], [0], [0], [1], [0, 0, 1, 1], [], []>} : vector<8x8xf32>, vector<8x8xf32>, vector<8x8xf32> -> vector<8x8xf32>
    %c16 = arith.constant 16 : index
    %c0_33 = arith.constant 0 : index
    %82 = vector.load %arg7[%c16, %c0_33] : memref<32x32xf32, #tpu.memory_space<vmem>>, vector<8x32xf32>
    %cst_34 = arith.constant dense<0.000000e+00> : vector<8x32xf32>
    %83 = tpu.matmul %81, %82, %cst_34 {dimension_numbers = #tpu.dot_dimension_numbers<[1], [0], [0], [1], [0, 0, 1, 1], [], []>} : vector<8x8xf32>, vector<8x32xf32>, vector<8x32xf32> -> vector<8x32xf32>
    %84 = arith.addf %60, %83 : vector<8x32xf32>
    %85 = vector.extract_strided_slice %9 {offsets = [0, 24], sizes = [8, 8], strides = [1, 1]} : vector<8x32xf32> to vector<8x8xf32>
    %86 = vector.extract_strided_slice %10 {offsets = [0, 24], sizes = [8, 8], strides = [1, 1]} : vector<8x32xf32> to vector<8x8xf32>
    %cst_35 = arith.constant dense<0.000000e+00> : vector<8x8xf32>
    %87 = tpu.matmul %85, %86, %cst_35 {dimension_numbers = #tpu.dot_dimension_numbers<[1], [1], [0], [0], [0, 0, 1, 0], [], []>} : vector<8x8xf32>, vector<8x8xf32>, vector<8x8xf32> -> vector<8x8xf32>
    %cst_36 = arith.constant 0.000000e+00 : f32
    %88 = vector.broadcast %cst_36 : f32 to vector<1x8xf32>
    %89 = arith.cmpf oeq, %3, %88 : vector<1x8xf32>
    %cst_37 = arith.constant 0xFF800000 : f32
    %90 = vector.shape_cast %89 : vector<1x8xi1> to vector<1x8xi1>
    %91 = vector.broadcast %90 : vector<1x8xi1> to vector<8x8xi1>
    %92 = vector.broadcast %cst_37 : f32 to vector<8x8xf32>
    %93 = arith.select %91, %92, %87 : vector<8x8xi1>, vector<8x8xf32>
    %cst_38 = arith.constant dense<0xFF800000> : vector<8xf32>
    %94 = vector.multi_reduction <maximumf>, %93, %cst_38 [1] : vector<8x8xf32> to vector<8xf32>
    %95 = vector.shape_cast %94 : vector<8xf32> to vector<8x1xf32>
    %96 = vector.broadcast %95 : vector<8x1xf32> to vector<8x8xf32>
    %97 = arith.subf %93, %96 : vector<8x8xf32>
    %98 = math.exp %97 : vector<8x8xf32>
    %cst_39 = arith.constant dense<0.000000e+00> : vector<8xf32>
    %99 = vector.multi_reduction <add>, %98, %cst_39 [1] : vector<8x8xf32> to vector<8xf32>
    %100 = vector.shape_cast %99 : vector<8xf32> to vector<8x1xf32>
    %101 = tpu.reciprocal %100 {approx = true} : vector<8x1xf32> -> vector<8x1xf32>
    %102 = vector.broadcast %101 : vector<8x1xf32> to vector<8x8xf32>
    %103 = arith.mulf %98, %102 : vector<8x8xf32>
    %104 = vector.extract_strided_slice %11 {offsets = [0, 24], sizes = [8, 8], strides = [1, 1]} : vector<8x32xf32> to vector<8x8xf32>
    %cst_40 = arith.constant dense<0.000000e+00> : vector<8x8xf32>
    %105 = tpu.matmul %103, %104, %cst_40 {dimension_numbers = #tpu.dot_dimension_numbers<[1], [0], [0], [1], [0, 0, 1, 1], [], []>} : vector<8x8xf32>, vector<8x8xf32>, vector<8x8xf32> -> vector<8x8xf32>
    %c24 = arith.constant 24 : index
    %c0_41 = arith.constant 0 : index
    %106 = vector.load %arg7[%c24, %c0_41] : memref<32x32xf32, #tpu.memory_space<vmem>>, vector<8x32xf32>
    %cst_42 = arith.constant dense<0.000000e+00> : vector<8x32xf32>
    %107 = tpu.matmul %105, %106, %cst_42 {dimension_numbers = #tpu.dot_dimension_numbers<[1], [0], [0], [1], [0, 0, 1, 1], [], []>} : vector<8x8xf32>, vector<8x32xf32>, vector<8x32xf32> -> vector<8x32xf32>
    %108 = arith.addf %84, %107 : vector<8x32xf32>
    %c0_43 = arith.constant 0 : index
    %c0_44 = arith.constant 0 : index
    %109 = vector.load %arg8[%c0_43, %c0_44] : memref<1x32xf32, #tpu.memory_space<vmem>>, vector<1x32xf32>
    %110 = vector.broadcast %109 : vector<1x32xf32> to vector<8x32xf32>
    %111 = arith.addf %108, %110 : vector<8x32xf32>
    %112 = arith.addf %111, %1 : vector<8x32xf32>
    %c0_45 = arith.constant 0 : index
    %c0_46 = arith.constant 0 : index
    %113 = vector.load %arg9[%c0_45, %c0_46] : memref<1x32xf32, #tpu.memory_space<vmem>>, vector<1x32xf32>
    %c0_47 = arith.constant 0 : index
    %c0_48 = arith.constant 0 : index
    %114 = vector.load %arg10[%c0_47, %c0_48] : memref<1x32xf32, #tpu.memory_space<vmem>>, vector<1x32xf32>
    %cst_49 = arith.constant dense<0.000000e+00> : vector<8xf32>
    %115 = vector.multi_reduction <add>, %112, %cst_49 [1] : vector<8x32xf32> to vector<8xf32>
    %116 = vector.shape_cast %115 : vector<8xf32> to vector<8x1xf32>
    %cst_50 = arith.constant 3.200000e+01 : f32
    %117 = vector.broadcast %cst_50 : f32 to vector<8x1xf32>
    %118 = arith.divf %116, %117 : vector<8x1xf32>
    %119 = vector.broadcast %118 : vector<8x1xf32> to vector<8x32xf32>
    %120 = arith.subf %112, %119 : vector<8x32xf32>
    %121 = arith.mulf %120, %120 : vector<8x32xf32>
    %cst_51 = arith.constant dense<0.000000e+00> : vector<8xf32>
    %122 = vector.multi_reduction <add>, %121, %cst_51 [1] : vector<8x32xf32> to vector<8xf32>
    %123 = vector.shape_cast %122 : vector<8xf32> to vector<8x1xf32>
    %cst_52 = arith.constant 3.200000e+01 : f32
    %124 = vector.broadcast %cst_52 : f32 to vector<8x1xf32>
    %125 = arith.divf %123, %124 : vector<8x1xf32>
    %126 = vector.broadcast %118 : vector<8x1xf32> to vector<8x32xf32>
    %127 = arith.subf %112, %126 : vector<8x32xf32>
    %cst_53 = arith.constant 9.99999974E-6 : f32
    %128 = vector.broadcast %cst_53 : f32 to vector<8x1xf32>
    %129 = arith.addf %125, %128 : vector<8x1xf32>
    %130 = math.sqrt %129 : vector<8x1xf32>
    %131 = vector.broadcast %130 : vector<8x1xf32> to vector<8x32xf32>
    %132 = arith.divf %127, %131 : vector<8x32xf32>
    %133 = vector.broadcast %113 : vector<1x32xf32> to vector<8x32xf32>
    %134 = arith.mulf %133, %132 : vector<8x32xf32>
    %135 = vector.broadcast %114 : vector<1x32xf32> to vector<8x32xf32>
    %136 = arith.addf %134, %135 : vector<8x32xf32>
    %c0_54 = arith.constant 0 : index
    %c0_55 = arith.constant 0 : index
    %137 = vector.load %arg11[%c0_54, %c0_55] : memref<32x64xf32, #tpu.memory_space<vmem>>, vector<32x64xf32>
    %cst_56 = arith.constant dense<0.000000e+00> : vector<8x64xf32>
    %138 = tpu.matmul %136, %137, %cst_56 {dimension_numbers = #tpu.dot_dimension_numbers<[1], [0], [0], [1], [0, 0, 1, 1], [], []>} : vector<8x32xf32>, vector<32x64xf32>, vector<8x64xf32> -> vector<8x64xf32>
    %c0_57 = arith.constant 0 : index
    %c0_58 = arith.constant 0 : index
    %139 = vector.load %arg12[%c0_57, %c0_58] : memref<1x64xf32, #tpu.memory_space<vmem>>, vector<1x64xf32>
    %140 = vector.broadcast %139 : vector<1x64xf32> to vector<8x64xf32>
    %141 = arith.addf %138, %140 : vector<8x64xf32>
    %cst_59 = arith.constant 0.000000e+00 : f32
    %142 = vector.broadcast %cst_59 : f32 to vector<8x64xf32>
    %143 = arith.maximumf %141, %142 : vector<8x64xf32>
    %c0_60 = arith.constant 0 : index
    %c0_61 = arith.constant 0 : index
    %144 = vector.load %arg13[%c0_60, %c0_61] : memref<64x32xf32, #tpu.memory_space<vmem>>, vector<64x32xf32>
    %cst_62 = arith.constant dense<0.000000e+00> : vector<8x32xf32>
    %145 = tpu.matmul %143, %144, %cst_62 {dimension_numbers = #tpu.dot_dimension_numbers<[1], [0], [0], [1], [0, 0, 1, 1], [], []>} : vector<8x64xf32>, vector<64x32xf32>, vector<8x32xf32> -> vector<8x32xf32>
    %c0_63 = arith.constant 0 : index
    %c0_64 = arith.constant 0 : index
    %146 = vector.load %arg14[%c0_63, %c0_64] : memref<1x32xf32, #tpu.memory_space<vmem>>, vector<1x32xf32>
    %147 = vector.broadcast %146 : vector<1x32xf32> to vector<8x32xf32>
    %148 = arith.addf %145, %147 : vector<8x32xf32>
    %149 = arith.addf %136, %148 : vector<8x32xf32>
    %c0_65 = arith.constant 0 : index
    %c0_66 = arith.constant 0 : index
    %150 = vector.load %arg15[%c0_65, %c0_66] : memref<1x32xf32, #tpu.memory_space<vmem>>, vector<1x32xf32>
    %c0_67 = arith.constant 0 : index
    %c0_68 = arith.constant 0 : index
    %151 = vector.load %arg16[%c0_67, %c0_68] : memref<1x32xf32, #tpu.memory_space<vmem>>, vector<1x32xf32>
    %cst_69 = arith.constant dense<0.000000e+00> : vector<8xf32>
    %152 = vector.multi_reduction <add>, %149, %cst_69 [1] : vector<8x32xf32> to vector<8xf32>
    %153 = vector.shape_cast %152 : vector<8xf32> to vector<8x1xf32>
    %cst_70 = arith.constant 3.200000e+01 : f32
    %154 = vector.broadcast %cst_70 : f32 to vector<8x1xf32>
    %155 = arith.divf %153, %154 : vector<8x1xf32>
    %156 = vector.broadcast %155 : vector<8x1xf32> to vector<8x32xf32>
    %157 = arith.subf %149, %156 : vector<8x32xf32>
    %158 = arith.mulf %157, %157 : vector<8x32xf32>
    %cst_71 = arith.constant dense<0.000000e+00> : vector<8xf32>
    %159 = vector.multi_reduction <add>, %158, %cst_71 [1] : vector<8x32xf32> to vector<8xf32>
    %160 = vector.shape_cast %159 : vector<8xf32> to vector<8x1xf32>
    %cst_72 = arith.constant 3.200000e+01 : f32
    %161 = vector.broadcast %cst_72 : f32 to vector<8x1xf32>
    %162 = arith.divf %160, %161 : vector<8x1xf32>
    %163 = vector.broadcast %155 : vector<8x1xf32> to vector<8x32xf32>
    %164 = arith.subf %149, %163 : vector<8x32xf32>
    %cst_73 = arith.constant 9.99999974E-6 : f32
    %165 = vector.broadcast %cst_73 : f32 to vector<8x1xf32>
    %166 = arith.addf %162, %165 : vector<8x1xf32>
    %167 = math.sqrt %166 : vector<8x1xf32>
    %168 = vector.broadcast %167 : vector<8x1xf32> to vector<8x32xf32>
    %169 = arith.divf %164, %168 : vector<8x32xf32>
    %170 = vector.broadcast %150 : vector<1x32xf32> to vector<8x32xf32>
    %171 = arith.mulf %170, %169 : vector<8x32xf32>
    %172 = vector.broadcast %151 : vector<1x32xf32> to vector<8x32xf32>
    %173 = arith.addf %171, %172 : vector<8x32xf32>
    %c0_74 = arith.constant 0 : index
    %c0_75 = arith.constant 0 : index
    %c0_76 = arith.constant 0 : index
    %174 = vector.load %arg3[%c0_74, %c0_75, %c0_76] : memref<1x8x8xf32, #tpu.memory_space<vmem>>, vector<1x8x8xf32>
    %175 = vector.shape_cast %174 : vector<1x8x8xf32> to vector<8x8xf32>
    %c0_77 = arith.constant 0 : index
    %c0_78 = arith.constant 0 : index
    %c0_79 = arith.constant 0 : index
    %176 = vector.load %arg4[%c0_77, %c0_78, %c0_79] : memref<1x8x32xf32, #tpu.memory_space<vmem>>, vector<1x8x32xf32>
    %177 = vector.shape_cast %176 : vector<1x8x32xf32> to vector<8x32xf32>
    %cst_80 = arith.constant dense<0.000000e+00> : vector<8x32xf32>
    %178 = tpu.matmul %175, %177, %cst_80 {dimension_numbers = #tpu.dot_dimension_numbers<[1], [0], [0], [1], [0, 0, 1, 1], [], []>} : vector<8x8xf32>, vector<8x32xf32>, vector<8x32xf32> -> vector<8x32xf32>
    %c0_81 = arith.constant 0 : index
    %c0_82 = arith.constant 0 : index
    %179 = vector.load %arg17[%c0_81, %c0_82] : memref<32x32xf32, #tpu.memory_space<vmem>>, vector<32x32xf32>
    %cst_83 = arith.constant dense<0.000000e+00> : vector<8x32xf32>
    %180 = tpu.matmul %173, %179, %cst_83 {dimension_numbers = #tpu.dot_dimension_numbers<[1], [0], [0], [1], [0, 0, 1, 1], [], []>} : vector<8x32xf32>, vector<32x32xf32>, vector<8x32xf32> -> vector<8x32xf32>
    %c0_84 = arith.constant 0 : index
    %c0_85 = arith.constant 0 : index
    %181 = vector.load %arg18[%c0_84, %c0_85] : memref<32x32xf32, #tpu.memory_space<vmem>>, vector<32x32xf32>
    %cst_86 = arith.constant dense<0.000000e+00> : vector<8x32xf32>
    %182 = tpu.matmul %178, %181, %cst_86 {dimension_numbers = #tpu.dot_dimension_numbers<[1], [0], [0], [1], [0, 0, 1, 1], [], []>} : vector<8x32xf32>, vector<32x32xf32>, vector<8x32xf32> -> vector<8x32xf32>
    %183 = arith.addf %180, %182 : vector<8x32xf32>
    %c0_87 = arith.constant 0 : index
    %c0_88 = arith.constant 0 : index
    %184 = vector.load %arg19[%c0_87, %c0_88] : memref<1x32xf32, #tpu.memory_space<vmem>>, vector<1x32xf32>
    %185 = vector.broadcast %184 : vector<1x32xf32> to vector<8x32xf32>
    %186 = arith.addf %183, %185 : vector<8x32xf32>
    %c0_89 = arith.constant 0 : index
    %c0_90 = arith.constant 0 : index
    %c0_91 = arith.constant 0 : index
    %187 = vector.load %arg20[%c0_89, %c0_90, %c0_91] : memref<1x8x32xf32, #tpu.memory_space<vmem>>, vector<1x8x32xf32>
    %188 = vector.shape_cast %187 : vector<1x8x32xf32> to vector<8x32xf32>
    %189 = vector.shape_cast %186 : vector<8x32xf32> to vector<1x8x32xf32>
    tpu.vector_store %arg20[%c0_89, %c0_90, %c0_91], %189 {strides = array<i32>} : memref<1x8x32xf32, #tpu.memory_space<vmem>>, vector<1x8x32xf32>,
    return
  }
  func.func @transform_0(%arg0: i32) -> (i32, i32, i32) {
    %c0_i32 = arith.constant 0 : i32
    %c0_i32_0 = arith.constant 0 : i32
    %c0_i32_1 = arith.constant 0 : i32
    return %arg0, %c0_i32, %c0_i32_0 : i32, i32, i32
  }
  func.func @transform_1(%arg0: i32) -> (i32, i32, i32) {
    %c0_i32 = arith.constant 0 : i32
    %c0_i32_0 = arith.constant 0 : i32
    %c0_i32_1 = arith.constant 0 : i32
    return %arg0, %c0_i32, %c0_i32_0 : i32, i32, i32
  }
  func.func @transform_2(%arg0: i32) -> (i32, i32, i32) {
    %c0_i32 = arith.constant 0 : i32
    %c0_i32_0 = arith.constant 0 : i32
    %c0_i32_1 = arith.constant 0 : i32
    return %arg0, %c0_i32, %c0_i32_0 : i32, i32, i32
  }
  func.func @transform_3(%arg0: i32) -> (i32, i32, i32) {
    %c0_i32 = arith.constant 0 : i32
    %c0_i32_0 = arith.constant 0 : i32
    %c0_i32_1 = arith.constant 0 : i32
    return %arg0, %c0_i32, %c0_i32_0 : i32, i32, i32
  }
  func.func @transform_4(%arg0: i32) -> (i32, i32) {
    %c0_i32 = arith.constant 0 : i32
    %c0_i32_0 = arith.constant 0 : i32
    %c0_i32_1 = arith.constant 0 : i32
    return %c0_i32, %c0_i32_0 : i32, i32
  }
  func.func @transform_5(%arg0: i32) -> (i32, i32) {
    %c0_i32 = arith.constant 0 : i32
    %c0_i32_0 = arith.constant 0 : i32
    %c0_i32_1 = arith.constant 0 : i32
    return %c0_i32, %c0_i32_0 : i32, i32
  }
  func.func @transform_6(%arg0: i32) -> (i32, i32) {
    %c0_i32 = arith.constant 0 : i32
    %c0_i32_0 = arith.constant 0 : i32
    %c0_i32_1 = arith.constant 0 : i32
    return %c0_i32, %c0_i32_0 : i32, i32
  }
  func.func @transform_7(%arg0: i32) -> (i32, i32) {
    %c0_i32 = arith.constant 0 : i32
    %c0_i32_0 = arith.constant 0 : i32
    %c0_i32_1 = arith.constant 0 : i32
    return %c0_i32, %c0_i32_0 : i32, i32
  }
  func.func @transform_8(%arg0: i32) -> (i32, i32) {
    %c0_i32 = arith.constant 0 : i32
    %c0_i32_0 = arith.constant 0 : i32
    %c0_i32_1 = arith.constant 0 : i32
    return %c0_i32, %c0_i32_0 : i32, i32
  }
  func.func @transform_9(%arg0: i32) -> (i32, i32) {
    %c0_i32 = arith.constant 0 : i32
    %c0_i32_0 = arith.constant 0 : i32
    %c0_i32_1 = arith.constant 0 : i32
    return %c0_i32, %c0_i32_0 : i32, i32
  }
  func.func @transform_10(%arg0: i32) -> (i32, i32) {
    %c0_i32 = arith.constant 0 : i32
    %c0_i32_0 = arith.constant 0 : i32
    %c0_i32_1 = arith.constant 0 : i32
    return %c0_i32, %c0_i32_0 : i32, i32
  }
  func.func @transform_11(%arg0: i32) -> (i32, i32) {
    %c0_i32 = arith.constant 0 : i32
    %c0_i32_0 = arith.constant 0 : i32
    %c0_i32_1 = arith.constant 0 : i32
    return %c0_i32, %c0_i32_0 : i32, i32
  }
  func.func @transform_12(%arg0: i32) -> (i32, i32) {
    %c0_i32 = arith.constant 0 : i32
    %c0_i32_0 = arith.constant 0 : i32
    %c0_i32_1 = arith.constant 0 : i32
    return %c0_i32, %c0_i32_0 : i32, i32
  }
  func.func @transform_13(%arg0: i32) -> (i32, i32) {
    %c0_i32 = arith.constant 0 : i32
    %c0_i32_0 = arith.constant 0 : i32
    %c0_i32_1 = arith.constant 0 : i32
    return %c0_i32, %c0_i32_0 : i32, i32
  }
  func.func @transform_14(%arg0: i32) -> (i32, i32) {
    %c0_i32 = arith.constant 0 : i32
    %c0_i32_0 = arith.constant 0 : i32
    %c0_i32_1 = arith.constant 0 : i32
    return %c0_i32, %c0_i32_0 : i32, i32
  }
  func.func @transform_15(%arg0: i32) -> (i32, i32) {
    %c0_i32 = arith.constant 0 : i32
    %c0_i32_0 = arith.constant 0 : i32
    %c0_i32_1 = arith.constant 0 : i32
    return %c0_i32, %c0_i32_0 : i32, i32
  }
  func.func @transform_16(%arg0: i32) -> (i32, i32) {
    %c0_i32 = arith.constant 0 : i32
    %c0_i32_0 = arith.constant 0 : i32
    %c0_i32_1 = arith.constant 0 : i32
    return %c0_i32, %c0_i32_0 : i32, i32
  }
  func.func @transform_17(%arg0: i32) -> (i32, i32) {
    %c0_i32 = arith.constant 0 : i32
    %c0_i32_0 = arith.constant 0 : i32
    %c0_i32_1 = arith.constant 0 : i32
    return %c0_i32, %c0_i32_0 : i32, i32
  }
  func.func @transform_18(%arg0: i32) -> (i32, i32) {
    %c0_i32 = arith.constant 0 : i32
    %c0_i32_0 = arith.constant 0 : i32
    %c0_i32_1 = arith.constant 0 : i32
    return %c0_i32, %c0_i32_0 : i32, i32
  }
  func.func @transform_19(%arg0: i32) -> (i32, i32, i32) {
    %c0_i32 = arith.constant 0 : i32
    %c0_i32_0 = arith.constant 0 : i32
    %c0_i32_1 = arith.constant 0 : i32
    return %arg0, %c0_i32, %c0_i32_0 : i32, i32, i32
  }
}

module attributes {stable_mosaic.version = 11 : i64} {
  func.func @_transformer_layer_kernel(%arg0: i32, %arg1: memref<1x8x32xf32, #tpu.memory_space<vmem>>, %arg2: memref<1x1x8xf32, #tpu.memory_space<vmem>>, %arg3: memref<1x8x8xf32, #tpu.memory_space<vmem>>, %arg4: memref<1x8x32xf32, #tpu.memory_space<vmem>>, %arg5: memref<32x96xf32, #tpu.memory_space<vmem>>, %arg6: memref<1x96xf32, #tpu.memory_space<vmem>>, %arg7: memref<32x32xf32, #tpu.memory_space<vmem>>, %arg8: memref<1x32xf32, #tpu.memory_space<vmem>>, %arg9: memref<1x32xf32, #tpu.memory_space<vmem>>, %arg10: memref<1x32xf32, #tpu.memory_space<vmem>>, %arg11: memref<32x64xf32, #tpu.memory_space<vmem>>, %arg12: memref<1x64xf32, #tpu.memory_space<vmem>>, %arg13: memref<64x32xf32, #tpu.memory_space<vmem>>, %arg14: memref<1x32xf32, #tpu.memory_space<vmem>>, %arg15: memref<1x32xf32, #tpu.memory_space<vmem>>, %arg16: memref<1x32xf32, #tpu.memory_space<vmem>>, %arg17: memref<32x32xf32, #tpu.memory_space<vmem>>, %arg18: memref<32x32xf32, #tpu.memory_space<vmem>>, %arg19: memref<1x32xf32, #tpu.memory_space<vmem>>, %arg20: memref<1x8x32xf32, #tpu.memory_space<vmem>>) attributes {dimension_semantics = [#tpu.dimension_semantics<parallel>], iteration_bounds = array<i64: 2>, scalar_prefetch = 0 : i64, scratch_operands = 0 : i64, tpu.core_type = #tpu.core_type<tc>, window_params = [{transform_indices = @transform_0, window_bounds = array<i64: 1, 8, 32>}, {transform_indices = @transform_1, window_bounds = array<i64: 1, 1, 8>}, {transform_indices = @transform_2, window_bounds = array<i64: 1, 8, 8>}, {transform_indices = @transform_3, window_bounds = array<i64: 1, 8, 32>}, {pipeline_mode = #tpu.pipeline_mode<synchronous>, transform_indices = @transform_4, window_bounds = array<i64: 32, 96>}, {pipeline_mode = #tpu.pipeline_mode<synchronous>, transform_indices = @transform_5, window_bounds = array<i64: 1, 96>}, {pipeline_mode = #tpu.pipeline_mode<synchronous>, transform_indices = @transform_6, window_bounds = array<i64: 32, 32>}, {pipeline_mode = #tpu.pipeline_mode<synchronous>, transform_indices = @transform_7, window_bounds = array<i64: 1, 32>}, {pipeline_mode = #tpu.pipeline_mode<synchronous>, transform_indices = @transform_8, window_bounds = array<i64: 1, 32>}, {pipeline_mode = #tpu.pipeline_mode<synchronous>, transform_indices = @transform_9, window_bounds = array<i64: 1, 32>}, {pipeline_mode = #tpu.pipeline_mode<synchronous>, transform_indices = @transform_10, window_bounds = array<i64: 32, 64>}, {pipeline_mode = #tpu.pipeline_mode<synchronous>, transform_indices = @transform_11, window_bounds = array<i64: 1, 64>}, {pipeline_mode = #tpu.pipeline_mode<synchronous>, transform_indices = @transform_12, window_bounds = array<i64: 64, 32>}, {pipeline_mode = #tpu.pipeline_mode<synchronous>, transform_indices = @transform_13, window_bounds = array<i64: 1, 32>}, {pipeline_mode = #tpu.pipeline_mode<synchronous>, transform_indices = @transform_14, window_bounds = array<i64: 1, 32>}, {pipeline_mode = #tpu.pipeline_mode<synchronous>, transform_indices = @transform_15, window_bounds = array<i64: 1, 32>}, {pipeline_mode = #tpu.pipeline_mode<synchronous>, transform_indices = @transform_16, window_bounds = array<i64: 32, 32>}, {pipeline_mode = #tpu.pipeline_mode<synchronous>, transform_indices = @transform_17, window_bounds = array<i64: 32, 32>}, {pipeline_mode = #tpu.pipeline_mode<synchronous>, transform_indices = @transform_18, window_bounds = array<i64: 1, 32>}, {transform_indices = @transform_19, window_bounds = array<i64: 1, 8, 32>}]} {
    %c0 = arith.constant 0 : index
    %c0_0 = arith.constant 0 : index
    %c0_1 = arith.constant 0 : index
    %0 = vector.load %arg1[%c0, %c0_0, %c0_1] : memref<1x8x32xf32, #tpu.memory_space<vmem>>, vector<1x8x32xf32>
    %1 = vector.shape_cast %0 : vector<1x8x32xf32> to vector<8x32xf32>
    %c0_2 = arith.constant 0 : index
    %c0_3 = arith.constant 0 : index
    %c0_4 = arith.constant 0 : index
    %2 = vector.load %arg2[%c0_2, %c0_3, %c0_4] : memref<1x1x8xf32, #tpu.memory_space<vmem>>, vector<1x1x8xf32>
    %3 = vector.shape_cast %2 : vector<1x1x8xf32> to vector<1x8xf32>
    %c0_5 = arith.constant 0 : index
    %c0_6 = arith.constant 0 : index
    %4 = vector.load %arg5[%c0_5, %c0_6] : memref<32x96xf32, #tpu.memory_space<vmem>>, vector<32x96xf32>
    %cst = arith.constant dense<0.000000e+00> : vector<8x96xf32>
    %5 = tpu.matmul %1, %4, %cst {dimension_numbers = #tpu.dot_dimension_numbers<[1], [0], [0], [1], [0, 0, 1, 1], [], []>} : vector<8x32xf32>, vector<32x96xf32>, vector<8x96xf32> -> vector<8x96xf32>
    %c0_7 = arith.constant 0 : index
    %c0_8 = arith.constant 0 : index
    %6 = vector.load %arg6[%c0_7, %c0_8] : memref<1x96xf32, #tpu.memory_space<vmem>>, vector<1x96xf32>
    %7 = vector.broadcast %6 : vector<1x96xf32> to vector<8x96xf32>
    %8 = arith.addf %5, %7 : vector<8x96xf32>
    %9 = vector.extract_strided_slice %8 {offsets = [0, 0], sizes = [8, 32], strides = [1, 1]} : vector<8x96xf32> to vector<8x32xf32>
    %10 = vector.extract_strided_slice %8 {offsets = [0, 32], sizes = [8, 32], strides = [1, 1]} : vector<8x96xf32> to vector<8x32xf32>
    %11 = vector.extract_strided_slice %8 {offsets = [0, 64], sizes = [8, 32], strides = [1, 1]} : vector<8x96xf32> to vector<8x32xf32>
    %cst_9 = arith.constant 0.000000e+00 : f32
    %12 = vector.broadcast %cst_9 : f32 to vector<8x32xf32>
    %13 = vector.extract_strided_slice %9 {offsets = [0, 0], sizes = [8, 8], strides = [1, 1]} : vector<8x32xf32> to vector<8x8xf32>
    %14 = vector.extract_strided_slice %10 {offsets = [0, 0], sizes = [8, 8], strides = [1, 1]} : vector<8x32xf32> to vector<8x8xf32>
    %cst_10 = arith.constant dense<0.000000e+00> : vector<8x8xf32>
    %15 = tpu.matmul %13, %14, %cst_10 {dimension_numbers = #tpu.dot_dimension_numbers<[1], [1], [0], [0], [0, 0, 1, 0], [], []>} : vector<8x8xf32>, vector<8x8xf32>, vector<8x8xf32> -> vector<8x8xf32>
    %cst_11 = arith.constant 0.000000e+00 : f32
    %16 = vector.broadcast %cst_11 : f32 to vector<1x8xf32>
    %17 = arith.cmpf oeq, %3, %16 : vector<1x8xf32>
    %cst_12 = arith.constant 0xFF800000 : f32
    %18 = vector.shape_cast %17 : vector<1x8xi1> to vector<1x8xi1>
    %19 = vector.broadcast %18 : vector<1x8xi1> to vector<8x8xi1>
    %20 = vector.broadcast %cst_12 : f32 to vector<8x8xf32>
    %21 = arith.select %19, %20, %15 : vector<8x8xi1>, vector<8x8xf32>
    %cst_13 = arith.constant dense<0xFF800000> : vector<8xf32>
    %22 = vector.multi_reduction <maximumf>, %21, %cst_13 [1] : vector<8x8xf32> to vector<8xf32>
    %23 = vector.shape_cast %22 : vector<8xf32> to vector<8x1xf32>
    %24 = vector.broadcast %23 : vector<8x1xf32> to vector<8x8xf32>
    %25 = arith.subf %21, %24 : vector<8x8xf32>
    %26 = math.exp %25 : vector<8x8xf32>
    %cst_14 = arith.constant dense<0.000000e+00> : vector<8xf32>
    %27 = vector.multi_reduction <add>, %26, %cst_14 [1] : vector<8x8xf32> to vector<8xf32>
    %28 = vector.shape_cast %27 : vector<8xf32> to vector<8x1xf32>
    %29 = tpu.reciprocal %28 {approx = true} : vector<8x1xf32> -> vector<8x1xf32>
    %30 = vector.broadcast %29 : vector<8x1xf32> to vector<8x8xf32>
    %31 = arith.mulf %26, %30 : vector<8x8xf32>
    %32 = vector.extract_strided_slice %11 {offsets = [0, 0], sizes = [8, 8], strides = [1, 1]} : vector<8x32xf32> to vector<8x8xf32>
    %cst_15 = arith.constant dense<0.000000e+00> : vector<8x8xf32>
    %33 = tpu.matmul %31, %32, %cst_15 {dimension_numbers = #tpu.dot_dimension_numbers<[1], [0], [0], [1], [0, 0, 1, 1], [], []>} : vector<8x8xf32>, vector<8x8xf32>, vector<8x8xf32> -> vector<8x8xf32>
    %c0_16 = arith.constant 0 : index
    %c0_17 = arith.constant 0 : index
    %34 = vector.load %arg7[%c0_16, %c0_17] : memref<32x32xf32, #tpu.memory_space<vmem>>, vector<8x32xf32>
    %cst_18 = arith.constant dense<0.000000e+00> : vector<8x32xf32>
    %35 = tpu.matmul %33, %34, %cst_18 {dimension_numbers = #tpu.dot_dimension_numbers<[1], [0], [0], [1], [0, 0, 1, 1], [], []>} : vector<8x8xf32>, vector<8x32xf32>, vector<8x32xf32> -> vector<8x32xf32>
    %36 = arith.addf %12, %35 : vector<8x32xf32>
    %37 = vector.extract_strided_slice %9 {offsets = [0, 8], sizes = [8, 8], strides = [1, 1]} : vector<8x32xf32> to vector<8x8xf32>
    %38 = vector.extract_strided_slice %10 {offsets = [0, 8], sizes = [8, 8], strides = [1, 1]} : vector<8x32xf32> to vector<8x8xf32>
    %cst_19 = arith.constant dense<0.000000e+00> : vector<8x8xf32>
    %39 = tpu.matmul %37, %38, %cst_19 {dimension_numbers = #tpu.dot_dimension_numbers<[1], [1], [0], [0], [0, 0, 1, 0], [], []>} : vector<8x8xf32>, vector<8x8xf32>, vector<8x8xf32> -> vector<8x8xf32>
    %cst_20 = arith.constant 0.000000e+00 : f32
    %40 = vector.broadcast %cst_20 : f32 to vector<1x8xf32>
    %41 = arith.cmpf oeq, %3, %40 : vector<1x8xf32>
    %cst_21 = arith.constant 0xFF800000 : f32
    %42 = vector.shape_cast %41 : vector<1x8xi1> to vector<1x8xi1>
    %43 = vector.broadcast %42 : vector<1x8xi1> to vector<8x8xi1>
    %44 = vector.broadcast %cst_21 : f32 to vector<8x8xf32>
    %45 = arith.select %43, %44, %39 : vector<8x8xi1>, vector<8x8xf32>
    %cst_22 = arith.constant dense<0xFF800000> : vector<8xf32>
    %46 = vector.multi_reduction <maximumf>, %45, %cst_22 [1] : vector<8x8xf32> to vector<8xf32>
    %47 = vector.shape_cast %46 : vector<8xf32> to vector<8x1xf32>
    %48 = vector.broadcast %47 : vector<8x1xf32> to vector<8x8xf32>
    %49 = arith.subf %45, %48 : vector<8x8xf32>
    %50 = math.exp %49 : vector<8x8xf32>
    %cst_23 = arith.constant dense<0.000000e+00> : vector<8xf32>
    %51 = vector.multi_reduction <add>, %50, %cst_23 [1] : vector<8x8xf32> to vector<8xf32>
    %52 = vector.shape_cast %51 : vector<8xf32> to vector<8x1xf32>
    %53 = tpu.reciprocal %52 {approx = true} : vector<8x1xf32> -> vector<8x1xf32>
    %54 = vector.broadcast %53 : vector<8x1xf32> to vector<8x8xf32>
    %55 = arith.mulf %50, %54 : vector<8x8xf32>
    %56 = vector.extract_strided_slice %11 {offsets = [0, 8], sizes = [8, 8], strides = [1, 1]} : vector<8x32xf32> to vector<8x8xf32>
    %cst_24 = arith.constant dense<0.000000e+00> : vector<8x8xf32>
    %57 = tpu.matmul %55, %56, %cst_24 {dimension_numbers = #tpu.dot_dimension_numbers<[1], [0], [0], [1], [0, 0, 1, 1], [], []>} : vector<8x8xf32>, vector<8x8xf32>, vector<8x8xf32> -> vector<8x8xf32>
    %c8 = arith.constant 8 : index
    %c0_25 = arith.constant 0 : index
    %58 = vector.load %arg7[%c8, %c0_25] : memref<32x32xf32, #tpu.memory_space<vmem>>, vector<8x32xf32>
    %cst_26 = arith.constant dense<0.000000e+00> : vector<8x32xf32>
    %59 = tpu.matmul %57, %58, %cst_26 {dimension_numbers = #tpu.dot_dimension_numbers<[1], [0], [0], [1], [0, 0, 1, 1], [], []>} : vector<8x8xf32>, vector<8x32xf32>, vector<8x32xf32> -> vector<8x32xf32>
    %60 = arith.addf %36, %59 : vector<8x32xf32>
    %61 = vector.extract_strided_slice %9 {offsets = [0, 16], sizes = [8, 8], strides = [1, 1]} : vector<8x32xf32> to vector<8x8xf32>
    %62 = vector.extract_strided_slice %10 {offsets = [0, 16], sizes = [8, 8], strides = [1, 1]} : vector<8x32xf32> to vector<8x8xf32>
    %cst_27 = arith.constant dense<0.000000e+00> : vector<8x8xf32>
    %63 = tpu.matmul %61, %62, %cst_27 {dimension_numbers = #tpu.dot_dimension_numbers<[1], [1], [0], [0], [0, 0, 1, 0], [], []>} : vector<8x8xf32>, vector<8x8xf32>, vector<8x8xf32> -> vector<8x8xf32>
    %cst_28 = arith.constant 0.000000e+00 : f32
    %64 = vector.broadcast %cst_28 : f32 to vector<1x8xf32>
    %65 = arith.cmpf oeq, %3, %64 : vector<1x8xf32>
    %cst_29 = arith.constant 0xFF800000 : f32
    %66 = vector.shape_cast %65 : vector<1x8xi1> to vector<1x8xi1>
    %67 = vector.broadcast %66 : vector<1x8xi1> to vector<8x8xi1>
    %68 = vector.broadcast %cst_29 : f32 to vector<8x8xf32>
    %69 = arith.select %67, %68, %63 : vector<8x8xi1>, vector<8x8xf32>
    %cst_30 = arith.constant dense<0xFF800000> : vector<8xf32>
    %70 = vector.multi_reduction <maximumf>, %69, %cst_30 [1] : vector<8x8xf32> to vector<8xf32>
    %71 = vector.shape_cast %70 : vector<8xf32> to vector<8x1xf32>
    %72 = vector.broadcast %71 : vector<8x1xf32> to vector<8x8xf32>
    %73 = arith.subf %69, %72 : vector<8x8xf32>
    %74 = math.exp %73 : vector<8x8xf32>
    %cst_31 = arith.constant dense<0.000000e+00> : vector<8xf32>
    %75 = vector.multi_reduction <add>, %74, %cst_31 [1] : vector<8x8xf32> to vector<8xf32>
    %76 = vector.shape_cast %75 : vector<8xf32> to vector<8x1xf32>
    %77 = tpu.reciprocal %76 {approx = true} : vector<8x1xf32> -> vector<8x1xf32>
    %78 = vector.broadcast %77 : vector<8x1xf32> to vector<8x8xf32>
    %79 = arith.mulf %74, %78 : vector<8x8xf32>
    %80 = vector.extract_strided_slice %11 {offsets = [0, 16], sizes = [8, 8], strides = [1, 1]} : vector<8x32xf32> to vector<8x8xf32>
    %cst_32 = arith.constant dense<0.000000e+00> : vector<8x8xf32>
    %81 = tpu.matmul %79, %80, %cst_32 {dimension_numbers = #tpu.dot_dimension_numbers<[1], [0], [0], [1], [0, 0, 1, 1], [], []>} : vector<8x8xf32>, vector<8x8xf32>, vector<8x8xf32> -> vector<8x8xf32>
    %c16 = arith.constant 16 : index
    %c0_33 = arith.constant 0 : index
    %82 = vector.load %arg7[%c16, %c0_33] : memref<32x32xf32, #tpu.memory_space<vmem>>, vector<8x32xf32>
    %cst_34 = arith.constant dense<0.000000e+00> : vector<8x32xf32>
    %83 = tpu.matmul %81, %82, %cst_34 {dimension_numbers = #tpu.dot_dimension_numbers<[1], [0], [0], [1], [0, 0, 1, 1], [], []>} : vector<8x8xf32>, vector<8x32xf32>, vector<8x32xf32> -> vector<8x32xf32>
    %84 = arith.addf %60, %83 : vector<8x32xf32>
    %85 = vector.extract_strided_slice %9 {offsets = [0, 24], sizes = [8, 8], strides = [1, 1]} : vector<8x32xf32> to vector<8x8xf32>
    %86 = vector.extract_strided_slice %10 {offsets = [0, 24], sizes = [8, 8], strides = [1, 1]} : vector<8x32xf32> to vector<8x8xf32>
    %cst_35 = arith.constant dense<0.000000e+00> : vector<8x8xf32>
    %87 = tpu.matmul %85, %86, %cst_35 {dimension_numbers = #tpu.dot_dimension_numbers<[1], [1], [0], [0], [0, 0, 1, 0], [], []>} : vector<8x8xf32>, vector<8x8xf32>, vector<8x8xf32> -> vector<8x8xf32>
    %cst_36 = arith.constant 0.000000e+00 : f32
    %88 = vector.broadcast %cst_36 : f32 to vector<1x8xf32>
    %89 = arith.cmpf oeq, %3, %88 : vector<1x8xf32>
    %cst_37 = arith.constant 0xFF800000 : f32
    %90 = vector.shape_cast %89 : vector<1x8xi1> to vector<1x8xi1>
    %91 = vector.broadcast %90 : vector<1x8xi1> to vector<8x8xi1>
    %92 = vector.broadcast %cst_37 : f32 to vector<8x8xf32>
    %93 = arith.select %91, %92, %87 : vector<8x8xi1>, vector<8x8xf32>
    %cst_38 = arith.constant dense<0xFF800000> : vector<8xf32>
    %94 = vector.multi_reduction <maximumf>, %93, %cst_38 [1] : vector<8x8xf32> to vector<8xf32>
    %95 = vector.shape_cast %94 : vector<8xf32> to vector<8x1xf32>
    %96 = vector.broadcast %95 : vector<8x1xf32> to vector<8x8xf32>
    %97 = arith.subf %93, %96 : vector<8x8xf32>
    %98 = math.exp %97 : vector<8x8xf32>
    %cst_39 = arith.constant dense<0.000000e+00> : vector<8xf32>
    %99 = vector.multi_reduction <add>, %98, %cst_39 [1] : vector<8x8xf32> to vector<8xf32>
    %100 = vector.shape_cast %99 : vector<8xf32> to vector<8x1xf32>
    %101 = tpu.reciprocal %100 {approx = true} : vector<8x1xf32> -> vector<8x1xf32>
    %102 = vector.broadcast %101 : vector<8x1xf32> to vector<8x8xf32>
    %103 = arith.mulf %98, %102 : vector<8x8xf32>
    %104 = vector.extract_strided_slice %11 {offsets = [0, 24], sizes = [8, 8], strides = [1, 1]} : vector<8x32xf32> to vector<8x8xf32>
    %cst_40 = arith.constant dense<0.000000e+00> : vector<8x8xf32>
    %105 = tpu.matmul %103, %104, %cst_40 {dimension_numbers = #tpu.dot_dimension_numbers<[1], [0], [0], [1], [0, 0, 1, 1], [], []>} : vector<8x8xf32>, vector<8x8xf32>, vector<8x8xf32> -> vector<8x8xf32>
    %c24 = arith.constant 24 : index
    %c0_41 = arith.constant 0 : index
    %106 = vector.load %arg7[%c24, %c0_41] : memref<32x32xf32, #tpu.memory_space<vmem>>, vector<8x32xf32>
    %cst_42 = arith.constant dense<0.000000e+00> : vector<8x32xf32>
    %107 = tpu.matmul %105, %106, %cst_42 {dimension_numbers = #tpu.dot_dimension_numbers<[1], [0], [0], [1], [0, 0, 1, 1], [], []>} : vector<8x8xf32>, vector<8x32xf32>, vector<8x32xf32> -> vector<8x32xf32>
    %108 = arith.addf %84, %107 : vector<8x32xf32>
    %c0_43 = arith.constant 0 : index
    %c0_44 = arith.constant 0 : index
    %109 = vector.load %arg8[%c0_43, %c0_44] : memref<1x32xf32, #tpu.memory_space<vmem>>, vector<1x32xf32>
    %110 = vector.broadcast %109 : vector<1x32xf32> to vector<8x32xf32>
    %111 = arith.addf %108, %110 : vector<8x32xf32>
    %112 = arith.addf %111, %1 : vector<8x32xf32>
    %c0_45 = arith.constant 0 : index
    %c0_46 = arith.constant 0 : index
    %113 = vector.load %arg9[%c0_45, %c0_46] : memref<1x32xf32, #tpu.memory_space<vmem>>, vector<1x32xf32>
    %c0_47 = arith.constant 0 : index
    %c0_48 = arith.constant 0 : index
    %114 = vector.load %arg10[%c0_47, %c0_48] : memref<1x32xf32, #tpu.memory_space<vmem>>, vector<1x32xf32>
    %cst_49 = arith.constant dense<0.000000e+00> : vector<8xf32>
    %115 = vector.multi_reduction <add>, %112, %cst_49 [1] : vector<8x32xf32> to vector<8xf32>
    %116 = vector.shape_cast %115 : vector<8xf32> to vector<8x1xf32>
    %cst_50 = arith.constant 3.200000e+01 : f32
    %117 = vector.broadcast %cst_50 : f32 to vector<8x1xf32>
    %118 = arith.divf %116, %117 : vector<8x1xf32>
    %119 = vector.broadcast %118 : vector<8x1xf32> to vector<8x32xf32>
    %120 = arith.subf %112, %119 : vector<8x32xf32>
    %121 = arith.mulf %120, %120 : vector<8x32xf32>
    %cst_51 = arith.constant dense<0.000000e+00> : vector<8xf32>
    %122 = vector.multi_reduction <add>, %121, %cst_51 [1] : vector<8x32xf32> to vector<8xf32>
    %123 = vector.shape_cast %122 : vector<8xf32> to vector<8x1xf32>
    %cst_52 = arith.constant 3.200000e+01 : f32
    %124 = vector.broadcast %cst_52 : f32 to vector<8x1xf32>
    %125 = arith.divf %123, %124 : vector<8x1xf32>
    %126 = vector.broadcast %118 : vector<8x1xf32> to vector<8x32xf32>
    %127 = arith.subf %112, %126 : vector<8x32xf32>
    %cst_53 = arith.constant 9.99999974E-6 : f32
    %128 = vector.broadcast %cst_53 : f32 to vector<8x1xf32>
    %129 = arith.addf %125, %128 : vector<8x1xf32>
    %130 = math.sqrt %129 : vector<8x1xf32>
    %131 = vector.broadcast %130 : vector<8x1xf32> to vector<8x32xf32>
    %132 = arith.divf %127, %131 : vector<8x32xf32>
    %133 = vector.broadcast %113 : vector<1x32xf32> to vector<8x32xf32>
    %134 = arith.mulf %133, %132 : vector<8x32xf32>
    %135 = vector.broadcast %114 : vector<1x32xf32> to vector<8x32xf32>
    %136 = arith.addf %134, %135 : vector<8x32xf32>
    %c0_54 = arith.constant 0 : index
    %c0_55 = arith.constant 0 : index
    %137 = vector.load %arg11[%c0_54, %c0_55] : memref<32x64xf32, #tpu.memory_space<vmem>>, vector<32x64xf32>
    %cst_56 = arith.constant dense<0.000000e+00> : vector<8x64xf32>
    %138 = tpu.matmul %136, %137, %cst_56 {dimension_numbers = #tpu.dot_dimension_numbers<[1], [0], [0], [1], [0, 0, 1, 1], [], []>} : vector<8x32xf32>, vector<32x64xf32>, vector<8x64xf32> -> vector<8x64xf32>
    %c0_57 = arith.constant 0 : index
    %c0_58 = arith.constant 0 : index
    %139 = vector.load %arg12[%c0_57, %c0_58] : memref<1x64xf32, #tpu.memory_space<vmem>>, vector<1x64xf32>
    %140 = vector.broadcast %139 : vector<1x64xf32> to vector<8x64xf32>
    %141 = arith.addf %138, %140 : vector<8x64xf32>
    %cst_59 = arith.constant 0.000000e+00 : f32
    %142 = vector.broadcast %cst_59 : f32 to vector<8x64xf32>
    %143 = arith.maximumf %141, %142 : vector<8x64xf32>
    %c0_60 = arith.constant 0 : index
    %c0_61 = arith.constant 0 : index
    %144 = vector.load %arg13[%c0_60, %c0_61] : memref<64x32xf32, #tpu.memory_space<vmem>>, vector<64x32xf32>
    %cst_62 = arith.constant dense<0.000000e+00> : vector<8x32xf32>
    %145 = tpu.matmul %143, %144, %cst_62 {dimension_numbers = #tpu.dot_dimension_numbers<[1], [0], [0], [1], [0, 0, 1, 1], [], []>} : vector<8x64xf32>, vector<64x32xf32>, vector<8x32xf32> -> vector<8x32xf32>
    %c0_63 = arith.constant 0 : index
    %c0_64 = arith.constant 0 : index
    %146 = vector.load %arg14[%c0_63, %c0_64] : memref<1x32xf32, #tpu.memory_space<vmem>>, vector<1x32xf32>
    %147 = vector.broadcast %146 : vector<1x32xf32> to vector<8x32xf32>
    %148 = arith.addf %145, %147 : vector<8x32xf32>
    %149 = arith.addf %136, %148 : vector<8x32xf32>
    %c0_65 = arith.constant 0 : index
    %c0_66 = arith.constant 0 : index
    %150 = vector.load %arg15[%c0_65, %c0_66] : memref<1x32xf32, #tpu.memory_space<vmem>>, vector<1x32xf32>
    %c0_67 = arith.constant 0 : index
    %c0_68 = arith.constant 0 : index
    %151 = vector.load %arg16[%c0_67, %c0_68] : memref<1x32xf32, #tpu.memory_space<vmem>>, vector<1x32xf32>
    %cst_69 = arith.constant dense<0.000000e+00> : vector<8xf32>
    %152 = vector.multi_reduction <add>, %149, %cst_69 [1] : vector<8x32xf32> to vector<8xf32>
    %153 = vector.shape_cast %152 : vector<8xf32> to vector<8x1xf32>
    %cst_70 = arith.constant 3.200000e+01 : f32
    %154 = vector.broadcast %cst_70 : f32 to vector<8x1xf32>
    %155 = arith.divf %153, %154 : vector<8x1xf32>
    %156 = vector.broadcast %155 : vector<8x1xf32> to vector<8x32xf32>
    %157 = arith.subf %149, %156 : vector<8x32xf32>
    %158 = arith.mulf %157, %157 : vector<8x32xf32>
    %cst_71 = arith.constant dense<0.000000e+00> : vector<8xf32>
    %159 = vector.multi_reduction <add>, %158, %cst_71 [1] : vector<8x32xf32> to vector<8xf32>
    %160 = vector.shape_cast %159 : vector<8xf32> to vector<8x1xf32>
    %cst_72 = arith.constant 3.200000e+01 : f32
    %161 = vector.broadcast %cst_72 : f32 to vector<8x1xf32>
    %162 = arith.divf %160, %161 : vector<8x1xf32>
    %163 = vector.broadcast %155 : vector<8x1xf32> to vector<8x32xf32>
    %164 = arith.subf %149, %163 : vector<8x32xf32>
    %cst_73 = arith.constant 9.99999974E-6 : f32
    %165 = vector.broadcast %cst_73 : f32 to vector<8x1xf32>
    %166 = arith.addf %162, %165 : vector<8x1xf32>
    %167 = math.sqrt %166 : vector<8x1xf32>
    %168 = vector.broadcast %167 : vector<8x1xf32> to vector<8x32xf32>
    %169 = arith.divf %164, %168 : vector<8x32xf32>
    %170 = vector.broadcast %150 : vector<1x32xf32> to vector<8x32xf32>
    %171 = arith.mulf %170, %169 : vector<8x32xf32>
    %172 = vector.broadcast %151 : vector<1x32xf32> to vector<8x32xf32>
    %173 = arith.addf %171, %172 : vector<8x32xf32>
    %c0_74 = arith.constant 0 : index
    %c0_75 = arith.constant 0 : index
    %c0_76 = arith.constant 0 : index
    %174 = vector.load %arg3[%c0_74, %c0_75, %c0_76] : memref<1x8x8xf32, #tpu.memory_space<vmem>>, vector<1x8x8xf32>
    %175 = vector.shape_cast %174 : vector<1x8x8xf32> to vector<8x8xf32>
    %c0_77 = arith.constant 0 : index
    %c0_78 = arith.constant 0 : index
    %c0_79 = arith.constant 0 : index
    %176 = vector.load %arg4[%c0_77, %c0_78, %c0_79] : memref<1x8x32xf32, #tpu.memory_space<vmem>>, vector<1x8x32xf32>
    %177 = vector.shape_cast %176 : vector<1x8x32xf32> to vector<8x32xf32>
    %cst_80 = arith.constant dense<0.000000e+00> : vector<8x32xf32>
    %178 = tpu.matmul %175, %177, %cst_80 {dimension_numbers = #tpu.dot_dimension_numbers<[1], [0], [0], [1], [0, 0, 1, 1], [], []>} : vector<8x8xf32>, vector<8x32xf32>, vector<8x32xf32> -> vector<8x32xf32>
    %c0_81 = arith.constant 0 : index
    %c0_82 = arith.constant 0 : index
    %179 = vector.load %arg17[%c0_81, %c0_82] : memref<32x32xf32, #tpu.memory_space<vmem>>, vector<32x32xf32>
    %cst_83 = arith.constant dense<0.000000e+00> : vector<8x32xf32>
    %180 = tpu.matmul %173, %179, %cst_83 {dimension_numbers = #tpu.dot_dimension_numbers<[1], [0], [0], [1], [0, 0, 1, 1], [], []>} : vector<8x32xf32>, vector<32x32xf32>, vector<8x32xf32> -> vector<8x32xf32>
    %c0_84 = arith.constant 0 : index
    %c0_85 = arith.constant 0 : index
    %181 = vector.load %arg18[%c0_84, %c0_85] : memref<32x32xf32, #tpu.memory_space<vmem>>, vector<32x32xf32>
    %cst_86 = arith.constant dense<0.000000e+00> : vector<8x32xf32>
    %182 = tpu.matmul %178, %181, %cst_86 {dimension_numbers = #tpu.dot_dimension_numbers<[1], [0], [0], [1], [0, 0, 1, 1], [], []>} : vector<8x32xf32>, vector<32x32xf32>, vector<8x32xf32> -> vector<8x32xf32>
    %183 = arith.addf %180, %182 : vector<8x32xf32>
    %c0_87 = arith.constant 0 : index
    %c0_88 = arith.constant 0 : index
    %184 = vector.load %arg19[%c0_87, %c0_88] : memref<1x32xf32, #tpu.memory_space<vmem>>, vector<1x32xf32>
    %185 = vector.broadcast %184 : vector<1x32xf32> to vector<8x32xf32>
    %186 = arith.addf %183, %185 : vector<8x32xf32>
    %c0_89 = arith.constant 0 : index
    %c0_90 = arith.constant 0 : index
    %c0_91 = arith.constant 0 : index
    %187 = vector.load %arg20[%c0_89, %c0_90, %c0_91] : memref<1x8x32xf32, #tpu.memory_space<vmem>>, vector<1x8x32xf32>
    %188 = vector.shape_cast %187 : vector<1x8x32xf32> to vector<8x32xf32>
    %189 = vector.shape_cast %186 : vector<8x32xf32> to vector<1x8x32xf32>
    tpu.vector_store %arg20[%c0_89, %c0_90, %c0_91], %189 {strides = array<i32>} : memref<1x8x32xf32, #tpu.memory_space<vmem>>, vector<1x8x32xf32>,
    return
  }
  func.func @transform_0(%arg0: i32) -> (i32, i32, i32) {
    %c0_i32 = arith.constant 0 : i32
    %c0_i32_0 = arith.constant 0 : i32
    %c0_i32_1 = arith.constant 0 : i32
    return %arg0, %c0_i32, %c0_i32_0 : i32, i32, i32
  }
  func.func @transform_1(%arg0: i32) -> (i32, i32, i32) {
    %c0_i32 = arith.constant 0 : i32
    %c0_i32_0 = arith.constant 0 : i32
    %c0_i32_1 = arith.constant 0 : i32
    return %arg0, %c0_i32, %c0_i32_0 : i32, i32, i32
  }
  func.func @transform_2(%arg0: i32) -> (i32, i32, i32) {
    %c0_i32 = arith.constant 0 : i32
    %c0_i32_0 = arith.constant 0 : i32
    %c0_i32_1 = arith.constant 0 : i32
    return %arg0, %c0_i32, %c0_i32_0 : i32, i32, i32
  }
  func.func @transform_3(%arg0: i32) -> (i32, i32, i32) {
    %c0_i32 = arith.constant 0 : i32
    %c0_i32_0 = arith.constant 0 : i32
    %c0_i32_1 = arith.constant 0 : i32
    return %arg0, %c0_i32, %c0_i32_0 : i32, i32, i32
  }
  func.func @transform_4(%arg0: i32) -> (i32, i32) {
    %c0_i32 = arith.constant 0 : i32
    %c0_i32_0 = arith.constant 0 : i32
    %c0_i32_1 = arith.constant 0 : i32
    return %c0_i32, %c0_i32_0 : i32, i32
  }
  func.func @transform_5(%arg0: i32) -> (i32, i32) {
    %c0_i32 = arith.constant 0 : i32
    %c0_i32_0 = arith.constant 0 : i32
    %c0_i32_1 = arith.constant 0 : i32
    return %c0_i32, %c0_i32_0 : i32, i32
  }
  func.func @transform_6(%arg0: i32) -> (i32, i32) {
    %c0_i32 = arith.constant 0 : i32
    %c0_i32_0 = arith.constant 0 : i32
    %c0_i32_1 = arith.constant 0 : i32
    return %c0_i32, %c0_i32_0 : i32, i32
  }
  func.func @transform_7(%arg0: i32) -> (i32, i32) {
    %c0_i32 = arith.constant 0 : i32
    %c0_i32_0 = arith.constant 0 : i32
    %c0_i32_1 = arith.constant 0 : i32
    return %c0_i32, %c0_i32_0 : i32, i32
  }
  func.func @transform_8(%arg0: i32) -> (i32, i32) {
    %c0_i32 = arith.constant 0 : i32
    %c0_i32_0 = arith.constant 0 : i32
    %c0_i32_1 = arith.constant 0 : i32
    return %c0_i32, %c0_i32_0 : i32, i32
  }
  func.func @transform_9(%arg0: i32) -> (i32, i32) {
    %c0_i32 = arith.constant 0 : i32
    %c0_i32_0 = arith.constant 0 : i32
    %c0_i32_1 = arith.constant 0 : i32
    return %c0_i32, %c0_i32_0 : i32, i32
  }
  func.func @transform_10(%arg0: i32) -> (i32, i32) {
    %c0_i32 = arith.constant 0 : i32
    %c0_i32_0 = arith.constant 0 : i32
    %c0_i32_1 = arith.constant 0 : i32
    return %c0_i32, %c0_i32_0 : i32, i32
  }
  func.func @transform_11(%arg0: i32) -> (i32, i32) {
    %c0_i32 = arith.constant 0 : i32
    %c0_i32_0 = arith.constant 0 : i32
    %c0_i32_1 = arith.constant 0 : i32
    return %c0_i32, %c0_i32_0 : i32, i32
  }
  func.func @transform_12(%arg0: i32) -> (i32, i32) {
    %c0_i32 = arith.constant 0 : i32
    %c0_i32_0 = arith.constant 0 : i32
    %c0_i32_1 = arith.constant 0 : i32
    return %c0_i32, %c0_i32_0 : i32, i32
  }
  func.func @transform_13(%arg0: i32) -> (i32, i32) {
    %c0_i32 = arith.constant 0 : i32
    %c0_i32_0 = arith.constant 0 : i32
    %c0_i32_1 = arith.constant 0 : i32
    return %c0_i32, %c0_i32_0 : i32, i32
  }
  func.func @transform_14(%arg0: i32) -> (i32, i32) {
    %c0_i32 = arith.constant 0 : i32
    %c0_i32_0 = arith.constant 0 : i32
    %c0_i32_1 = arith.constant 0 : i32
    return %c0_i32, %c0_i32_0 : i32, i32
  }
  func.func @transform_15(%arg0: i32) -> (i32, i32) {
    %c0_i32 = arith.constant 0 : i32
    %c0_i32_0 = arith.constant 0 : i32
    %c0_i32_1 = arith.constant 0 : i32
    return %c0_i32, %c0_i32_0 : i32, i32
  }
  func.func @transform_16(%arg0: i32) -> (i32, i32) {
    %c0_i32 = arith.constant 0 : i32
    %c0_i32_0 = arith.constant 0 : i32
    %c0_i32_1 = arith.constant 0 : i32
    return %c0_i32, %c0_i32_0 : i32, i32
  }
  func.func @transform_17(%arg0: i32) -> (i32, i32) {
    %c0_i32 = arith.constant 0 : i32
    %c0_i32_0 = arith.constant 0 : i32
    %c0_i32_1 = arith.constant 0 : i32
    return %c0_i32, %c0_i32_0 : i32, i32
  }
  func.func @transform_18(%arg0: i32) -> (i32, i32) {
    %c0_i32 = arith.constant 0 : i32
    %c0_i32_0 = arith.constant 0 : i32
    %c0_i32_1 = arith.constant 0 : i32
    return %c0_i32, %c0_i32_0 : i32, i32
  }
  func.func @transform_19(%arg0: i32) -> (i32, i32, i32) {
    %c0_i32 = arith.constant 0 : i32
    %c0_i32_0 = arith.constant 0 : i32
    %c0_i32_1 = arith.constant 0 : i32
    return %arg0, %c0_i32, %c0_i32_0 : i32, i32, i32
  }
}

</mosaic_0001>

<bundles_post_ra>
// kernel: adapted_transformer_encoder.5
= control target key start
LH: loop header
LB: loop body
LE: loop exit
PB: predicated region body
PF: predicated region fallthrough
CT: control target
= control target key end

     0   :  { %s3179_s0 = inlined_call_operand.vmem [shape: f32[2,8,32], index: 0, kind: input, shape index: {}]   ;;  %s3180_s1 = inlined_call_operand.vmem [shape: f32[2,1,8], index: 1, kind: input, shape index: {}]   ;;  %s3181_s2 = inlined_call_operand.vmem [shape: f32[2,8,8], index: 2, kind: input, shape index: {}]   ;;  %s3182_s3 = inlined_call_operand.vmem [shape: f32[2,8,32], index: 3, kind: input, shape index: {}]   ;;  %s3183_s4 = inlined_call_operand.vmem [shape: f32[32,96], index: 4, kind: input, shape index: {}]   ;;  %s3184_s5 = inlined_call_operand.vmem [shape: f32[1,96], index: 5, kind: input, shape index: {}]   ;;  %s3185_s6 = inlined_call_operand.vmem [shape: f32[32,32], index: 6, kind: input, shape index: {}]   ;;  %s3186_s7 = inlined_call_operand.vmem [shape: f32[1,32], index: 7, kind: input, shape index: {}]   ;;  %s3187_s8 = inlined_call_operand.vmem [shape: f32[1,32], index: 8, kind: input, shape index: {}]   ;;  %s3188_s9 = inlined_call_operand.vmem [shape: f32[1,32], index: 9, kind: input, shape index: {}]   ;;  %s3189_s10 = inlined_call_operand.vmem [shape: f32[32,64], index: 10, kind: input, shape index: {}]   ;;  %s3190_s11 = inlined_call_operand.vmem [shape: f32[1,64], index: 11, kind: input, shape index: {}]   ;;  %s3191_s12 = inlined_call_operand.vmem [shape: f32[64,32], index: 12, kind: input, shape index: {}]   ;;  %s3192_s13 = inlined_call_operand.vmem [shape: f32[1,32], index: 13, kind: input, shape index: {}]   ;;  %s3193_s14 = inlined_call_operand.vmem [shape: f32[1,32], index: 14, kind: input, shape index: {}]   ;;  %s3194_s15 = inlined_call_operand.vmem [shape: f32[1,32], index: 15, kind: input, shape index: {}]   ;;  %s3195_s16 = inlined_call_operand.vmem [shape: f32[32,32], index: 16, kind: input, shape index: {}]   ;;  %s3196_s17 = inlined_call_operand.vmem [shape: f32[32,32], index: 17, kind: input, shape index: {}]   ;;  %s3197_s18 = inlined_call_operand.vmem [shape: f32[1,32], index: 18, kind: input, shape index: {}]   ;;  %s3198_s19 = inlined_call_operand.hbm [shape: f32[2,8,32], index: 19, kind: output, shape index: {}]  }
   0x1   :  { %3200 = sst [smem:[#allocation7_spill]] %s3179_s0 }
   0x2   :  { %3201 = sst [smem:[#allocation8_spill]] %s3180_s1 }
   0x3   :  { %3202 = sst [smem:[#allocation9_spill]] %s3181_s2 }
   0x4   :  { %3203 = sst [smem:[#allocation10_spill]] %s3182_s3 }
   0x5   :  { %3204 = sst [smem:[#allocation11_spill]] %s3183_s4 }
   0x6   :  { %3205 = sst [smem:[#allocation12_spill]] %s3184_s5 }
   0x7   :  { %3206 = sst [smem:[#allocation13_spill]] %s3185_s6 }
   0x8   :  { %24 = vsyncpa [#allocation3], 0 }
   0x9   :  { %26 = vsyncpa [#allocation3 + $0x1], 0  ;;  %s2823_s0 = smov 0   ;;  %s2825_s30 = smov 0  }
   0xa   :  { %s2827_s20 = smov 0   ;;  %s2829_s21 = smov 0  }
   0xb LB: > { %3207 = sst [smem:[#allocation5_spill]] %s2701_s20  ;;  %s2844_s1 = sadd.s32 4294967295, %s2705_s21   ;;  %s2705_s21 = sphi %s2829_s21, %s3223_s21   ;;  %s2701_s20 = sphi %s2827_s20, %s3222_s20   ;;  %s2697_s30 = sphi %s2825_s30, %s3221_s30   ;;  %s2693_s0 = sphi %s2823_s0, %s3220_s0  }
   0xc   : > { %s2303_s22 = sadd.s32 4294967294, %s2705_s21   ;;  %s2848_s2 = sadd.s32 1, %s2705_s21  }
   0xd   : > { %s458_s23 = sadd.s32 1, %s2701_s20  ;;  %s455_s24 = ssub.s32 %s2705_s21, %s2848_s2 }
   0xe   : > { %p468_p0 = scmp.ne.s32.totalorder %s2701_s20, %s2697_s30  ;;  %p456_p1 = scmp.eq.s32.totalorder %s455_s24, 0 }
   0xf   : > { %p469_p2 = scmp.eq.s32.totalorder %s2844_s1, 1  ;;  %p474_p3 = scmp.ne.s32.totalorder %s2697_s30, %s2693_s0 }
  0x10   : > { %p475_p4 = scmp.eq.s32.totalorder %s2303_s22, 1  ;;  %p2306_p7 = scmp.ge.s32.totalorder %s2705_s21, 1 }
  0x11   : > { %s2859_s25 = scalar_select %p456_p1, %s2701_s20, %s458_s23  }
  0x12   : > { %p2861_p5 = por %p469_p2, %p468_p0  ;;  %p2865_p6 = por %p475_p4, %p474_p3 }
  0x13   : > { %3208 = sst [smem:[#allocation6_spill]] %s2859_s25  ;;  %p565_p8 = scmp.lt.s32.totalorder %s2705_s21, 3 }
  0x15   : > { %p566_p9 = pnand %p2306_p7, %p565_p8 }
  0x16   : > { %s3211_s4 = sld [smem:[#allocation11_spill]] (!%p566_p9)  ;;  %v2707_v3 = vmov (!%p566_p9), 0.0|0.0   ;;  %vm2708_vm0 = vmmov (!%p566_p9), 0   ;;  %v2709_v6 = vmov (!%p566_p9), 0.0   ;;  %p631_p10 = scmp.lt.s32.totalorder (!%p566_p9), %s2844_s1, 1  ;;  %vm659_vm1 = vcmask (!%p566_p9), 261120  }
  0x17   : > { %569 = sbr.rel (%p566_p9) target bundleno = 3923 (0xf53), region = 96  ;;  %2529 = vmatprep.subr.bf16.mxu0 (!%p566_p9), %v2707_v3  ;;  %2409 = vmatprep.mubr.msk.f32.mxu0 (!%p566_p9), %vm2708_vm0, %v2709_v6  ;;  %s3212_s29 = sld [smem:[#allocation7_spill]] (!%p566_p9)  ;;  %vm736_vm2 = vcmask (!%p566_p9), 64512   ;;  %v813_v16 = vlaneseq (!%p566_p9)  ;;  %v2713_v20 = vmov (!%p566_p9), 0   ;;  %vm1848_vm7 = vcmask (!%p566_p9), 523264  }
  0x18   : > { %2412 = vmatprep.subr.mxu1 (!%p566_p9), %v2709_v6  ;;  %2414 = vmatprep.mubr.msk.f32.mxu1 (!%p566_p9), %vm2708_vm0, %v2709_v6  ;;  %s3213_s5 = sld [smem:[#allocation12_spill]] (!%p566_p9)  ;;  %s2710_s25 = smov (!%p566_p9), 120  }
  0x19   : > { %s2711_s28 = smov (!%p566_p9), 96   ;;  %s3214_s24 = sld [smem:[#allocation8_spill]] (!%p566_p9)  ;;  %v814_v18 = vshrl.u32 (!%p566_p9), %v813_v16, 7 }
  0x1a   : > { %s3215_s6 = sld [smem:[#allocation13_spill]] (!%p566_p9) }
  0x1b   : > { %v815_v19 = vsub.s32 (!%p566_p9), 0, %v814_v18 }
  0x1c   : > { %v648_v0 = vld [vmem:[%s3211_s4] sm:$0xff] (!%p566_p9)  ;;  %v649_v1 = vld [vmem:[%s3211_s4 + $0x8] sm:$0xff] (!%p566_p9)  ;;  %v650_v2 = vld [vmem:[%s3211_s4 + $0x10] sm:$0xff] (!%p566_p9) }
  0x1d   : > { %v2530_v4 = vpack.c.bf16 (!%p566_p9), %v649_v1, %v648_v0  ;;  %v651_v5 = vld [vmem:[%s3211_s4 + $0x18] sm:$0xff] (!%p566_p9) }
  0x1e   : > { %v2533_v7 = vpack.c.bf16 %v651_v5, %v650_v2  ;;  %s2891_s27 = scalar_select %p631_p10, %s2844_s1, 1  ;;  %v2311_v9 = vld [vmem:[%s3213_s5] ss:$0 sm:$0xff] }
  0x1f   : > { %2531 = vmatpush3.bf16.msra.mxu0 %v2530_v4 }
  0x20   : > { %2532 = vmatprep.subr.bf16.mxu0 %v2707_v3  ;;  %s2895_s20 = sshll.u32 %s2891_s27, 3  ;;  %v1073_v41 = vld [vmem:[%s3215_s6 + $0x8] sm:$0xff]  ;;  %v906_v50 = vld [vmem:[%s3215_s6] sm:$0xff] }
  0x21   : > { %s634_s22 = scalar_lea.vmem %s3212_s29, %s2895_s20  ;;  %s2712_s29 = smov 88  }
  0x22   : > { %v2901_v8 = vld [vmem:[%s634_s22] sm:$0xff]  ;;  %s2717_s22 = smov 112  }
  0x23   : > { %2534 = vmatpush3.bf16.msra.mxu0 %v2533_v7 }
  0x24   : > { %2422 = vmatprep.subr.mxu0 %v2709_v6 }
  0x26   : > { %2410 = vmatmul.mubr.msk.f32.vlgmr.msra.gmra.mrb[0].mxu0 %vm659_vm1, %v2901_v8 }
  0x27   : > { %2424 = vmatprep.mubr.msk.f32.mxu0 %vm2708_vm0, %v2709_v6 }
  0xf9   : > { %v729_v10 = vpop.f32.mrb[0].mxu0 }
  0xfa   : > { %v2911_v11 = vadd.f32 %v2311_v9, %v729_v10  ;;  %v2411_v12 = vpop.f32.mrb[1].mxu0 }
  0xfc   : > { %907 = vrot.lane.b32.xlu1 %v2911_v11, %s2710_s25  ;;  %734 = vrot.lane.b32.xlu0 %v2911_v11, %s2711_s28  ;;  %s637_s25 = scalar_lea.vmem %s3214_s24, %s2891_s27  ;;  %s2714_s27 = smov 56  }
  0xfd   : > { %v647_v17 = vld [vmem:[%s637_s25] sm:$0x1]  ;;  %s2715_s28 = smov 64   ;;  %s2721_s25 = smov 40  }
  0xfe   : > { %vm811_vm3 = vcmp.eq.f32.partialorder %v647_v17, 0.0  ;;  %v1386_v17 = vld [vmem:[%s3215_s6 + $0x10] sm:$0xff]  ;;  %s3217_s24 = sld [smem:[#allocation9_spill]] }
  0xff   : > { %v812_v21 = vsel %vm811_vm3, 1, %v2713_v20 }
 0x100   : > { %909 = vrot.lane.b32.xlu0 %v2911_v11, %s2712_s29  ;;  %v2931_v22 = vrot.slane %v812_v21, %v815_v19  ;;  %s2716_s29 = smov 80  }
 0x102   : > { %vm817_vm4 = vcmp.eq.s32.totalorder %v2931_v22, 1  ;;  %v1627_v22 = vld [vmem:[%s3215_s6 + $0x18] sm:$0xff] }
 0x104   : > { %s641_s6 = scalar_lea.vmem %s3217_s24, %s2895_s20 }
 0x16e   : > { %v735_v13 = vpop.permute.xlu0 %734  ;;  %v908_v15 = vpop.permute.xlu1 %907 }
 0x16f   : > { %2413 = vmatpush3.xpose.msk.msra.mxu1 %vm736_vm2, %v735_v13 }
 0x170   : > { %2417 = vmatprep.subr.mxu1 %v2709_v6 }
 0x172   : > { %2415 = vmatmul.mubr.msk.f32.vlgmr.msra.gmra.mrb[0].mxu1 %vm736_vm2, %v2911_v11  ;;  %v910_v14 = vpop.permute.xlu0 %909 }
 0x173   : > { %2423 = vmatpush3.xpose.msk.msra.mxu0 %vm736_vm2, %v910_v14  ;;  %2419 = vmatprep.mubr.msk.f32.mxu1 %vm2708_vm0, %v2709_v6 }
 0x174   : > { %2432 = vmatprep.subr.mxu0 %v2709_v6 }
 0x176   : > { %2425 = vmatmul.mubr.msk.f32.vlgmr.msra.gmra.mrb[2].mxu0 %vm736_vm2, %v908_v15 }
 0x177   : > { %2434 = vmatprep.mubr.msk.f32.mxu0 %vm2708_vm0, %v2709_v6  ;;  %2433 = vmatpush3.msra.mxu0 %v1073_v41 }
 0x178   : > { %2442 = vmatprep.subr.mxu0 %v2709_v6 }
 0x245   : > { %v807_v23 = vpop.f32.mrb[0].mxu1 }
 0x246   : > { %v818_v24 = vsel %vm817_vm4, -inf, %v807_v23  ;;  %v2416_v25 = vpop.f32.mrb[1].mxu1 }
 0x247   : > { %v819_v26 = vsel %vm736_vm2, %v818_v24, -inf }
 0x248   : > { %820 = vmax.xlane.f32.xlu1 %v819_v26 }
 0x249   : > { %v981_v27 = vpop.f32.mrb[2].mxu0 }
 0x24a   : > { %v985_v28 = vsel %vm817_vm4, -inf, %v981_v27  ;;  %v2426_v29 = vpop.f32.mrb[3].mxu0 }
 0x24b   : > { %v986_v30 = vsel %vm736_vm2, %v985_v28, -inf }
 0x24c   : > { %987 = vmax.xlane.f32.xlu0 %v986_v30 }
 0x2d5   : > { %v821_v31 = vpop.xlane.xlu1 %820 }
 0x2d6   : > { %v822_v32 = vsub.f32 %v818_v24, %v821_v31 }
 0x2d8   : > { %v823_v33 = vmul.f32 1.442695, %v822_v32 }
 0x2d9   : > { %v988_v34 = vpop.xlane.xlu0 %987 }
 0x2da   : > { %2619 = vpow2.f32 %v823_v33  ;;  %v989_v35 = vsub.f32 %v985_v28, %v988_v34 }
 0x2dc   : > { %v990_v36 = vmul.f32 1.442695, %v989_v35 }
 0x2de   : > { %2621 = vpow2.f32 %v990_v36 }
 0x2e4   : > { %v2620_v37 = vpop.eup %2619 }
 0x2e5   : > { %v825_v38 = vsel %vm736_vm2, %v2620_v37, 0.0 }
 0x2e6   : > { %826 = vadd.xlane.f32.xlu0 %v825_v38 }
 0x2e8   : > { %v2622_v39 = vpop.eup %2621 }
 0x2e9   : > { %v992_v40 = vsel %vm736_vm2, %v2622_v39, 0.0 }
 0x2ea   : > { %993 = vadd.xlane.f32.xlu1 %v992_v40 }
 0x2fb   : > { %997 = vrot.lane.b32.xlu1 %v2911_v11, %s2714_s27  ;;  %s2343_s27 = sshll.u32 %s2844_s1, 7  ;;  %s2722_s1 = smov [#allocation2]  }
 0x2fc   : > { %830 = vrot.lane.b32.xlu0 %v2911_v11, %s2715_s28  ;;  %s2718_s28 = smov 72   ;;  %s3136_s23 = scalar_lea.hbm %s3198_s19, %s2343_s27 }
 0x2ff   : > { %1222 = vrot.lane.b32.xlu1 %v2911_v11, %s2716_s29  ;;  %s2719_s29 = smov 104  }
 0x300   : > { %1220 = vrot.lane.b32.xlu0 %v2911_v11, %s2717_s22  ;;  %s2720_s22 = smov 48  }
 0x373   : > { %v827_v42 = vpop.xlane.xlu0 %826 }
 0x374   : > { %2623 = vrcp.f32 %v827_v42 }
 0x377   : > { %v994_v43 = vpop.xlane.xlu1 %993  ;;  %v831_v44 = vpop.permute.xlu0 %830 }
 0x378   : > { %2625 = vrcp.f32 %v994_v43  ;;  %2418 = vmatpush3.msra.mxu1 %v831_v44 }
 0x379   : > { %2427 = vmatprep.subr.mxu1 %v2709_v6 }
 0x37b   : > { %v998_v47 = vpop.permute.xlu1 %997  ;;  %v1221_v56 = vpop.permute.xlu0 %1220 }
 0x37e   : > { %v2624_v45 = vpop.eup %2623 }
 0x37f   : > { %v829_v46 = vmul.f32 %v2624_v45, %v2620_v37  ;;  %v1223_v54 = vpop.permute.xlu1 %1222 }
 0x381   : > { %2420 = vmatmul.mubr.msk.f32.vlgmr.msra.gmra.mrb[2].mxu1 %vm736_vm2, %v829_v46 }
 0x382   : > { %v2626_v48 = vpop.eup %2625  ;;  %2428 = vmatpush3.msra.mxu1 %v998_v47  ;;  %2429 = vmatprep.mubr.msk.f32.mxu1 %vm2708_vm0, %v2709_v6 }
 0x383   : > { %v996_v49 = vmul.f32 %v2626_v48, %v2622_v39  ;;  %2437 = vmatprep.subr.mxu1 %v2709_v6  ;;  %v2329_v39 = vld [vmem:[%s3186_s7] ss:$0 sm:$0xff] }
 0x385   : > { %2430 = vmatmul.mubr.msk.f32.vlgmr.msra.gmra.mrb[4].mxu1 %vm736_vm2, %v996_v49 }
 0x386   : > { %2439 = vmatprep.mubr.msk.f32.mxu1 %vm2708_vm0, %v2709_v6  ;;  %2438 = vmatpush3.msra.mxu1 %v906_v50  ;;  %v1748_v50 = vld [vmem:[%s3189_s10] sm:$0xff] }
 0x387   : > { %2447 = vmatprep.subr.mxu1 %v2709_v6 }
 0x454   : > { %v902_v51 = vpop.f32.mrb[2].mxu1 }
 0x455   : > { %v2421_v52 = vpop.f32.mrb[3].mxu1  ;;  %2440 = vmatmul.mubr.msk.f32.vlgmr.msra.gmra.mrb[6].mxu1 %vm736_vm2, %v902_v51  ;;  %v1749_v51 = vld [vmem:[%s3189_s10 + $0x8] sm:$0xff] }
 0x456   : > { %2449 = vmatprep.mubr.msk.f32.mxu1 %vm2708_vm0, %v2709_v6  ;;  %v2536_v52 = vpack.c.bf16 %v1749_v51, %v1748_v50 }
 0x458   : > { %v1069_v53 = vpop.f32.mrb[4].mxu1 }
 0x459   : > { %v2431_v55 = vpop.f32.mrb[5].mxu1  ;;  %2435 = vmatmul.mubr.msk.f32.vlgmr.msra.gmra.mrb[4].mxu0 %vm736_vm2, %v1069_v53  ;;  %v1751_v53 = vld [vmem:[%s3189_s10 + $0x18] sm:$0xff] }
 0x45a   : > { %2443 = vmatpush3.xpose.msk.msra.mxu0 %vm736_vm2, %v1223_v54  ;;  %2444 = vmatprep.mubr.msk.f32.mxu0 %vm2708_vm0, %v2709_v6  ;;  %v1833_v55 = vld [vmem:[%s3191_s12] sm:$0xff] }
 0x45b   : > { %2452 = vmatprep.subr.mxu0 %v2709_v6 }
 0x45d   : > { %2445 = vmatmul.mubr.msk.f32.vlgmr.msra.gmra.mrb[6].mxu0 %vm736_vm2, %v1221_v56  ;;  %v1834_v56 = vld [vmem:[%s3191_s12 + $0x8] sm:$0xff] }
 0x45e   : > { %2454 = vmatprep.mubr.msk.f32.mxu0 %vm2708_vm0, %v2709_v6  ;;  %2453 = vmatpush3.msra.mxu0 %v1386_v17 }
 0x45f   : > { %2462 = vmatprep.subr.mxu0 %v2709_v6 }
 0x528   : > { %v1216_v57 = vpop.f32.mrb[6].mxu1 }
 0x529   : > { %v2441_v58 = vpop.f32.mrb[7].mxu1 }
 0x52a   : > { %v2542_v58 = vpack.c.bf16 %v1834_v56, %v1833_v55 }
 0x52c   : > { %v1143_v59 = vpop.f32.mrb[4].mxu0 }
 0x52d   : > { %v2973_v60 = vadd.f32 %v1216_v57, %v1143_v59  ;;  %v2436_v61 = vpop.f32.mrb[5].mxu0  ;;  %v1835_v57 = vld [vmem:[%s3191_s12 + $0x10] sm:$0xff]  ;;  %v1836_v59 = vld [vmem:[%s3191_s12 + $0x18] sm:$0xff] }
 0x52e   : > { %v1837_v61 = vld [vmem:[%s3191_s12 + $0x20] sm:$0xff] }
 0x530   : > { %v1294_v62 = vpop.f32.mrb[6].mxu0 }
 0x531   : > { %v1298_v63 = vsel %vm817_vm4, -inf, %v1294_v62  ;;  %v2446_v0 = vpop.f32.mrb[7].mxu0  ;;  %v1838_v62 = vld [vmem:[%s3191_s12 + $0x28] sm:$0xff] }
 0x532   : > { %v1299_v1 = vsel %vm736_vm2, %v1298_v63, -inf }
 0x533   : > { %1300 = vmax.xlane.f32.xlu1 %v1299_v1 }
 0x544   : > { %1463 = vrot.lane.b32.xlu1 %v2911_v11, %s2718_s28 }
 0x548   : > { %1461 = vrot.lane.b32.xlu1 %v2911_v11, %s2719_s29  ;;  %s3216_s29 = sld [smem:[#allocation10_spill]] }
 0x54e   : > { %s645_s4 = scalar_lea.vmem %s3216_s29, %s2895_s20 }
 0x5c0   : > { %v1301_v2 = vpop.xlane.xlu1 %1300 }
 0x5c1   : > { %v1302_v4 = vsub.f32 %v1298_v63, %v1301_v2  ;;  %v2548_v63 = vpack.c.bf16 %v1838_v62, %v1837_v61 }
 0x5c3   : > { %v1303_v5 = vmul.f32 1.442695, %v1302_v4 }
 0x5c4   : > { %v1464_v14 = vpop.permute.xlu1 %1463 }
 0x5c5   : > { %2627 = vpow2.f32 %v1303_v5 }
 0x5c8   : > { %v1462_v16 = vpop.permute.xlu1 %1461 }
 0x5cf   : > { %v2628_v7 = vpop.eup %2627 }
 0x5d0   : > { %v1305_v9 = vsel %vm736_vm2, %v2628_v7, 0.0 }
 0x5d1   : > { %1306 = vadd.xlane.f32.xlu0 %v1305_v9 }
 0x5e7   : > { %1310 = vrot.lane.b32.xlu0 %v2911_v11, %s2720_s22 }
 0x65e   : > { %v1307_v10 = vpop.xlane.xlu0 %1306 }
 0x65f   : > { %2629 = vrcp.f32 %v1307_v10 }
 0x662   : > { %v1311_v12 = vpop.permute.xlu0 %1310 }
 0x663   : > { %2448 = vmatpush3.msra.mxu1 %v1311_v12 }
 0x664   : > { %2457 = vmatprep.subr.mxu1 %v2709_v6 }
 0x669   : > { %v2630_v13 = vpop.eup %2629 }
 0x66a   : > { %v1309_v15 = vmul.f32 %v2630_v13, %v2628_v7  ;;  %v2330_v13 = vld [vmem:[%s3187_s8] ss:$0 sm:$0xff] }
 0x66c   : > { %2450 = vmatmul.mubr.msk.f32.vlgmr.msra.gmra.mrb[8].mxu1 %vm736_vm2, %v1309_v15  ;;  %v2331_v15 = vld [vmem:[%s3188_s9] ss:$0 sm:$0xff] }
 0x66d   : > { %2458 = vmatpush3.xpose.msk.msra.mxu1 %vm736_vm2, %v1464_v14  ;;  %2459 = vmatprep.mubr.msk.f32.mxu1 %vm2708_vm0, %v2709_v6 }
 0x66e   : > { %2467 = vmatprep.subr.mxu1 %v2709_v6 }
 0x670   : > { %2460 = vmatmul.mubr.msk.f32.vlgmr.msra.gmra.mrb[10].mxu1 %vm736_vm2, %v1462_v16 }
 0x671   : > { %2469 = vmatprep.mubr.msk.f32.mxu1 %vm2708_vm0, %v2709_v6  ;;  %2468 = vmatpush3.msra.mxu1 %v1627_v22 }
 0x672   : > { %2541 = vmatprep.subr.bf16.mxu1 %v2707_v3 }
 0x73f   : > { %v1382_v18 = vpop.f32.mrb[8].mxu1 }
 0x740   : > { %v2451_v19 = vpop.f32.mrb[9].mxu1  ;;  %2455 = vmatmul.mubr.msk.f32.vlgmr.msra.gmra.mrb[8].mxu0 %vm736_vm2, %v1382_v18  ;;  %v1839_v18 = vld [vmem:[%s3191_s12 + $0x30] sm:$0xff] }
 0x741   : > { %2464 = vmatprep.mubr.msk.f32.mxu0 %vm2708_vm0, %v2709_v6  ;;  %v1840_v19 = vld [vmem:[%s3191_s12 + $0x38] sm:$0xff] }
 0x743   : > { %v1535_v20 = vpop.f32.mrb[10].mxu1 }
 0x744   : > { %v1539_v21 = vsel %vm817_vm4, -inf, %v1535_v20  ;;  %v2461_v23 = vpop.f32.mrb[11].mxu1  ;;  %v2551_v20 = vpack.c.bf16 %v1840_v19, %v1839_v18 }
 0x745   : > { %v1540_v24 = vsel %vm736_vm2, %v1539_v21, -inf }
 0x746   : > { %1541 = vmax.xlane.f32.xlu0 %v1540_v24 }
 0x75c   : > { %1551 = vrot.lane.b32.xlu0 %v2911_v11, %s2721_s25  ;;  %s628_s25 = sand.u32 1, %s2697_s30  }
 0x75d   : > { %s2307_s5 = sshll.u32 %s628_s25, 3  ;;  %s2198_s24 = scalar_lea.sflag [#allocation3], %s628_s25 }
 0x75e   : > { %s630_s28 = scalar_lea.vmem [#allocation2], %s2307_s5  ;;  %s2647_s5 = sshll.u32 %s2722_s1, 4  ;;  %s2648_s5 = int_to_ptr.vmem [resolvable:$false] %s2647_s5 }
 0x75f   : > { %s2211_s29 = sshll.u32 %s630_s28, 4  ;;  %s2649_s20 = scalar_lea.vmem %s2648_s5, 256  ;;  %s3138_s29 = int_to_ptr.vmem [resolvable:$true] %s2211_s29 }
 0x760   : > { %p2650_p0 = scmp.lt.s32.totalorder %s3138_s29, %s2648_s5 }
 0x7d3   : > { %v1542_v25 = vpop.xlane.xlu0 %1541 }
 0x7d4   : > { %v1543_v26 = vsub.f32 %v1539_v21, %v1542_v25  ;;  %v2332_v21 = vld [vmem:[%s3190_s11] ss:$0 sm:$0xff] }
 0x7d6   : > { %v1544_v27 = vmul.f32 1.442695, %v1543_v26 }
 0x7d7   : > { %v1552_v28 = vpop.permute.xlu0 %1551 }
 0x7d8   : > { %2631 = vpow2.f32 %v1544_v27  ;;  %2463 = vmatpush3.msra.mxu0 %v1552_v28  ;;  %v1960_v27 = vld [vmem:[%s645_s4] sm:$0xff] }
 0x7d9   : > { %2535 = vmatprep.subr.bf16.mxu0 %v2707_v3  ;;  %v1959_v28 = vld [vmem:[%s641_s6] sm:$0xff]  ;;  %s2643_s6 = scalar_lea.vmem %s3138_s29, 128 }
 0x7da   : > { %p2644_p11 = scmp.ne.s32.totalorder %s3138_s29, %s2643_s6  ;;  %p2651_p1 = scmp.lt.s32.totalorder %s2649_s20, %s2643_s6 }
 0x7dc   : > { %p2645_p12 = pnand %p2644_p11, %p2861_p5  ;;  %p2652_p2 = por %p2651_p1, %p2650_p0 }
 0x7de   : > { %p2646_p13 = pneg %p2645_p12 }
 0x7e0   : > { %p2653_p3 = pnand %p2652_p2, %p2646_p13 }
 0x7e2   : > { %v2632_v29 = vpop.eup %2631 }
 0x7e3   : > { %v1546_v30 = vsel %vm736_vm2, %v2632_v29, 0.0 }
 0x7e4   : > { %1547 = vadd.xlane.f32.xlu1 %v1546_v30 }
 0x813   : > { %v1456_v11 = vpop.f32.mrb[8].mxu0 }
 0x814   : > { %v1460_v31 = vadd.f32 %v1456_v11, %v2973_v60  ;;  %v2456_v32 = vpop.f32.mrb[9].mxu0  ;;  %v2545_v60 = vpack.c.bf16 %v1836_v59, %v1835_v57 }
 0x871   : > { %v1548_v33 = vpop.xlane.xlu1 %1547 }
 0x872   : > { %2633 = vrcp.f32 %v1548_v33 }
 0x87c   : > { %v2634_v34 = vpop.eup %2633 }
 0x87d   : > { %v1550_v35 = vmul.f32 %v2634_v34, %v2632_v29  ;;  %v2334_v29 = vld [vmem:[%s3192_s13] ss:$0 sm:$0xff] }
 0x87f   : > { %2465 = vmatmul.mubr.msk.f32.vlgmr.msra.gmra.mrb[10].mxu0 %vm736_vm2, %v1550_v35 }
 0x880   : > { %2480 = vmatprep.mubr.msk.f32.mxu0 %vm2708_vm0, %v2709_v6  ;;  %2537 = vmatpush3.bf16.msra.mxu0 %v2536_v52 }
 0x881   : > { %2538 = vmatprep.subr.bf16.mxu0 %v2707_v3 }
 0x952   : > { %v1623_v36 = vpop.f32.mrb[10].mxu0 }
 0x953   : > { %v2466_v37 = vpop.f32.mrb[11].mxu0  ;;  %2470 = vmatmul.mubr.msk.f32.vlgmr.msra.gmra.mrb[12].mxu1 %vm736_vm2, %v1623_v36 }
 0x954   : > { %2499 = vmatprep.mubr.msk.f32.mxu1 %vm2708_vm0, %v2709_v6  ;;  %2543 = vmatpush3.bf16.msra.mxu1 %v2542_v58 }
 0x955   : > { %2544 = vmatprep.subr.bf16.mxu1 %v2707_v3 }
 0x958   : > { %2546 = vmatpush3.bf16.msra.mxu1 %v2545_v60  ;;  %v2337_v60 = vld [vmem:[%s3194_s15] ss:$0 sm:$0xff] }
 0x959   : > { %2547 = vmatprep.subr.bf16.mxu1 %v2707_v3 }
 0x95c   : > { %2549 = vmatpush3.bf16.msra.mxu1 %v2548_v63 }
 0x95d   : > { %2550 = vmatprep.subr.bf16.mxu1 %v2707_v3 }
 0x960   : > { %2552 = vmatpush3.bf16.msra.mxu1 %v2551_v20 }
 0x961   : > { %2559 = vmatprep.subr.bf16.mxu1 %v2707_v3 }
 0xa26   : > { %v1697_v38 = vpop.f32.mrb[12].mxu1 }
 0xa27   : > { %v1701_v40 = vadd.f32 %v1697_v38, %v1460_v31  ;;  %v2471_v41 = vpop.f32.mrb[13].mxu1  ;;  %v2039_v38 = vld [vmem:[%s3196_s17 + $0x8] sm:$0xff] }
 0xa29   : > { %v1709_v42 = vadd.f32 %v2329_v39, %v1701_v40  ;;  %v2034_v39 = vld [vmem:[%s3195_s16] sm:$0xff] }
 0xa2b   : > { %v1710_v43 = vadd.f32 %v1709_v42, %v2901_v8  ;;  %v1750_v8 = vld [vmem:[%s3189_s10 + $0x10] sm:$0xff]  ;;  %v2035_v42 = vld [vmem:[%s3195_s16 + $0x8] sm:$0xff] }
 0xa2c   : > { %v2539_v54 = vpack.c.bf16 %v1751_v53, %v1750_v8 }
 0xa2d   : > { %v1713_v44 = vsel %vm659_vm1, %v1710_v43, 0.0 }
 0xa2e   : > { %1714 = vadd.xlane.f32.xlu1 %v1713_v44  ;;  %2540 = vmatpush3.bf16.msra.mxu0 %v2539_v54  ;;  %v2041_v44 = vld [vmem:[%s3196_s17 + $0x18] sm:$0xff] }
 0xa2f   : > { %2502 = vmatprep.subr.mxu0 %v2709_v6 }
 0xabb   : > { %v1715_v45 = vpop.xlane.xlu1 %1714 }
 0xabc   : > { %v1717_v46 = vmul.f32 0.03125, %v1715_v45 }
 0xabe   : > { %v1718_v47 = vsub.f32 %v1710_v43, %v1717_v46  ;;  %v2040_v43 = vld [vmem:[%s3196_s17 + $0x10] sm:$0xff]  ;;  %v2560_v46 = vpack.c.bf16 %v2035_v42, %v2034_v39 }
 0xac0   : > { %v1719_v48 = vmul.f32 %v1718_v47, %v1718_v47 }
 0xac2   : > { %v1720_v49 = vsel %vm659_vm1, %v1719_v48, 0.0  ;;  %v2037_v48 = vld [vmem:[%s3195_s16 + $0x18] sm:$0xff] }
 0xac3   : > { %1721 = vadd.xlane.f32.xlu1 %v1720_v49  ;;  %v2557_v49 = vpack.c.bf16 %v2041_v44, %v2040_v43 }
 0xb50   : > { %v1722_v0 = vpop.xlane.xlu1 %1721 }
 0xb51   : > { %v1723_v1 = vmul.f32 0.03125, %v1722_v0 }
 0xb53   : > { %v1724_v2 = vadd.f32 1e-05, %v1723_v1 }
 0xb55   : > { %2635 = vrsqrt.f32 %v1724_v2  ;;  %vm1727_vm5 = vcmp.eq.f32.partialorder %v1724_v2, inf  ;;  %v1730_v7 = vand.u32 2147483648, %v1724_v2  ;;  %vm1729_vm6 = vcmp.eq.f32.partialorder %v1724_v2, 0.0 }
 0xb5f   : > { %v2636_v4 = vpop.eup %2635 }
 0xb60   : > { %v1726_v5 = vmul.f32 %v2636_v4, %v1724_v2 }
 0xb62   : > { %v1728_v9 = vsel %vm1727_vm5, %v1724_v2, %v1726_v5  ;;  %v2341_v2 = vld [vmem:[%s3197_s18] ss:$0 sm:$0xff] }
 0xb63   : > { %v1731_v10 = vsel %vm1729_vm6, %v1730_v7, %v1728_v9 }
 0xb64   : > { %2637 = vrcp.f32 %v1731_v10 }
 0xb6e   : > { %v2638_v12 = vpop.eup %2637 }
 0xb6f   : > { %v1733_v14 = vmul.f32 %v2638_v12, %v1718_v47  ;;  %v2036_v47 = vld [vmem:[%s3195_s16 + $0x10] sm:$0xff] }
 0xb70   : > { %v2563_v50 = vpack.c.bf16 %v2037_v48, %v2036_v47 }
 0xb71   : > { %v1740_v16 = vmul.f32 %v2330_v13, %v1733_v14 }
 0xb73   : > { %v1747_v17 = vadd.f32 %v2331_v15, %v1740_v16 }
 0xb75   : > { %2481 = vmatmul.mubr.msk.f32.vlgmr.msra.gmra.mrb[12].mxu0 %vm659_vm1, %v1747_v17 }
 0xb76   : > { %2504 = vmatprep.mubr.msk.f32.mxu0 %vm2708_vm0, %v2709_v6  ;;  %2503 = vmatpush3.msra.mxu0 %v1960_v27 }
 0xb77   : > { %2553 = vmatprep.subr.bf16.mxu0 %v2707_v3 }
 0xb79   : > { %2505 = vmatmul.mubr.msk.f32.vlgmr.msra.gmra.mrb[14].mxu0 %vm736_vm2, %v1959_v28 }
 0xb7a   : > { %2515 = vmatprep.mubr.msk.f32.mxu0 %vm2708_vm0, %v2709_v6 }
 0xc48   : > { %v1828_v23 = vpop.f32.mrb[12].mxu0 }
 0xc49   : > { %v1829_v24 = vadd.f32 %v2332_v21, %v1828_v23  ;;  %v2482_v25 = vpop.f32.mrb[13].mxu0 }
 0xc4b   : > { %v1832_v26 = vmax.f32 %v1829_v24, 0.0 }
 0xc4c   : > { %v2030_v40 = vpop.f32.mrb[14].mxu0 }
 0xc4d   : > { %2500 = vmatmul.mubr.msk.f32.vlgmr.msra.gmra.mrb[14].mxu1 %vm1848_vm7, %v1832_v26  ;;  %v2506_v45 = vpop.f32.mrb[15].mxu0 }
 0xc4e   : > { %2526 = vmatprep.mubr.msk.f32.mxu1 %vm2708_vm0, %v2709_v6  ;;  %v2038_v6 = vld [vmem:[%s3196_s17] sm:$0xff]  ;;  %2561 = vmatpush3.bf16.msra.mxu1 %v2560_v46 }
 0xc4f   : > { %v2554_v41 = vpack.c.bf16 %v2039_v38, %v2038_v6  ;;  %2562 = vmatprep.subr.bf16.mxu1 %v2707_v3 }
 0xc51   : > { %2555 = vmatpush3.bf16.msra.mxu0 %v2554_v41 }
 0xc52   : > { %2556 = vmatprep.subr.bf16.mxu0 %v2707_v3  ;;  %2564 = vmatpush3.bf16.msra.mxu1 %v2563_v50  ;;  %v2336_v3 = vld [vmem:[%s3193_s14] ss:$0 sm:$0xff] }
 0xc55   : > { %2558 = vmatpush3.bf16.msra.mxu0 %v2557_v49 }
 0xc58   : > { %2516 = vmatmul.mubr.msk.f32.vlgmr.msra.gmra.mrb[16].mxu0 %vm659_vm1, %v2030_v40 }
 0xd20   : > { %v1918_v30 = vpop.f32.mrb[14].mxu1 }
 0xd21   : > { %v1919_v22 = vadd.f32 %v2334_v29, %v1918_v30  ;;  %v2501_v11 = vpop.f32.mrb[15].mxu1 }
 0xd23   : > { %v1922_v31 = vadd.f32 %v1919_v22, %v1747_v17 }
 0xd25   : > { %v1925_v32 = vsel %vm659_vm1, %v1922_v31, 0.0 }
 0xd26   : > { %1926 = vadd.xlane.f32.xlu1 %v1925_v32 }
 0xd2b   : > { %v2111_v63 = vpop.f32.mrb[16].mxu0 }
 0xd2c   : > { %v2517_v0 = vpop.f32.mrb[17].mxu0 }
 0xdb3   : > { %v1927_v33 = vpop.xlane.xlu1 %1926 }
 0xdb4   : > { %v1928_v34 = vmul.f32 0.03125, %v1927_v33 }
 0xdb6   : > { %v1929_v35 = vsub.f32 %v1922_v31, %v1928_v34 }
 0xdb8   : > { %v1930_v36 = vmul.f32 %v1929_v35, %v1929_v35 }
 0xdba   : > { %v1931_v37 = vsel %vm659_vm1, %v1930_v36, 0.0 }
 0xdbb   : > { %1932 = vadd.xlane.f32.xlu1 %v1931_v37 }
 0xe48   : > { %v1933_v51 = vpop.xlane.xlu1 %1932 }
 0xe49   : > { %v1934_v8 = vmul.f32 0.03125, %v1933_v51 }
 0xe4b   : > { %v1935_v52 = vadd.f32 1e-05, %v1934_v8 }
 0xe4d   : > { %2639 = vrsqrt.f32 %v1935_v52  ;;  %vm1938_vm8 = vcmp.eq.f32.partialorder %v1935_v52, inf  ;;  %v1941_v55 = vand.u32 2147483648, %v1935_v52  ;;  %vm1940_vm9 = vcmp.eq.f32.partialorder %v1935_v52, 0.0 }
 0xe57   : > { %v2640_v53 = vpop.eup %2639 }
 0xe58   : > { %v1937_v54 = vmul.f32 %v2640_v53, %v1935_v52 }
 0xe5a   : > { %v1939_v56 = vsel %vm1938_vm8, %v1935_v52, %v1937_v54 }
 0xe5b   : > { %v1942_v57 = vsel %vm1940_vm9, %v1941_v55, %v1939_v56 }
 0xe5c   : > { %2641 = vrcp.f32 %v1942_v57 }
 0xe66   : > { %v2642_v58 = vpop.eup %2641 }
 0xe67   : > { %v1944_v59 = vmul.f32 %v2642_v58, %v1929_v35 }
 0xe69   : > { %v1951_v61 = vmul.f32 %v2336_v3, %v1944_v59 }
 0xe6b   : > { %v1958_v62 = vadd.f32 %v2337_v60, %v1951_v61 }
 0xe6d   : > { %2527 = vmatmul.mubr.msk.f32.vlgmr.msra.gmra.mrb[16].mxu1 %vm659_vm1, %v1958_v62 }
 0xf40   : > { %v2184_v1 = vpop.f32.mrb[16].mxu1 }
 0xf41   : > { %v2185_v4 = vadd.f32 %v2184_v1, %v2111_v63  ;;  %v2528_v5 = vpop.f32.mrb[17].mxu1 }
 0xf43   : > { %v2195_v7 = vadd.f32 %v2341_v2, %v2185_v4 }
 0xf45   : > { %2196 = vst.msk [vmem:[%s630_s28] sm:$0xff] %vm659_vm1, %v2195_v7 }
 0xf46   : > { %2656 = shalt.err (!%p2653_p3)
}
 0xf47   : > { %s2657_s25 = scalar_lea.hbm %s3136_s23, 128  ;;  %s2661_s4 = scalar_lea.hbm %s3198_s19, 256 }
 0xf48   : > { %p2658_p4 = scmp.ne.s32.totalorder %s3136_s23, %s2657_s25  ;;  %p2662_p9 = scmp.lt.u32.totalorder %s3136_s23, %s3198_s19 }
 0xf49   : > { %p2663_p10 = scmp.lt.u32.totalorder %s2661_s4, %s2657_s25  ;;  %p2665_p12 = scmp.lt.u32.totalorder %s2657_s25, %s3136_s23 }
 0xf4a   : > { %p2659_p7 = pnand %p2658_p4, %p2861_p5 }
 0xf4b   : > { %p2664_p11 = por %p2663_p10, %p2662_p9 }
 0xf4c   : > { %p2660_p8 = pneg %p2659_p7 }
 0xf4d   : > { %p2666_p13 = por %p2665_p12, %p2664_p11 }
 0xf4f   : > { %p2667_p0 = pnand %p2666_p13, %p2660_p8 }
 0xf51   : > { %2670 = shalt.err (!%p2667_p0)
}
 0xf52   : > { %2565 = dma.vmem_to_hbm [thread:$0]  (%p2861_p5), %s3138_s29, 128, %s3136_s23, %s2198_s24  }
 0xf53 PF: > { %p2571_p1 = scmp.ge.s32.totalorder %s2705_s21, 2  ;;  %s2223_s6 = sand.u32 1, %s2693_s0  }
 0xf54   : > { %s2224_s5 = scalar_lea.sflag [#allocation3], %s2223_s6 }
 0xf55   : > { %p2568_p2 = pnand %p2571_p1, %p2865_p6 }
 0xf57   : > { %2688 = dma.done.wait (!%p2568_p2), %s2224_s5, 128  }
 0xf58   : > { %2690 = vsyncadd (!%p2568_p2), %s2224_s5, 4294967168  ;;  %s3218_s20 = sld [smem:[#allocation5_spill]]  ;;  %s3219_s25 = sld [smem:[#allocation6_spill]] }
 0xf59   : > { %p29_p3 = scmp.ge.s32.totalorder %s2848_s2, 4   ;;  %s3220_s0 = smov %s2697_s30 }
 0xf5a   : > { %s3223_s21 = smov %s2848_s2 }
 0xf5b   :  { %31 = sbr.rel (!%p29_p3) target bundleno = 11 (0xb), region = 140 }
 0xf5e   : > { %s3221_s30 = smov %s3218_s20  ;;  %s3222_s20 = smov %s3219_s25 }
 0xf62   :  { %2229 = vsyncpa [#allocation3], 1 }
 0xf63   :  { %2231 = vsyncpa [#allocation3 + $0x1], 1 }

// kernel: adapted_transformer_encoder.4
= control target key start
LH: loop header
LB: loop body
LE: loop exit
PB: predicated region body
PF: predicated region fallthrough
CT: control target
= control target key end

     0   :  { %s2988_s0 = inlined_call_operand.vmem [shape: f32[2,8,32], index: 0, kind: input, shape index: {}]   ;;  %s2989_s1 = inlined_call_operand.vmem [shape: f32[2,1,8], index: 1, kind: input, shape index: {}]   ;;  %s2990_s2 = inlined_call_operand.vmem [shape: f32[2,8,8], index: 2, kind: input, shape index: {}]   ;;  %s2991_s3 = inlined_call_operand.vmem [shape: f32[2,8,32], index: 3, kind: input, shape index: {}]   ;;  %s2992_s4 = inlined_call_operand.vmem [shape: f32[32,96], index: 4, kind: input, shape index: {}]   ;;  %s2993_s5 = inlined_call_operand.vmem [shape: f32[1,96], index: 5, kind: input, shape index: {}]   ;;  %s2994_s6 = inlined_call_operand.vmem [shape: f32[32,32], index: 6, kind: input, shape index: {}]   ;;  %s2995_s7 = inlined_call_operand.vmem [shape: f32[1,32], index: 7, kind: input, shape index: {}]   ;;  %s2996_s8 = inlined_call_operand.vmem [shape: f32[1,32], index: 8, kind: input, shape index: {}]   ;;  %s2997_s9 = inlined_call_operand.vmem [shape: f32[1,32], index: 9, kind: input, shape index: {}]   ;;  %s2998_s10 = inlined_call_operand.vmem [shape: f32[32,64], index: 10, kind: input, shape index: {}]   ;;  %s2999_s11 = inlined_call_operand.vmem [shape: f32[1,64], index: 11, kind: input, shape index: {}]   ;;  %s3000_s12 = inlined_call_operand.vmem [shape: f32[64,32], index: 12, kind: input, shape index: {}]   ;;  %s3001_s13 = inlined_call_operand.vmem [shape: f32[1,32], index: 13, kind: input, shape index: {}]   ;;  %s3002_s14 = inlined_call_operand.vmem [shape: f32[1,32], index: 14, kind: input, shape index: {}]   ;;  %s3003_s15 = inlined_call_operand.vmem [shape: f32[1,32], index: 15, kind: input, shape index: {}]   ;;  %s3004_s16 = inlined_call_operand.vmem [shape: f32[32,32], index: 16, kind: input, shape index: {}]   ;;  %s3005_s17 = inlined_call_operand.vmem [shape: f32[32,32], index: 17, kind: input, shape index: {}]   ;;  %s3006_s18 = inlined_call_operand.vmem [shape: f32[1,32], index: 18, kind: input, shape index: {}]   ;;  %s3007_s19 = inlined_call_operand.vmem [shape: f32[2,8,32], index: 19, kind: output, shape index: {}]  }
   0x1   :  { %3008 = sst [smem:[#allocation2_spill]] %s2988_s0  ;;  %s2714_s0 = smov 0  }
   0x2   :  { %3009 = sst [smem:[#allocation3_spill]] %s2989_s1 }
   0x3   :  { %3010 = sst [smem:[#allocation4_spill]] %s2990_s2 }
   0x4   :  { %3011 = sst [smem:[#allocation5_spill]] %s2991_s3 }
   0x5 LB: > { %s2283_s30 = sadd.s32 4294967295, %s2597_s0   ;;  %p2287_p0 = scmp.ge.s32.totalorder %s2597_s0, 1  ;;  %s2597_s0 = sphi %s2714_s0, %s29_s0  }
   0x6   : > { %p562_p1 = scmp.lt.s32.totalorder %s2597_s0, 3 }
   0x8   : > { %p563_p2 = pnand %p2287_p0, %p562_p1 }
   0x9   : > { %v648_v0 = vld [vmem:[%s2992_s4] sm:$0xff] (!%p563_p2)  ;;  %v649_v1 = vld [vmem:[%s2992_s4 + $0x8] sm:$0xff] (!%p563_p2)  ;;  %v650_v2 = vld [vmem:[%s2992_s4 + $0x10] sm:$0xff] (!%p563_p2)  ;;  %v2599_v3 = vmov (!%p563_p2), 0.0|0.0   ;;  %vm2600_vm0 = vmmov (!%p563_p2), 0   ;;  %v2601_v6 = vmov (!%p563_p2), 0.0   ;;  %v813_v16 = vlaneseq (!%p563_p2) }
   0xa   : > { %566 = sbr.rel (%p563_p2) target bundleno = 3893 (0xf35), region = 96  ;;  %2508 = vmatprep.subr.bf16.mxu0 (!%p563_p2), %v2599_v3  ;;  %v2509_v4 = vpack.c.bf16 (!%p563_p2), %v649_v1, %v648_v0  ;;  %v651_v5 = vld [vmem:[%s2992_s4 + $0x18] sm:$0xff] (!%p563_p2)  ;;  %2388 = vmatprep.mubr.msk.f32.mxu0 (!%p563_p2), %vm2600_vm0, %v2601_v6  ;;  %p627_p3 = scmp.lt.s32.totalorder (!%p563_p2), %s2283_s30, 1  ;;  %vm659_vm1 = vcmask (!%p563_p2), 261120   ;;  %v2292_v9 = vld [vmem:[%s2993_s5] ss:$0 sm:$0xff] (!%p563_p2) }
   0xb   : > { %2391 = vmatprep.subr.mxu1 (!%p563_p2), %v2601_v6  ;;  %2393 = vmatprep.mubr.msk.f32.mxu1 (!%p563_p2), %vm2600_vm0, %v2601_v6  ;;  %v2512_v7 = vpack.c.bf16 (!%p563_p2), %v651_v5, %v650_v2  ;;  %s3012_s28 = sld [smem:[#allocation2_spill]] (!%p563_p2)  ;;  %s2602_s1 = smov (!%p563_p2), 120   ;;  %vm736_vm2 = vcmask (!%p563_p2), 64512   ;;  %v814_v18 = vshrl.u32 (!%p563_p2), %v813_v16, 7  ;;  %v2605_v20 = vmov (!%p563_p2), 0   ;;  %v1073_v41 = vld [vmem:[%s2994_s6 + $0x8] sm:$0xff] (!%p563_p2) }
   0xc   : > { %2510 = vmatpush3.bf16.msra.mxu0 (!%p563_p2), %v2509_v4  ;;  %s2603_s22 = smov (!%p563_p2), 96   ;;  %s2604_s2 = smov (!%p563_p2), 88   ;;  %v906_v50 = vld [vmem:[%s2994_s6] sm:$0xff] (!%p563_p2)  ;;  %vm1848_vm7 = vcmask (!%p563_p2), 523264  }
   0xd   : > { %2511 = vmatprep.subr.bf16.mxu0 (!%p563_p2), %v2599_v3  ;;  %s3013_s25 = sld [smem:[#allocation3_spill]] (!%p563_p2)  ;;  %v815_v19 = vsub.s32 (!%p563_p2), 0, %v814_v18  ;;  %s2607_s27 = smov (!%p563_p2), 64  }
   0xe   : > { %s2611_s23 = smov (!%p563_p2), 104   ;;  %s2612_s24 = smov (!%p563_p2), 48  }
  0x10   : > { %2513 = vmatpush3.bf16.msra.mxu0 (!%p563_p2), %v2512_v7 }
  0x11   : > { %s3017_s30 = smov (!%p627_p3, %s2283_s30), 1  ;;  %2401 = vmatprep.subr.mxu0 %v2601_v6 }
  0x12   : > { %s2744_s3 = sshll.u32 %s3017_s30, 3 }
  0x13   : > { %s630_s29 = scalar_lea.vmem %s3012_s28, %s2744_s3  ;;  %s633_s26 = scalar_lea.vmem %s3013_s25, %s3017_s30 }
  0x14   : > { %v2750_v8 = vld [vmem:[%s630_s29] sm:$0xff]  ;;  %s2606_s30 = smov 56   ;;  %s2608_s28 = smov 80  }
  0x15   : > { %2389 = vmatmul.mubr.msk.f32.vlgmr.msra.gmra.mrb[0].mxu0 %vm659_vm1, %v2750_v8  ;;  %v647_v17 = vld [vmem:[%s633_s26] sm:$0x1]  ;;  %s2609_s29 = smov 112   ;;  %s3014_s25 = sld [smem:[#allocation5_spill]] }
  0x16   : > { %2403 = vmatprep.mubr.msk.f32.mxu0 %vm2600_vm0, %v2601_v6  ;;  %vm811_vm3 = vcmp.eq.f32.partialorder %v647_v17, 0.0  ;;  %v1386_v17 = vld [vmem:[%s2994_s6 + $0x10] sm:$0xff]  ;;  %s645_s20 = scalar_lea.vmem %s3007_s19, %s2744_s3 }
  0x17   : > { %v812_v21 = vsel %vm811_vm3, 1, %v2605_v20 }
  0x18   : > { %v2780_v22 = vrot.slane %v812_v21, %v815_v19 }
  0x1a   : > { %vm817_vm4 = vcmp.eq.s32.totalorder %v2780_v22, 1  ;;  %v1627_v22 = vld [vmem:[%s2994_s6 + $0x18] sm:$0xff] }
  0x1b   : > { %s641_s26 = scalar_lea.vmem %s3014_s25, %s2744_s3 }
  0xe8   : > { %v729_v10 = vpop.f32.mrb[0].mxu0 }
  0xe9   : > { %v2760_v11 = vadd.f32 %v2292_v9, %v729_v10  ;;  %v2390_v12 = vpop.f32.mrb[1].mxu0 }
  0xeb   : > { %907 = vrot.lane.b32.xlu1 %v2760_v11, %s2602_s1  ;;  %734 = vrot.lane.b32.xlu0 %v2760_v11, %s2603_s22 }
  0xef   : > { %909 = vrot.lane.b32.xlu0 %v2760_v11, %s2604_s2  ;;  %s2610_s2 = smov 72  }
 0x15d   : > { %v735_v13 = vpop.permute.xlu0 %734  ;;  %v908_v15 = vpop.permute.xlu1 %907 }
 0x15e   : > { %2392 = vmatpush3.xpose.msk.msra.mxu1 %vm736_vm2, %v735_v13 }
 0x15f   : > { %2396 = vmatprep.subr.mxu1 %v2601_v6 }
 0x161   : > { %2394 = vmatmul.mubr.msk.f32.vlgmr.msra.gmra.mrb[0].mxu1 %vm736_vm2, %v2760_v11  ;;  %v910_v14 = vpop.permute.xlu0 %909 }
 0x162   : > { %2402 = vmatpush3.xpose.msk.msra.mxu0 %vm736_vm2, %v910_v14  ;;  %2398 = vmatprep.mubr.msk.f32.mxu1 %vm2600_vm0, %v2601_v6 }
 0x163   : > { %2411 = vmatprep.subr.mxu0 %v2601_v6 }
 0x165   : > { %2404 = vmatmul.mubr.msk.f32.vlgmr.msra.gmra.mrb[2].mxu0 %vm736_vm2, %v908_v15 }
 0x166   : > { %2413 = vmatprep.mubr.msk.f32.mxu0 %vm2600_vm0, %v2601_v6  ;;  %2412 = vmatpush3.msra.mxu0 %v1073_v41 }
 0x167   : > { %2421 = vmatprep.subr.mxu0 %v2601_v6 }
 0x234   : > { %v807_v23 = vpop.f32.mrb[0].mxu1 }
 0x235   : > { %v818_v24 = vsel %vm817_vm4, -inf, %v807_v23  ;;  %v2395_v25 = vpop.f32.mrb[1].mxu1 }
 0x236   : > { %v819_v26 = vsel %vm736_vm2, %v818_v24, -inf }
 0x237   : > { %820 = vmax.xlane.f32.xlu1 %v819_v26 }
 0x238   : > { %v981_v27 = vpop.f32.mrb[2].mxu0 }
 0x239   : > { %v985_v28 = vsel %vm817_vm4, -inf, %v981_v27  ;;  %v2405_v29 = vpop.f32.mrb[3].mxu0 }
 0x23a   : > { %v986_v30 = vsel %vm736_vm2, %v985_v28, -inf }
 0x23b   : > { %987 = vmax.xlane.f32.xlu0 %v986_v30 }
 0x2c4   : > { %v821_v31 = vpop.xlane.xlu1 %820 }
 0x2c5   : > { %v822_v32 = vsub.f32 %v818_v24, %v821_v31 }
 0x2c7   : > { %v823_v33 = vmul.f32 1.442695, %v822_v32 }
 0x2c8   : > { %v988_v34 = vpop.xlane.xlu0 %987 }
 0x2c9   : > { %2567 = vpow2.f32 %v823_v33  ;;  %v989_v35 = vsub.f32 %v985_v28, %v988_v34 }
 0x2cb   : > { %v990_v36 = vmul.f32 1.442695, %v989_v35 }
 0x2cd   : > { %2569 = vpow2.f32 %v990_v36 }
 0x2d3   : > { %v2568_v37 = vpop.eup %2567 }
 0x2d4   : > { %v825_v38 = vsel %vm736_vm2, %v2568_v37, 0.0 }
 0x2d5   : > { %826 = vadd.xlane.f32.xlu0 %v825_v38 }
 0x2d7   : > { %v2570_v39 = vpop.eup %2569 }
 0x2d8   : > { %v992_v40 = vsel %vm736_vm2, %v2570_v39, 0.0 }
 0x2d9   : > { %993 = vadd.xlane.f32.xlu1 %v992_v40 }
 0x2ea   : > { %997 = vrot.lane.b32.xlu1 %v2760_v11, %s2606_s30  ;;  %s2613_s30 = smov 40  }
 0x2eb   : > { %830 = vrot.lane.b32.xlu0 %v2760_v11, %s2607_s27 }
 0x2ee   : > { %1222 = vrot.lane.b32.xlu1 %v2760_v11, %s2608_s28  ;;  %s3015_s28 = sld [smem:[#allocation4_spill]] }
 0x2ef   : > { %1220 = vrot.lane.b32.xlu0 %v2760_v11, %s2609_s29 }
 0x2f4   : > { %s637_s29 = scalar_lea.vmem %s3015_s28, %s2744_s3 }
 0x362   : > { %v827_v42 = vpop.xlane.xlu0 %826 }
 0x363   : > { %2571 = vrcp.f32 %v827_v42 }
 0x366   : > { %v994_v43 = vpop.xlane.xlu1 %993  ;;  %v831_v44 = vpop.permute.xlu0 %830 }
 0x367   : > { %2573 = vrcp.f32 %v994_v43  ;;  %2397 = vmatpush3.msra.mxu1 %v831_v44 }
 0x368   : > { %2406 = vmatprep.subr.mxu1 %v2601_v6 }
 0x36a   : > { %v998_v47 = vpop.permute.xlu1 %997  ;;  %v1221_v56 = vpop.permute.xlu0 %1220 }
 0x36d   : > { %v2572_v45 = vpop.eup %2571 }
 0x36e   : > { %v829_v46 = vmul.f32 %v2572_v45, %v2568_v37  ;;  %v1223_v54 = vpop.permute.xlu1 %1222 }
 0x370   : > { %2399 = vmatmul.mubr.msk.f32.vlgmr.msra.gmra.mrb[2].mxu1 %vm736_vm2, %v829_v46 }
 0x371   : > { %v2574_v48 = vpop.eup %2573  ;;  %2407 = vmatpush3.msra.mxu1 %v998_v47  ;;  %2408 = vmatprep.mubr.msk.f32.mxu1 %vm2600_vm0, %v2601_v6 }
 0x372   : > { %v996_v49 = vmul.f32 %v2574_v48, %v2570_v39  ;;  %2416 = vmatprep.subr.mxu1 %v2601_v6  ;;  %v2310_v39 = vld [vmem:[%s2995_s7] ss:$0 sm:$0xff] }
 0x374   : > { %2409 = vmatmul.mubr.msk.f32.vlgmr.msra.gmra.mrb[4].mxu1 %vm736_vm2, %v996_v49 }
 0x375   : > { %2418 = vmatprep.mubr.msk.f32.mxu1 %vm2600_vm0, %v2601_v6  ;;  %2417 = vmatpush3.msra.mxu1 %v906_v50  ;;  %v1748_v50 = vld [vmem:[%s2998_s10] sm:$0xff] }
 0x376   : > { %2426 = vmatprep.subr.mxu1 %v2601_v6 }
 0x443   : > { %v902_v51 = vpop.f32.mrb[2].mxu1 }
 0x444   : > { %v2400_v52 = vpop.f32.mrb[3].mxu1  ;;  %2419 = vmatmul.mubr.msk.f32.vlgmr.msra.gmra.mrb[6].mxu1 %vm736_vm2, %v902_v51  ;;  %v1749_v51 = vld [vmem:[%s2998_s10 + $0x8] sm:$0xff] }
 0x445   : > { %2428 = vmatprep.mubr.msk.f32.mxu1 %vm2600_vm0, %v2601_v6  ;;  %v2515_v52 = vpack.c.bf16 %v1749_v51, %v1748_v50 }
 0x447   : > { %v1069_v53 = vpop.f32.mrb[4].mxu1 }
 0x448   : > { %v2410_v55 = vpop.f32.mrb[5].mxu1  ;;  %2414 = vmatmul.mubr.msk.f32.vlgmr.msra.gmra.mrb[4].mxu0 %vm736_vm2, %v1069_v53  ;;  %v1751_v53 = vld [vmem:[%s2998_s10 + $0x18] sm:$0xff] }
 0x449   : > { %2422 = vmatpush3.xpose.msk.msra.mxu0 %vm736_vm2, %v1223_v54  ;;  %2423 = vmatprep.mubr.msk.f32.mxu0 %vm2600_vm0, %v2601_v6  ;;  %v1833_v55 = vld [vmem:[%s3000_s12] sm:$0xff] }
 0x44a   : > { %2431 = vmatprep.subr.mxu0 %v2601_v6 }
 0x44c   : > { %2424 = vmatmul.mubr.msk.f32.vlgmr.msra.gmra.mrb[6].mxu0 %vm736_vm2, %v1221_v56  ;;  %v1834_v56 = vld [vmem:[%s3000_s12 + $0x8] sm:$0xff] }
 0x44d   : > { %2433 = vmatprep.mubr.msk.f32.mxu0 %vm2600_vm0, %v2601_v6  ;;  %2432 = vmatpush3.msra.mxu0 %v1386_v17 }
 0x44e   : > { %2441 = vmatprep.subr.mxu0 %v2601_v6 }
 0x517   : > { %v1216_v57 = vpop.f32.mrb[6].mxu1 }
 0x518   : > { %v2420_v58 = vpop.f32.mrb[7].mxu1 }
 0x519   : > { %v2521_v58 = vpack.c.bf16 %v1834_v56, %v1833_v55 }
 0x51b   : > { %v1143_v59 = vpop.f32.mrb[4].mxu0 }
 0x51c   : > { %v2822_v60 = vadd.f32 %v1216_v57, %v1143_v59  ;;  %v2415_v61 = vpop.f32.mrb[5].mxu0  ;;  %v1835_v57 = vld [vmem:[%s3000_s12 + $0x10] sm:$0xff]  ;;  %v1836_v59 = vld [vmem:[%s3000_s12 + $0x18] sm:$0xff] }
 0x51d   : > { %v1837_v61 = vld [vmem:[%s3000_s12 + $0x20] sm:$0xff] }
 0x51f   : > { %v1294_v62 = vpop.f32.mrb[6].mxu0 }
 0x520   : > { %v1298_v63 = vsel %vm817_vm4, -inf, %v1294_v62  ;;  %v2425_v0 = vpop.f32.mrb[7].mxu0  ;;  %v1838_v62 = vld [vmem:[%s3000_s12 + $0x28] sm:$0xff] }
 0x521   : > { %v1299_v1 = vsel %vm736_vm2, %v1298_v63, -inf }
 0x522   : > { %1300 = vmax.xlane.f32.xlu1 %v1299_v1 }
 0x533   : > { %1463 = vrot.lane.b32.xlu1 %v2760_v11, %s2610_s2 }
 0x537   : > { %1461 = vrot.lane.b32.xlu1 %v2760_v11, %s2611_s23 }
 0x5af   : > { %v1301_v2 = vpop.xlane.xlu1 %1300 }
 0x5b0   : > { %v1302_v4 = vsub.f32 %v1298_v63, %v1301_v2  ;;  %v2527_v63 = vpack.c.bf16 %v1838_v62, %v1837_v61 }
 0x5b2   : > { %v1303_v5 = vmul.f32 1.442695, %v1302_v4 }
 0x5b3   : > { %v1464_v14 = vpop.permute.xlu1 %1463 }
 0x5b4   : > { %2575 = vpow2.f32 %v1303_v5 }
 0x5b7   : > { %v1462_v16 = vpop.permute.xlu1 %1461 }
 0x5be   : > { %v2576_v7 = vpop.eup %2575 }
 0x5bf   : > { %v1305_v9 = vsel %vm736_vm2, %v2576_v7, 0.0 }
 0x5c0   : > { %1306 = vadd.xlane.f32.xlu0 %v1305_v9 }
 0x5d6   : > { %1310 = vrot.lane.b32.xlu0 %v2760_v11, %s2612_s24 }
 0x64d   : > { %v1307_v10 = vpop.xlane.xlu0 %1306 }
 0x64e   : > { %2577 = vrcp.f32 %v1307_v10 }
 0x651   : > { %v1311_v12 = vpop.permute.xlu0 %1310 }
 0x652   : > { %2427 = vmatpush3.msra.mxu1 %v1311_v12 }
 0x653   : > { %2436 = vmatprep.subr.mxu1 %v2601_v6 }
 0x658   : > { %v2578_v13 = vpop.eup %2577 }
 0x659   : > { %v1309_v15 = vmul.f32 %v2578_v13, %v2576_v7  ;;  %v2311_v13 = vld [vmem:[%s2996_s8] ss:$0 sm:$0xff] }
 0x65b   : > { %2429 = vmatmul.mubr.msk.f32.vlgmr.msra.gmra.mrb[8].mxu1 %vm736_vm2, %v1309_v15  ;;  %v2312_v15 = vld [vmem:[%s2997_s9] ss:$0 sm:$0xff] }
 0x65c   : > { %2437 = vmatpush3.xpose.msk.msra.mxu1 %vm736_vm2, %v1464_v14  ;;  %2438 = vmatprep.mubr.msk.f32.mxu1 %vm2600_vm0, %v2601_v6 }
 0x65d   : > { %2446 = vmatprep.subr.mxu1 %v2601_v6 }
 0x65f   : > { %2439 = vmatmul.mubr.msk.f32.vlgmr.msra.gmra.mrb[10].mxu1 %vm736_vm2, %v1462_v16 }
 0x660   : > { %2448 = vmatprep.mubr.msk.f32.mxu1 %vm2600_vm0, %v2601_v6  ;;  %2447 = vmatpush3.msra.mxu1 %v1627_v22 }
 0x661   : > { %2520 = vmatprep.subr.bf16.mxu1 %v2599_v3 }
 0x72e   : > { %v1382_v18 = vpop.f32.mrb[8].mxu1 }
 0x72f   : > { %v2430_v19 = vpop.f32.mrb[9].mxu1  ;;  %2434 = vmatmul.mubr.msk.f32.vlgmr.msra.gmra.mrb[8].mxu0 %vm736_vm2, %v1382_v18  ;;  %v1839_v18 = vld [vmem:[%s3000_s12 + $0x30] sm:$0xff] }
 0x730   : > { %2443 = vmatprep.mubr.msk.f32.mxu0 %vm2600_vm0, %v2601_v6  ;;  %v1840_v19 = vld [vmem:[%s3000_s12 + $0x38] sm:$0xff] }
 0x732   : > { %v1535_v20 = vpop.f32.mrb[10].mxu1 }
 0x733   : > { %v1539_v21 = vsel %vm817_vm4, -inf, %v1535_v20  ;;  %v2440_v23 = vpop.f32.mrb[11].mxu1  ;;  %v2530_v20 = vpack.c.bf16 %v1840_v19, %v1839_v18 }
 0x734   : > { %v1540_v24 = vsel %vm736_vm2, %v1539_v21, -inf }
 0x735   : > { %1541 = vmax.xlane.f32.xlu0 %v1540_v24 }
 0x74b   : > { %1551 = vrot.lane.b32.xlu0 %v2760_v11, %s2613_s30 }
 0x7c2   : > { %v1542_v25 = vpop.xlane.xlu0 %1541 }
 0x7c3   : > { %v1543_v26 = vsub.f32 %v1539_v21, %v1542_v25  ;;  %v2313_v21 = vld [vmem:[%s2999_s11] ss:$0 sm:$0xff] }
 0x7c5   : > { %v1544_v27 = vmul.f32 1.442695, %v1543_v26 }
 0x7c6   : > { %v1552_v28 = vpop.permute.xlu0 %1551 }
 0x7c7   : > { %2579 = vpow2.f32 %v1544_v27  ;;  %2442 = vmatpush3.msra.mxu0 %v1552_v28  ;;  %v1960_v27 = vld [vmem:[%s641_s26] sm:$0xff] }
 0x7c8   : > { %2514 = vmatprep.subr.bf16.mxu0 %v2599_v3  ;;  %v1959_v28 = vld [vmem:[%s637_s29] sm:$0xff] }
 0x7d1   : > { %v2580_v29 = vpop.eup %2579 }
 0x7d2   : > { %v1546_v30 = vsel %vm736_vm2, %v2580_v29, 0.0 }
 0x7d3   : > { %1547 = vadd.xlane.f32.xlu1 %v1546_v30 }
 0x802   : > { %v1456_v11 = vpop.f32.mrb[8].mxu0 }
 0x803   : > { %v1460_v31 = vadd.f32 %v1456_v11, %v2822_v60  ;;  %v2435_v32 = vpop.f32.mrb[9].mxu0  ;;  %v2524_v60 = vpack.c.bf16 %v1836_v59, %v1835_v57 }
 0x860   : > { %v1548_v33 = vpop.xlane.xlu1 %1547 }
 0x861   : > { %2581 = vrcp.f32 %v1548_v33 }
 0x86b   : > { %v2582_v34 = vpop.eup %2581 }
 0x86c   : > { %v1550_v35 = vmul.f32 %v2582_v34, %v2580_v29  ;;  %v2315_v29 = vld [vmem:[%s3001_s13] ss:$0 sm:$0xff] }
 0x86e   : > { %2444 = vmatmul.mubr.msk.f32.vlgmr.msra.gmra.mrb[10].mxu0 %vm736_vm2, %v1550_v35 }
 0x86f   : > { %2459 = vmatprep.mubr.msk.f32.mxu0 %vm2600_vm0, %v2601_v6  ;;  %2516 = vmatpush3.bf16.msra.mxu0 %v2515_v52 }
 0x870   : > { %2517 = vmatprep.subr.bf16.mxu0 %v2599_v3 }
 0x941   : > { %v1623_v36 = vpop.f32.mrb[10].mxu0 }
 0x942   : > { %v2445_v37 = vpop.f32.mrb[11].mxu0  ;;  %2449 = vmatmul.mubr.msk.f32.vlgmr.msra.gmra.mrb[12].mxu1 %vm736_vm2, %v1623_v36 }
 0x943   : > { %2478 = vmatprep.mubr.msk.f32.mxu1 %vm2600_vm0, %v2601_v6  ;;  %2522 = vmatpush3.bf16.msra.mxu1 %v2521_v58 }
 0x944   : > { %2523 = vmatprep.subr.bf16.mxu1 %v2599_v3 }
 0x947   : > { %2525 = vmatpush3.bf16.msra.mxu1 %v2524_v60  ;;  %v2318_v60 = vld [vmem:[%s3003_s15] ss:$0 sm:$0xff] }
 0x948   : > { %2526 = vmatprep.subr.bf16.mxu1 %v2599_v3 }
 0x94b   : > { %2528 = vmatpush3.bf16.msra.mxu1 %v2527_v63 }
 0x94c   : > { %2529 = vmatprep.subr.bf16.mxu1 %v2599_v3 }
 0x94f   : > { %2531 = vmatpush3.bf16.msra.mxu1 %v2530_v20 }
 0x950   : > { %2538 = vmatprep.subr.bf16.mxu1 %v2599_v3 }
 0xa15   : > { %v1697_v38 = vpop.f32.mrb[12].mxu1 }
 0xa16   : > { %v1701_v40 = vadd.f32 %v1697_v38, %v1460_v31  ;;  %v2450_v41 = vpop.f32.mrb[13].mxu1  ;;  %v2039_v38 = vld [vmem:[%s3005_s17 + $0x8] sm:$0xff] }
 0xa18   : > { %v1709_v42 = vadd.f32 %v2310_v39, %v1701_v40  ;;  %v2034_v39 = vld [vmem:[%s3004_s16] sm:$0xff] }
 0xa1a   : > { %v1710_v43 = vadd.f32 %v1709_v42, %v2750_v8  ;;  %v1750_v8 = vld [vmem:[%s2998_s10 + $0x10] sm:$0xff]  ;;  %v2035_v42 = vld [vmem:[%s3004_s16 + $0x8] sm:$0xff] }
 0xa1b   : > { %v2518_v54 = vpack.c.bf16 %v1751_v53, %v1750_v8 }
 0xa1c   : > { %v1713_v44 = vsel %vm659_vm1, %v1710_v43, 0.0 }
 0xa1d   : > { %1714 = vadd.xlane.f32.xlu1 %v1713_v44  ;;  %2519 = vmatpush3.bf16.msra.mxu0 %v2518_v54  ;;  %v2041_v44 = vld [vmem:[%s3005_s17 + $0x18] sm:$0xff] }
 0xa1e   : > { %2481 = vmatprep.subr.mxu0 %v2601_v6 }
 0xaaa   : > { %v1715_v45 = vpop.xlane.xlu1 %1714 }
 0xaab   : > { %v1717_v46 = vmul.f32 0.03125, %v1715_v45 }
 0xaad   : > { %v1718_v47 = vsub.f32 %v1710_v43, %v1717_v46  ;;  %v2040_v43 = vld [vmem:[%s3005_s17 + $0x10] sm:$0xff]  ;;  %v2539_v46 = vpack.c.bf16 %v2035_v42, %v2034_v39 }
 0xaaf   : > { %v1719_v48 = vmul.f32 %v1718_v47, %v1718_v47 }
 0xab1   : > { %v1720_v49 = vsel %vm659_vm1, %v1719_v48, 0.0  ;;  %v2037_v48 = vld [vmem:[%s3004_s16 + $0x18] sm:$0xff] }
 0xab2   : > { %1721 = vadd.xlane.f32.xlu1 %v1720_v49  ;;  %v2536_v49 = vpack.c.bf16 %v2041_v44, %v2040_v43 }
 0xb3f   : > { %v1722_v0 = vpop.xlane.xlu1 %1721 }
 0xb40   : > { %v1723_v1 = vmul.f32 0.03125, %v1722_v0 }
 0xb42   : > { %v1724_v2 = vadd.f32 1e-05, %v1723_v1 }
 0xb44   : > { %2583 = vrsqrt.f32 %v1724_v2  ;;  %vm1727_vm5 = vcmp.eq.f32.partialorder %v1724_v2, inf  ;;  %v1730_v7 = vand.u32 2147483648, %v1724_v2  ;;  %vm1729_vm6 = vcmp.eq.f32.partialorder %v1724_v2, 0.0 }
 0xb4e   : > { %v2584_v4 = vpop.eup %2583 }
 0xb4f   : > { %v1726_v5 = vmul.f32 %v2584_v4, %v1724_v2 }
 0xb51   : > { %v1728_v9 = vsel %vm1727_vm5, %v1724_v2, %v1726_v5  ;;  %v2322_v2 = vld [vmem:[%s3006_s18] ss:$0 sm:$0xff] }
 0xb52   : > { %v1731_v10 = vsel %vm1729_vm6, %v1730_v7, %v1728_v9 }
 0xb53   : > { %2585 = vrcp.f32 %v1731_v10 }
 0xb5d   : > { %v2586_v12 = vpop.eup %2585 }
 0xb5e   : > { %v1733_v14 = vmul.f32 %v2586_v12, %v1718_v47  ;;  %v2036_v47 = vld [vmem:[%s3004_s16 + $0x10] sm:$0xff] }
 0xb5f   : > { %v2542_v50 = vpack.c.bf16 %v2037_v48, %v2036_v47 }
 0xb60   : > { %v1740_v16 = vmul.f32 %v2311_v13, %v1733_v14 }
 0xb62   : > { %v1747_v17 = vadd.f32 %v2312_v15, %v1740_v16 }
 0xb64   : > { %2460 = vmatmul.mubr.msk.f32.vlgmr.msra.gmra.mrb[12].mxu0 %vm659_vm1, %v1747_v17 }
 0xb65   : > { %2483 = vmatprep.mubr.msk.f32.mxu0 %vm2600_vm0, %v2601_v6  ;;  %2482 = vmatpush3.msra.mxu0 %v1960_v27 }
 0xb66   : > { %2532 = vmatprep.subr.bf16.mxu0 %v2599_v3 }
 0xb68   : > { %2484 = vmatmul.mubr.msk.f32.vlgmr.msra.gmra.mrb[14].mxu0 %vm736_vm2, %v1959_v28 }
 0xb69   : > { %2494 = vmatprep.mubr.msk.f32.mxu0 %vm2600_vm0, %v2601_v6 }
 0xc37   : > { %v1828_v23 = vpop.f32.mrb[12].mxu0 }
 0xc38   : > { %v1829_v24 = vadd.f32 %v2313_v21, %v1828_v23  ;;  %v2461_v25 = vpop.f32.mrb[13].mxu0 }
 0xc3a   : > { %v1832_v26 = vmax.f32 %v1829_v24, 0.0 }
 0xc3b   : > { %v2030_v40 = vpop.f32.mrb[14].mxu0 }
 0xc3c   : > { %2479 = vmatmul.mubr.msk.f32.vlgmr.msra.gmra.mrb[14].mxu1 %vm1848_vm7, %v1832_v26  ;;  %v2485_v45 = vpop.f32.mrb[15].mxu0 }
 0xc3d   : > { %2505 = vmatprep.mubr.msk.f32.mxu1 %vm2600_vm0, %v2601_v6  ;;  %v2038_v6 = vld [vmem:[%s3005_s17] sm:$0xff]  ;;  %2540 = vmatpush3.bf16.msra.mxu1 %v2539_v46 }
 0xc3e   : > { %v2533_v41 = vpack.c.bf16 %v2039_v38, %v2038_v6  ;;  %2541 = vmatprep.subr.bf16.mxu1 %v2599_v3 }
 0xc40   : > { %2534 = vmatpush3.bf16.msra.mxu0 %v2533_v41 }
 0xc41   : > { %2535 = vmatprep.subr.bf16.mxu0 %v2599_v3  ;;  %2543 = vmatpush3.bf16.msra.mxu1 %v2542_v50  ;;  %v2317_v3 = vld [vmem:[%s3002_s14] ss:$0 sm:$0xff] }
 0xc44   : > { %2537 = vmatpush3.bf16.msra.mxu0 %v2536_v49 }
 0xc47   : > { %2495 = vmatmul.mubr.msk.f32.vlgmr.msra.gmra.mrb[16].mxu0 %vm659_vm1, %v2030_v40 }
 0xd0f   : > { %v1918_v30 = vpop.f32.mrb[14].mxu1 }
 0xd10   : > { %v1919_v22 = vadd.f32 %v2315_v29, %v1918_v30  ;;  %v2480_v11 = vpop.f32.mrb[15].mxu1 }
 0xd12   : > { %v1922_v31 = vadd.f32 %v1919_v22, %v1747_v17 }
 0xd14   : > { %v1925_v32 = vsel %vm659_vm1, %v1922_v31, 0.0 }
 0xd15   : > { %1926 = vadd.xlane.f32.xlu1 %v1925_v32 }
 0xd1a   : > { %v2111_v63 = vpop.f32.mrb[16].mxu0 }
 0xd1b   : > { %v2496_v0 = vpop.f32.mrb[17].mxu0 }
 0xda2   : > { %v1927_v33 = vpop.xlane.xlu1 %1926 }
 0xda3   : > { %v1928_v34 = vmul.f32 0.03125, %v1927_v33 }
 0xda5   : > { %v1929_v35 = vsub.f32 %v1922_v31, %v1928_v34 }
 0xda7   : > { %v1930_v36 = vmul.f32 %v1929_v35, %v1929_v35 }
 0xda9   : > { %v1931_v37 = vsel %vm659_vm1, %v1930_v36, 0.0 }
 0xdaa   : > { %1932 = vadd.xlane.f32.xlu1 %v1931_v37 }
 0xe37   : > { %v1933_v51 = vpop.xlane.xlu1 %1932 }
 0xe38   : > { %v1934_v8 = vmul.f32 0.03125, %v1933_v51 }
 0xe3a   : > { %v1935_v52 = vadd.f32 1e-05, %v1934_v8 }
 0xe3c   : > { %2587 = vrsqrt.f32 %v1935_v52  ;;  %vm1938_vm8 = vcmp.eq.f32.partialorder %v1935_v52, inf  ;;  %v1941_v55 = vand.u32 2147483648, %v1935_v52  ;;  %vm1940_vm9 = vcmp.eq.f32.partialorder %v1935_v52, 0.0 }
 0xe46   : > { %v2588_v53 = vpop.eup %2587 }
 0xe47   : > { %v1937_v54 = vmul.f32 %v2588_v53, %v1935_v52 }
 0xe49   : > { %v1939_v56 = vsel %vm1938_vm8, %v1935_v52, %v1937_v54 }
 0xe4a   : > { %v1942_v57 = vsel %vm1940_vm9, %v1941_v55, %v1939_v56 }
 0xe4b   : > { %2589 = vrcp.f32 %v1942_v57 }
 0xe55   : > { %v2590_v58 = vpop.eup %2589 }
 0xe56   : > { %v1944_v59 = vmul.f32 %v2590_v58, %v1929_v35 }
 0xe58   : > { %v1951_v61 = vmul.f32 %v2317_v3, %v1944_v59 }
 0xe5a   : > { %v1958_v62 = vadd.f32 %v2318_v60, %v1951_v61 }
 0xe5c   : > { %2506 = vmatmul.mubr.msk.f32.vlgmr.msra.gmra.mrb[16].mxu1 %vm659_vm1, %v1958_v62 }
 0xf2f   : > { %v2184_v1 = vpop.f32.mrb[16].mxu1 }
 0xf30   : > { %v2185_v4 = vadd.f32 %v2184_v1, %v2111_v63  ;;  %v2507_v5 = vpop.f32.mrb[17].mxu1 }
 0xf32   : > { %v2195_v7 = vadd.f32 %v2322_v2, %v2185_v4 }
 0xf34   : > { %2196 = vst.msk [vmem:[%s645_s20] sm:$0xff] %vm659_vm1, %v2195_v7 }
 0xf35 PF: > { %s29_s0 = sadd.s32 1, %s2597_s0  }
 0xf36   : > { %p26_p4 = scmp.ge.s32.totalorder %s29_s0, 4  }
 0xf38   :  { %28 = sbr.rel (!%p26_p4) target bundleno = 5 (0x5), region = 135 }

// kernel: adapted_transformer_encoder.3
= control target key start
LH: loop header
LB: loop body
LE: loop exit
PB: predicated region body
PF: predicated region fallthrough
CT: control target
= control target key end

     0   :  { %s6122_s27 = smov 0   ;;  %s7283_s0 = inlined_call_operand.vmem [shape: f32[2,8,32], index: 0, kind: input, shape index: {}]   ;;  %s7284_s1 = inlined_call_operand.vmem [shape: f32[2,1,8], index: 1, kind: input, shape index: {}]   ;;  %s7285_s2 = inlined_call_operand.vmem [shape: f32[32,32], index: 2, kind: input, shape index: {}]   ;;  %s7286_s3 = inlined_call_operand.vmem [shape: f32[1,32], index: 3, kind: input, shape index: {}]   ;;  %s7287_s4 = inlined_call_operand.vmem [shape: f32[32,32], index: 4, kind: input, shape index: {}]   ;;  %s7288_s5 = inlined_call_operand.vmem [shape: f32[1,32], index: 5, kind: input, shape index: {}]   ;;  %s7289_s6 = inlined_call_operand.vmem [shape: f32[32,32], index: 6, kind: input, shape index: {}]   ;;  %s7290_s7 = inlined_call_operand.vmem [shape: f32[1,32], index: 7, kind: input, shape index: {}]   ;;  %s7291_s8 = inlined_call_operand.vmem [shape: f32[32,32], index: 8, kind: input, shape index: {}]   ;;  %s7292_s9 = inlined_call_operand.vmem [shape: f32[1,32], index: 9, kind: input, shape index: {}]   ;;  %s7293_s10 = inlined_call_operand.vmem [shape: f32[1,32], index: 10, kind: input, shape index: {}]   ;;  %s7294_s11 = inlined_call_operand.vmem [shape: f32[1,32], index: 11, kind: input, shape index: {}]   ;;  %s7295_s12 = inlined_call_operand.vmem [shape: bf16[32,3072], index: 12, kind: input, shape index: {}]   ;;  %s7296_s13 = inlined_call_operand.vmem [shape: f32[1,3072], index: 13, kind: input, shape index: {}]   ;;  %s7297_s14 = inlined_call_operand.vmem [shape: bf16[3072,32], index: 14, kind: input, shape index: {}]   ;;  %s7298_s15 = inlined_call_operand.vmem [shape: f32[1,32], index: 15, kind: input, shape index: {}]   ;;  %s7299_s16 = inlined_call_operand.vmem [shape: f32[1,32], index: 16, kind: input, shape index: {}]   ;;  %s7300_s17 = inlined_call_operand.vmem [shape: f32[1,32], index: 17, kind: input, shape index: {}]   ;;  %s7301_s18 = inlined_call_operand.vmem [shape: f32[2,8,32], index: 18, kind: output, shape index: {}]  }
   0x1   :  { %7303 = sst [smem:[#allocation2_spill]] %s7283_s0 }
   0x2   :  { %7304 = sst [smem:[#allocation3_spill]] %s7284_s1 }
   0x3   :  { %7305 = sst [smem:[#allocation4_spill]] %s7285_s2 }
   0x4 LB: > { %s5028_s28 = sadd.s32 4294967295, %s6018_s27   ;;  %p5032_p0 = scmp.ge.s32.totalorder %s6018_s27, 1  ;;  %s6018_s27 = sphi %s6122_s27, %s28_s27  }
   0x5   : > { %p519_p1 = scmp.lt.s32.totalorder %s6018_s27, 3 }
   0x7   : > { %p520_p2 = pnand %p5032_p0, %p519_p1 }
   0x8   : > { %v673_v0 = vld [vmem:[%s7287_s4] sm:$0xff] (!%p520_p2)  ;;  %v674_v1 = vld [vmem:[%s7287_s4 + $0x8] sm:$0xff] (!%p520_p2)  ;;  %s7306_s21 = sld [smem:[#allocation4_spill]] (!%p520_p2)  ;;  %v6020_v3 = vmov (!%p520_p2), 0.0|0.0   ;;  %v675_v6 = vld [vmem:[%s7287_s4 + $0x10] sm:$0xff] (!%p520_p2)  ;;  %p574_p3 = scmp.lt.s32.totalorder (!%p520_p2), %s5028_s28, 1 }
   0x9   : > { %523 = sbr.rel (%p520_p2) target bundleno = 3869 (0xf1d), region = 92  ;;  %5720 = vmatprep.subr.bf16.mxu1 (!%p520_p2), %v6020_v3  ;;  %v5721_v4 = vpack.c.bf16 (!%p520_p2), %v674_v1, %v673_v0  ;;  %5714 = vmatprep.subr.bf16.mxu0 (!%p520_p2), %v6020_v3  ;;  %v676_v7 = vld [vmem:[%s7287_s4 + $0x18] sm:$0xff] (!%p520_p2)  ;;  %vm6021_vm0 = vmmov (!%p520_p2), 0   ;;  %v6022_v9 = vmov (!%p520_p2), 0.0   ;;  %s7307_s2 = sld [smem:[#allocation2_spill]] (!%p520_p2)  ;;  %vm599_vm1 = vcmask (!%p520_p2), 261120  }
   0xa   : > { %5640 = vmatprep.mubr.msk.f32.mxu1 (!%p520_p2), %vm6021_vm0, %v6022_v9  ;;  %5629 = vmatprep.mubr.msk.f32.mxu0 (!%p520_p2), %vm6021_vm0, %v6022_v9  ;;  %v5724_v12 = vpack.c.bf16 (!%p520_p2), %v676_v7, %v675_v6  ;;  %v754_v15 = vld [vmem:[%s7289_s6] sm:$0xff] (!%p520_p2)  ;;  %v755_v16 = vld [vmem:[%s7289_s6 + $0x8] sm:$0xff] (!%p520_p2)  ;;  %v756_v17 = vld [vmem:[%s7289_s6 + $0x10] sm:$0xff] (!%p520_p2)  ;;  %vm835_vm2 = vcmask (!%p520_p2), 64512   ;;  %s6023_s26 = smov (!%p520_p2), 120   ;;  %s7308_s20 = sld [smem:[#allocation3_spill]] (!%p520_p2) }
   0xb   : > { %5722 = vmatpush3.bf16.msra.mxu1 (!%p520_p2), %v5721_v4  ;;  %v5727_v18 = vpack.c.bf16 (!%p520_p2), %v755_v16, %v754_v15  ;;  %v757_v19 = vld [vmem:[%s7289_s6 + $0x18] sm:$0xff] (!%p520_p2)  ;;  %v5037_v21 = vld [vmem:[%s7288_s5] ss:$0 sm:$0xff] (!%p520_p2)  ;;  %s6025_s24 = smov (!%p520_p2), 104   ;;  %v1173_v59 = vld [vmem:[%s7291_s8 + $0x8] sm:$0xff] (!%p520_p2) }
   0xc   : > { %5723 = vmatprep.subr.bf16.mxu1 (!%p520_p2), %v6020_v3  ;;  %v5730_v20 = vpack.c.bf16 (!%p520_p2), %v757_v19, %v756_v17  ;;  %v5035_v22 = vld [vmem:[%s7286_s3] ss:$0 sm:$0xff] (!%p520_p2) }
   0xd   : > { %v5039_v29 = vld [vmem:[%s7290_s7] ss:$0 sm:$0xff] (!%p520_p2) }
   0xe   : > { %v588_v2 = vld [vmem:[%s7306_s21] sm:$0xff] (!%p520_p2)  ;;  %v589_v5 = vld [vmem:[%s7306_s21 + $0x8] sm:$0xff] (!%p520_p2)  ;;  %v590_v10 = vld [vmem:[%s7306_s21 + $0x10] sm:$0xff] (!%p520_p2) }
   0xf   : > { %v5715_v8 = vpack.c.bf16 (!%p520_p2), %v589_v5, %v588_v2  ;;  %v591_v11 = vld [vmem:[%s7306_s21 + $0x18] sm:$0xff] (!%p520_p2)  ;;  %5725 = vmatpush3.bf16.msra.mxu1 (!%p520_p2), %v5724_v12  ;;  %v1004_v0 = vld [vmem:[%s7291_s8] sm:$0xff] (!%p520_p2) }
  0x10   : > { %s7310_s28 = smov (!%p574_p3, %s5028_s28), 1  ;;  %v5718_v13 = vpack.c.bf16 %v591_v11, %v590_v10  ;;  %5654 = vmatprep.subr.mxu1 %v6022_v9 }
  0x11   : > { %5716 = vmatpush3.bf16.msra.mxu0 %v5715_v8  ;;  %s5033_s1 = sshll.u32 %s7310_s28, 3  ;;  %s580_s22 = scalar_lea.vmem %s7308_s20, %s7310_s28 }
  0x12   : > { %5717 = vmatprep.subr.bf16.mxu0 %v6020_v3  ;;  %s6166_s23 = scalar_lea.vmem %s7307_s2, %s5033_s1  ;;  %v6225_v36 = vld [vmem:[%s580_s22] ss:$0 sm:$0xff]  ;;  %s6024_s2 = smov 112  }
  0x13   : > { %v586_v14 = vld [vmem:[%s6166_s23] sm:$0xff]  ;;  %s584_s30 = scalar_lea.vmem %s7301_s18, %s5033_s1 }
  0x14   : > { %5641 = vmatmul.mubr.msk.f32.vlgmr.msra.gmra.mrb[0].mxu1 %vm599_vm1, %v586_v14 }
  0x15   : > { %5719 = vmatpush3.bf16.msra.mxu0 %v5718_v13  ;;  %5656 = vmatprep.mubr.msk.f32.mxu1 %vm6021_vm0, %v6022_v9 }
  0x16   : > { %5726 = vmatprep.subr.bf16.mxu0 %v6020_v3 }
  0x18   : > { %5630 = vmatmul.mubr.msk.f32.vlgmr.msra.gmra.mrb[0].mxu0 %vm599_vm1, %v586_v14 }
  0x19   : > { %5651 = vmatprep.mubr.msk.f32.mxu0 %vm6021_vm0, %v6022_v9  ;;  %5728 = vmatpush3.bf16.msra.mxu0 %v5727_v18 }
  0x1a   : > { %5729 = vmatprep.subr.bf16.mxu0 %v6020_v3 }
  0x1d   : > { %5731 = vmatpush3.bf16.msra.mxu0 %v5730_v20 }
  0x1e   : > { %5664 = vmatprep.subr.mxu0 %v6022_v9 }
  0x20   : > { %5652 = vmatmul.mubr.msk.f32.vlgmr.msra.gmra.mrb[2].mxu0 %vm599_vm1, %v586_v14 }
  0x21   : > { %5666 = vmatprep.mubr.msk.f32.mxu0 %vm6021_vm0, %v6022_v9 }
  0xe7   : > { %v750_v23 = vpop.f32.mrb[0].mxu1 }
  0xe8   : > { %v751_v24 = vadd.f32 %v5037_v21, %v750_v23  ;;  %v5642_v25 = vpop.f32.mrb[1].mxu1 }
  0xea   : > { %1007 = vrot.lane.b32.xlu0 %v751_v24, %s6023_s26  ;;  %5655 = vmatpush3.xpose.msk.msra.mxu1 %vm835_vm2, %v751_v24 }
  0xeb   : > { %v669_v26 = vpop.f32.mrb[0].mxu0  ;;  %5659 = vmatprep.subr.mxu1 %v6022_v9 }
  0xec   : > { %v6198_v27 = vadd.f32 %v5035_v22, %v669_v26  ;;  %v5631_v28 = vpop.f32.mrb[1].mxu0 }
  0xee   : > { %5657 = vmatmul.mubr.msk.f32.vlgmr.msra.gmra.mrb[2].mxu1 %vm835_vm2, %v6198_v27  ;;  %1005 = vrot.lane.b32.xlu0 %v6198_v27, %s6023_s26 }
  0xef   : > { %5661 = vmatprep.mubr.msk.f32.mxu1 %vm6021_vm0, %v6022_v9 }
  0xf3   : > { %v831_v30 = vpop.f32.mrb[2].mxu0 }
  0xf4   : > { %v6212_v31 = vadd.f32 %v5039_v29, %v831_v30  ;;  %v5653_v32 = vpop.f32.mrb[3].mxu0 }
  0xf6   : > { %5660 = vmatpush3.msra.mxu1 %v6212_v31 }
  0xf7   : > { %5669 = vmatprep.subr.mxu1 %v6022_v9 }
 0x15c   : > { %v1008_v33 = vpop.permute.xlu0 %1007 }
 0x15d   : > { %5665 = vmatpush3.xpose.msk.msra.mxu0 %vm835_vm2, %v1008_v33 }
 0x15e   : > { %5674 = vmatprep.subr.mxu0 %v6022_v9 }
 0x160   : > { %v1006_v34 = vpop.permute.xlu0 %1005 }
 0x161   : > { %5667 = vmatmul.mubr.msk.f32.vlgmr.msra.gmra.mrb[4].mxu0 %vm835_vm2, %v1006_v34 }
 0x162   : > { %5676 = vmatprep.mubr.msk.f32.mxu0 %vm6021_vm0, %v6022_v9  ;;  %5675 = vmatpush3.msra.mxu0 %v1173_v59 }
 0x163   : > { %5684 = vmatprep.subr.mxu0 %v6022_v9 }
 0x1c1   : > { %v908_v35 = vpop.f32.mrb[2].mxu1 }
 0x1c2   : > { %v912_v37 = vmul.f32 0.35355338, %v908_v35  ;;  %v5658_v38 = vpop.f32.mrb[3].mxu1 }
 0x1c4   : > { %v919_v39 = vadd.f32 %v6225_v36, %v912_v37 }
 0x1c6   : > { %v920_v40 = vsel %vm835_vm2, %v919_v39, -inf }
 0x1c7   : > { %921 = vmax.xlane.f32.xlu1 %v920_v40 }
 0x234   : > { %v1079_v41 = vpop.f32.mrb[4].mxu0 }
 0x235   : > { %v1083_v42 = vmul.f32 0.35355338, %v1079_v41  ;;  %v5668_v43 = vpop.f32.mrb[5].mxu0 }
 0x237   : > { %v1084_v44 = vadd.f32 %v6225_v36, %v1083_v42 }
 0x239   : > { %v1085_v45 = vsel %vm835_vm2, %v1084_v44, -inf }
 0x23a   : > { %1086 = vmax.xlane.f32.xlu1 %v1085_v45 }
 0x254   : > { %v922_v46 = vpop.xlane.xlu1 %921 }
 0x255   : > { %v923_v47 = vsub.f32 %v919_v39, %v922_v46 }
 0x257   : > { %v924_v48 = vmul.f32 1.442695, %v923_v47 }
 0x259   : > { %5939 = vpow2.f32 %v924_v48 }
 0x263   : > { %v5940_v49 = vpop.eup %5939 }
 0x264   : > { %v926_v50 = vsel %vm835_vm2, %v5940_v49, 0.0 }
 0x265   : > { %927 = vadd.xlane.f32.xlu0 %v926_v50 }
 0x27b   : > { %1411 = vrot.lane.b32.xlu0 %v6212_v31, %s6024_s2 }
 0x27f   : > { %1564 = vrot.lane.b32.xlu0 %v751_v24, %s6025_s24 }
 0x2c7   : > { %v1087_v51 = vpop.xlane.xlu1 %1086 }
 0x2c8   : > { %v1088_v52 = vsub.f32 %v1084_v44, %v1087_v51 }
 0x2ca   : > { %v1089_v53 = vmul.f32 1.442695, %v1088_v52  ;;  %v5058_v52 = vld [vmem:[%s7292_s9] ss:$0 sm:$0xff] }
 0x2cc   : > { %5941 = vpow2.f32 %v1089_v53 }
 0x2d6   : > { %v5942_v54 = vpop.eup %5941 }
 0x2d7   : > { %v1091_v55 = vsel %vm835_vm2, %v5942_v54, 0.0 }
 0x2d8   : > { %1092 = vadd.xlane.f32.xlu1 %v1091_v55 }
 0x2e9   : > { %1097 = vrot.lane.b32.xlu1 %v6212_v31, %s6023_s26 }
 0x2ed   : > { %1322 = vrot.lane.b32.xlu1 %v751_v24, %s6024_s2 }
 0x2f1   : > { %1320 = vrot.lane.b32.xlu1 %v6198_v27, %s6024_s2 }
 0x2f2   : > { %v928_v56 = vpop.xlane.xlu0 %927 }
 0x2f3   : > { %5943 = vrcp.f32 %v928_v56  ;;  %v6011_v56 = vld [vmem:[%s6166_s23] sm:$0xff] }
 0x2f6   : > { %v1412_v2 = vpop.permute.xlu0 %1411 }
 0x2fa   : > { %v1565_v24 = vpop.permute.xlu0 %1564 }
 0x2fd   : > { %v5944_v57 = vpop.eup %5943 }
 0x2fe   : > { %v930_v58 = vmul.f32 %v5944_v57, %v5940_v49 }
 0x300   : > { %5662 = vmatmul.mubr.msk.f32.vlgmr.msra.gmra.mrb[4].mxu1 %vm835_vm2, %v930_v58 }
 0x301   : > { %5671 = vmatprep.mubr.msk.f32.mxu1 %vm6021_vm0, %v6022_v9 }
 0x365   : > { %v1093_v60 = vpop.xlane.xlu1 %1092 }
 0x366   : > { %5945 = vrcp.f32 %v1093_v60 }
 0x369   : > { %v1098_v61 = vpop.permute.xlu1 %1097 }
 0x36a   : > { %5670 = vmatpush3.msra.mxu1 %v1098_v61 }
 0x36b   : > { %5679 = vmatprep.subr.mxu1 %v6022_v9 }
 0x36d   : > { %v1323_v4 = vpop.permute.xlu1 %1322 }
 0x370   : > { %v5946_v62 = vpop.eup %5945 }
 0x371   : > { %v1095_v63 = vmul.f32 %v5946_v62, %v5942_v54  ;;  %v1321_v7 = vpop.permute.xlu1 %1320 }
 0x373   : > { %5672 = vmatmul.mubr.msk.f32.vlgmr.msra.gmra.mrb[6].mxu1 %vm835_vm2, %v1095_v63 }
 0x374   : > { %5680 = vmatpush3.msra.mxu1 %v1004_v0  ;;  %5681 = vmatprep.mubr.msk.f32.mxu1 %vm6021_vm0, %v6022_v9  ;;  %v1851_v0 = vld [vmem:[%s7295_s12] sm:$0xff] }
 0x375   : > { %5689 = vmatprep.subr.mxu1 %v6022_v9 }
 0x3d3   : > { %v1000_v1 = vpop.f32.mrb[4].mxu1 }
 0x3d4   : > { %v5663_v3 = vpop.f32.mrb[5].mxu1  ;;  %5682 = vmatmul.mubr.msk.f32.vlgmr.msra.gmra.mrb[8].mxu1 %vm835_vm2, %v1000_v1  ;;  %v1863_v1 = vld [vmem:[%s7295_s12 + $0x60] sm:$0xff] }
 0x3d5   : > { %5690 = vmatpush3.msra.mxu1 %v1412_v2  ;;  %5691 = vmatprep.mubr.msk.f32.mxu1 %vm6021_vm0, %v6022_v9  ;;  %v1852_v2 = vld [vmem:[%s7295_s12 + $0x8] sm:$0xff]  ;;  %v5062_v3 = vcombine.high %v1851_v0, %v1863_v1 }
 0x3d6   : > { %5699 = vmatprep.subr.mxu1 %v6022_v9 }
 0x446   : > { %v1169_v5 = vpop.f32.mrb[6].mxu1 }
 0x447   : > { %v5673_v6 = vpop.f32.mrb[7].mxu1  ;;  %5677 = vmatmul.mubr.msk.f32.vlgmr.msra.gmra.mrb[6].mxu0 %vm835_vm2, %v1169_v5  ;;  %v5061_v5 = vcombine.low %v1851_v0, %v1863_v1  ;;  %v1858_v0 = vld [vmem:[%s7295_s12 + $0x38] sm:$0xff] }
 0x448   : > { %5685 = vmatpush3.xpose.msk.msra.mxu0 %vm835_vm2, %v1323_v4  ;;  %5686 = vmatprep.mubr.msk.f32.mxu0 %vm6021_vm0, %v6022_v9  ;;  %v1864_v4 = vld [vmem:[%s7295_s12 + $0x68] sm:$0xff]  ;;  %v1870_v1 = vld [vmem:[%s7295_s12 + $0x98] sm:$0xff] }
 0x449   : > { %5694 = vmatprep.subr.mxu0 %v6022_v9  ;;  %v5063_v6 = vcombine.low %v1852_v2, %v1864_v4 }
 0x44b   : > { %5687 = vmatmul.mubr.msk.f32.vlgmr.msra.gmra.mrb[8].mxu0 %vm835_vm2, %v1321_v7  ;;  %v5064_v7 = vcombine.high %v1852_v2, %v1864_v4 }
 0x44c   : > { %5696 = vmatprep.mubr.msk.f32.mxu0 %vm6021_vm0, %v6022_v9 }
 0x4a7   : > { %v1316_v8 = vpop.f32.mrb[8].mxu1 }
 0x4a8   : > { %v5683_v10 = vpop.f32.mrb[9].mxu1 }
 0x4a9   : > { %v1887_v10 = vld [vmem:[%s7295_s12 + $0x120] sm:$0xff] }
 0x51a   : > { %v1243_v11 = vpop.f32.mrb[6].mxu0 }
 0x51b   : > { %v1317_v12 = vadd.f32 %v1316_v8, %v1243_v11  ;;  %v5678_v13 = vpop.f32.mrb[7].mxu0  ;;  %v1875_v8 = vld [vmem:[%s7295_s12 + $0xc0] sm:$0xff]  ;;  %v1876_v11 = vld [vmem:[%s7295_s12 + $0xc8] sm:$0xff] }
 0x51c   : > { %v1888_v13 = vld [vmem:[%s7295_s12 + $0x128] sm:$0xff] }
 0x51e   : > { %v1394_v14 = vpop.f32.mrb[8].mxu0 }
 0x51f   : > { %v1398_v15 = vmul.f32 0.35355338, %v1394_v14  ;;  %v5688_v16 = vpop.f32.mrb[9].mxu0  ;;  %v5085_v14 = vcombine.low %v1875_v8, %v1887_v10 }
 0x520   : > { %v5088_v16 = vcombine.high %v1876_v11, %v1888_v13 }
 0x521   : > { %v1399_v17 = vadd.f32 %v6225_v36, %v1398_v15  ;;  %v5087_v15 = vcombine.low %v1876_v11, %v1888_v13 }
 0x523   : > { %v1400_v18 = vsel %vm835_vm2, %v1399_v17, -inf }
 0x524   : > { %1401 = vmax.xlane.f32.xlu1 %v1400_v18  ;;  %v1865_v18 = vld [vmem:[%s7295_s12 + $0x70] sm:$0xff] }
 0x5b1   : > { %v1402_v19 = vpop.xlane.xlu1 %1401 }
 0x5b2   : > { %v1403_v20 = vsub.f32 %v1399_v17, %v1402_v19  ;;  %v1853_v17 = vld [vmem:[%s7295_s12 + $0x10] sm:$0xff]  ;;  %v1854_v19 = vld [vmem:[%s7295_s12 + $0x18] sm:$0xff] }
 0x5b4   : > { %v1404_v21 = vmul.f32 1.442695, %v1403_v20  ;;  %v6026_v20 = vmov 0  }
 0x5b6   : > { %5947 = vpow2.f32 %v1404_v21  ;;  %v5066_v21 = vcombine.high %v1853_v17, %v1865_v18 }
 0x5c0   : > { %v5948_v22 = vpop.eup %5947 }
 0x5c1   : > { %v1406_v23 = vsel %vm835_vm2, %v5948_v22, 0.0 }
 0x5c2   : > { %1407 = vadd.xlane.f32.xlu0 %v1406_v23  ;;  %v5065_v23 = vcombine.low %v1853_v17, %v1865_v18  ;;  %v1860_v17 = vld [vmem:[%s7295_s12 + $0x48] sm:$0xff] }
 0x5c3   : > { %v1872_v18 = vld [vmem:[%s7295_s12 + $0xa8] sm:$0xff] }
 0x5d8   : > { %1562 = vrot.lane.b32.xlu0 %v6198_v27, %s6025_s24  ;;  %v1487_v27 = vld [vmem:[%s7291_s8 + $0x10] sm:$0xff] }
 0x5d9   : > { %5695 = vmatpush3.msra.mxu0 %v1487_v27 }
 0x5da   : > { %5704 = vmatprep.subr.mxu0 %v6022_v9 }
 0x64f   : > { %v1408_v25 = vpop.xlane.xlu0 %1407 }
 0x650   : > { %5949 = vrcp.f32 %v1408_v25 }
 0x653   : > { %v1563_v29 = vpop.permute.xlu0 %1562 }
 0x65a   : > { %v5950_v26 = vpop.eup %5949 }
 0x65b   : > { %v1410_v28 = vmul.f32 %v5950_v26, %v5948_v22  ;;  %v1866_v22 = vld [vmem:[%s7295_s12 + $0x78] sm:$0xff] }
 0x65c   : > { %v5068_v25 = vcombine.high %v1854_v19, %v1866_v22 }
 0x65d   : > { %5692 = vmatmul.mubr.msk.f32.vlgmr.msra.gmra.mrb[10].mxu1 %vm835_vm2, %v1410_v28 }
 0x65e   : > { %5700 = vmatpush3.xpose.msk.msra.mxu1 %vm835_vm2, %v1565_v24  ;;  %5701 = vmatprep.mubr.msk.f32.mxu1 %vm6021_vm0, %v6022_v9  ;;  %v5067_v24 = vcombine.low %v1854_v19, %v1866_v22 }
 0x65f   : > { %5709 = vmatprep.subr.mxu1 %v6022_v9 }
 0x661   : > { %5702 = vmatmul.mubr.msk.f32.vlgmr.msra.gmra.mrb[12].mxu1 %vm835_vm2, %v1563_v29 }
 0x662   : > { %5711 = vmatprep.mubr.msk.f32.mxu1 %vm6021_vm0, %v6022_v9 }
 0x730   : > { %v1483_v30 = vpop.f32.mrb[10].mxu1 }
 0x731   : > { %v5693_v32 = vpop.f32.mrb[11].mxu1  ;;  %5697 = vmatmul.mubr.msk.f32.vlgmr.msra.gmra.mrb[10].mxu0 %vm835_vm2, %v1483_v30 }
 0x732   : > { %5706 = vmatprep.mubr.msk.f32.mxu0 %vm6021_vm0, %v6022_v9  ;;  %v1729_v9 = vld [vmem:[%s7291_s8 + $0x18] sm:$0xff] }
 0x733   : > { %5710 = vmatpush3.msra.mxu1 %v1729_v9  ;;  %v1890_v9 = vld [vmem:[%s7295_s12 + $0x138] sm:$0xff] }
 0x734   : > { %v1636_v33 = vpop.f32.mrb[12].mxu1  ;;  %2309 = vmatprep.subr.bf16.mxu1 %v5064_v7  ;;  %v1893_v7 = vld [vmem:[%s7295_s12 + $0x150] sm:$0xff] }
 0x735   : > { %v1640_v34 = vmul.f32 0.35355338, %v1636_v33  ;;  %v5703_v35 = vpop.f32.mrb[13].mxu1 }
 0x737   : > { %v1641_v37 = vadd.f32 %v6225_v36, %v1640_v34 }
 0x739   : > { %v1642_v38 = vsel %vm835_vm2, %v1641_v37, -inf }
 0x73a   : > { %1643 = vmax.xlane.f32.xlu0 %v1642_v38 }
 0x7c7   : > { %v1644_v39 = vpop.xlane.xlu0 %1643 }
 0x7c8   : > { %v1645_v40 = vsub.f32 %v1641_v37, %v1644_v39  ;;  %v5059_v37 = vld [vmem:[%s7293_s10] ss:$0 sm:$0xff] }
 0x7c9   : > { %v5060_v39 = vld [vmem:[%s7294_s11] ss:$0 sm:$0xff] }
 0x7ca   : > { %v1646_v41 = vmul.f32 1.442695, %v1645_v40 }
 0x7cc   : > { %5951 = vpow2.f32 %v1646_v41  ;;  %v1877_v41 = vld [vmem:[%s7295_s12 + $0xd0] sm:$0xff] }
 0x7d6   : > { %v5952_v42 = vpop.eup %5951 }
 0x7d7   : > { %v1648_v43 = vsel %vm835_vm2, %v5952_v42, 0.0 }
 0x7d8   : > { %1649 = vadd.xlane.f32.xlu1 %v1648_v43  ;;  %v1878_v43 = vld [vmem:[%s7295_s12 + $0xd8] sm:$0xff] }
 0x7e9   : > { %1653 = vrot.lane.b32.xlu1 %v6212_v31, %s6025_s24 }
 0x804   : > { %v1557_v36 = vpop.f32.mrb[10].mxu0 }
 0x805   : > { %v1561_v44 = vadd.f32 %v1557_v36, %v1317_v12  ;;  %v5698_v45 = vpop.f32.mrb[11].mxu0  ;;  %v5086_v12 = vcombine.high %v1875_v8, %v1887_v10  ;;  %v1882_v8 = vld [vmem:[%s7295_s12 + $0xf8] sm:$0xff] }
 0x806   : > { %v1894_v10 = vld [vmem:[%s7295_s12 + $0x158] sm:$0xff] }
 0x865   : > { %v1650_v46 = vpop.xlane.xlu1 %1649 }
 0x866   : > { %5953 = vrcp.f32 %v1650_v46  ;;  %v5092_v46 = vcombine.high %v1878_v43, %v1890_v9 }
 0x869   : > { %v1654_v47 = vpop.permute.xlu1 %1653 }
 0x86a   : > { %5705 = vmatpush3.msra.mxu0 %v1654_v47  ;;  %v1855_v47 = vld [vmem:[%s7295_s12 + $0x20] sm:$0xff] }
 0x86b   : > { %2268 = vmatprep.subr.bf16.mxu0 %v5062_v3 }
 0x870   : > { %v5954_v48 = vpop.eup %5953 }
 0x871   : > { %v1652_v49 = vmul.f32 %v5954_v48, %v5952_v42  ;;  %v1889_v42 = vld [vmem:[%s7295_s12 + $0x130] sm:$0xff]  ;;  %v1867_v48 = vld [vmem:[%s7295_s12 + $0x80] sm:$0xff] }
 0x872   : > { %v5090_v45 = vcombine.high %v1877_v41, %v1889_v42 }
 0x873   : > { %5707 = vmatmul.mubr.msk.f32.vlgmr.msra.gmra.mrb[12].mxu0 %vm835_vm2, %v1652_v49  ;;  %v1856_v49 = vld [vmem:[%s7295_s12 + $0x28] sm:$0xff] }
 0x874   : > { %2269 = vmatpush1.bf16.msra.mxu0 %v5061_v5  ;;  %2300 = vmatprep.mubr.bf16.mxu0 %v6026_v20  ;;  %v5076_v5 = vcombine.high %v1858_v0, %v1870_v1 }
 0x875   : > { %2270 = vmatprep.subr.bf16.mxu0 %v5086_v12  ;;  %v5075_v12 = vcombine.low %v1858_v0, %v1870_v1  ;;  %v5762_v0 = vld [vmem:[%s7297_s14 + $0x98] sm:$0xff]   ;;  %v5763_v1 = vld [vmem:[%s7297_s14 + $0x60] sm:$0xff]  }
 0x878   : > { %2271 = vmatpush1.bf16.msra.mxu0 %v5085_v14  ;;  %v5100_v14 = vcombine.high %v1882_v8, %v1894_v10 }
 0x879   : > { %2350 = vmatprep.subr.bf16.mxu0 %v5066_v21  ;;  %v5099_v21 = vcombine.low %v1882_v8, %v1894_v10  ;;  %v5770_v8 = vld [vmem:[%s7297_s14 + $0xa8] sm:$0xff]   ;;  %v5771_v10 = vld [vmem:[%s7297_s14 + $0x70] sm:$0xff]  }
 0x946   : > { %v1725_v50 = vpop.f32.mrb[12].mxu0 }
 0x947   : > { %v5708_v51 = vpop.f32.mrb[13].mxu0  ;;  %5712 = vmatmul.mubr.msk.f32.vlgmr.msra.gmra.mrb[14].mxu1 %vm835_vm2, %v1725_v50  ;;  %v1868_v50 = vld [vmem:[%s7295_s12 + $0x88] sm:$0xff] }
 0x948   : > { %2310 = vmatpush1.bf16.msra.mxu1 %v5063_v6  ;;  %2341 = vmatprep.mubr.bf16.mxu1 %v6026_v20  ;;  %v5089_v51 = vcombine.low %v1877_v41, %v1889_v42  ;;  %v1881_v6 = vld [vmem:[%s7295_s12 + $0xf0] sm:$0xff] }
 0x949   : > { %2311 = vmatprep.subr.bf16.mxu1 %v5088_v16  ;;  %v5098_v13 = vcombine.high %v1881_v6, %v1893_v7  ;;  %v1871_v16 = vld [vmem:[%s7295_s12 + $0xa0] sm:$0xff]  ;;  %v5097_v19 = vcombine.low %v1881_v6, %v1893_v7  ;;  %v1885_v42 = vld [vmem:[%s7295_s12 + $0x110] sm:$0xff]  ;;  %v5768_v6 = vld [vmem:[%s7297_s14 + $0xe8] sm:$0xff]  }
 0x94a   : > { %v5769_v7 = vld [vmem:[%s7297_s14 + $0x28] sm:$0xff]  }
 0x94c   : > { %2312 = vmatpush1.bf16.msra.mxu1 %v5087_v15  ;;  %v1859_v15 = vld [vmem:[%s7295_s12 + $0x40] sm:$0xff] }
 0x94d   : > { %2391 = vmatprep.subr.bf16.mxu1 %v5068_v25  ;;  %v5078_v22 = vcombine.high %v1859_v15, %v1871_v16  ;;  %v1895_v25 = vld [vmem:[%s7295_s12 + $0x160] sm:$0xff] }
 0xa1a   : > { %v1799_v31 = vpop.f32.mrb[14].mxu1 }
 0xa1b   : > { %v1803_v53 = vadd.f32 %v1799_v31, %v1561_v44  ;;  %v5713_v54 = vpop.f32.mrb[15].mxu1  ;;  %v5091_v31 = vcombine.low %v1878_v43, %v1890_v9  ;;  %v1897_v43 = vld [vmem:[%s7295_s12 + $0x170] sm:$0xff]  ;;  %v1886_v9 = vld [vmem:[%s7295_s12 + $0x118] sm:$0xff] }
 0xa1c   : > { %v1879_v54 = vld [vmem:[%s7295_s12 + $0xe0] sm:$0xff] }
 0xa1d   : > { %v1811_v55 = vadd.f32 %v5058_v52, %v1803_v53  ;;  %v5070_v52 = vcombine.high %v1855_v47, %v1867_v48  ;;  %v5072_v53 = vcombine.high %v1856_v49, %v1868_v50 }
 0xa1f   : > { %v1812_v57 = vadd.f32 %v6011_v56, %v1811_v55  ;;  %v1891_v55 = vld [vmem:[%s7295_s12 + $0x140] sm:$0xff]  ;;  %v1880_v56 = vld [vmem:[%s7295_s12 + $0xe8] sm:$0xff] }
 0xa20   : > { %v5093_v2 = vcombine.low %v1879_v54, %v1891_v55 }
 0xa21   : > { %v1815_v58 = vsel %vm599_vm1, %v1812_v57, 0.0 }
 0xa22   : > { %1816 = vadd.xlane.f32.xlu1 %v1815_v58  ;;  %v5069_v58 = vcombine.low %v1855_v47, %v1867_v48  ;;  %v5106_v48 = vcombine.high %v1885_v42, %v1897_v43 }
 0xaaf   : > { %v1817_v59 = vpop.xlane.xlu1 %1816 }
 0xab0   : > { %v1819_v60 = vmul.f32 0.03125, %v1817_v59  ;;  %v5071_v59 = vcombine.low %v1856_v49, %v1868_v50  ;;  %v5105_v50 = vcombine.low %v1885_v42, %v1897_v43 }
 0xab2   : > { %v1820_v61 = vsub.f32 %v1812_v57, %v1819_v60  ;;  %v1892_v57 = vld [vmem:[%s7295_s12 + $0x148] sm:$0xff]  ;;  %v5094_v60 = vcombine.high %v1879_v54, %v1891_v55  ;;  %v5750_v54 = vld [vmem:[%s7297_s14 + $0x80] sm:$0xff]  }
 0xab3   : > { %v5095_v3 = vcombine.low %v1880_v56, %v1892_v57  ;;  %v5751_v55 = vld [vmem:[%s7297_s14 + $0x48] sm:$0xff]  }
 0xab4   : > { %v1821_v62 = vmul.f32 %v1820_v61, %v1820_v61 }
 0xab6   : > { %v1822_v63 = vsel %vm599_vm1, %v1821_v62, 0.0  ;;  %v1857_v62 = vld [vmem:[%s7295_s12 + $0x30] sm:$0xff] }
 0xab7   : > { %1823 = vadd.xlane.f32.xlu0 %v1822_v63  ;;  %v1869_v63 = vld [vmem:[%s7295_s12 + $0x90] sm:$0xff] }
 0xab8   : > { %v5074_v4 = vcombine.high %v1857_v62, %v1869_v63  ;;  %v5073_v11 = vcombine.low %v1857_v62, %v1869_v63  ;;  %v5760_v62 = vld [vmem:[%s7297_s14 + $0xd8] sm:$0xff]  }
 0xab9   : > { %v5761_v63 = vld [vmem:[%s7297_s14 + $0x18] sm:$0xff]  }
 0xb44   : > { %v1824_v26 = vpop.xlane.xlu0 %1823 }
 0xb45   : > { %v1825_v28 = vmul.f32 0.03125, %v1824_v26  ;;  %v1884_v26 = vld [vmem:[%s7295_s12 + $0x108] sm:$0xff] }
 0xb47   : > { %v1826_v29 = vadd.f32 1e-12, %v1825_v28  ;;  %v1896_v28 = vld [vmem:[%s7295_s12 + $0x168] sm:$0xff] }
 0xb49   : > { %5955 = vrsqrt.f32 %v1826_v29  ;;  %vm1829_vm3 = vcmp.eq.f32.partialorder %v1826_v29, inf  ;;  %v1832_v32 = vand.u32 2147483648, %v1826_v29  ;;  %vm1831_vm4 = vcmp.eq.f32.partialorder %v1826_v29, 0.0 }
 0xb53   : > { %v5956_v27 = vpop.eup %5955 }
 0xb54   : > { %v1828_v30 = vmul.f32 %v5956_v27, %v1826_v29  ;;  %v5079_v27 = vcombine.low %v1860_v17, %v1872_v18 }
 0xb56   : > { %v1830_v33 = vsel %vm1829_vm3, %v1826_v29, %v1828_v30  ;;  %v5077_v29 = vcombine.low %v1859_v15, %v1871_v16  ;;  %v5775_v15 = vld [vmem:[%s7297_s14 + $0x78] sm:$0xff]  }
 0xb57   : > { %v1833_v34 = vsel %vm1831_vm4, %v1832_v32, %v1830_v33  ;;  %v5104_v32 = vcombine.high %v1884_v26, %v1896_v28  ;;  %v1861_v33 = vld [vmem:[%s7295_s12 + $0x50] sm:$0xff]  ;;  %v5776_v16 = vld [vmem:[%s7297_s14 + $0xf8] sm:$0xff]  }
 0xb58   : > { %5957 = vrcp.f32 %v1833_v34  ;;  %v1873_v34 = vld [vmem:[%s7295_s12 + $0xb0] sm:$0xff] }
 0xb62   : > { %v5958_v35 = vpop.eup %5957 }
 0xb63   : > { %v1835_v38 = vmul.f32 %v5958_v35, %v1820_v61  ;;  %v5096_v61 = vcombine.high %v1880_v56, %v1892_v57  ;;  %v1862_v35 = vld [vmem:[%s7295_s12 + $0x58] sm:$0xff]  ;;  %v5753_v56 = vld [vmem:[%s7297_s14 + $0x8] sm:$0xff]  }
 0xb64   : > { %v5754_v57 = vld [vmem:[%s7297_s14 + $0x88] sm:$0xff]  }
 0xb65   : > { %v1842_v40 = vmul.f32 %v5059_v37, %v1835_v38  ;;  %v1874_v37 = vld [vmem:[%s7295_s12 + $0xb8] sm:$0xff] }
 0xb66   : > { %v5084_v41 = vcombine.high %v1862_v35, %v1874_v37  ;;  %v5083_v47 = vcombine.low %v1862_v35, %v1874_v37 }
 0xb67   : > { %v6357_v36 = vadd.f32 %v5060_v39, %v1842_v40  ;;  %v5103_v39 = vcombine.low %v1884_v26, %v1896_v28  ;;  %v5082_v40 = vcombine.high %v1861_v33, %v1873_v34 }
 0xb69   : > { %v6361_v44 = vpack.c.bf16 %v6357_v36, %v6357_v36 }
 0xb6b   : > { %5109 = vmatmul.mubr.msk.bf16.vlgmr.msra.gmra.mrb[16].mxu0 %vm599_vm1, %v6361_v44  ;;  %5110 = vmatmul.mubr.msk.bf16.vlgmr.msra.gmra.mrb[16].mxu1 %vm599_vm1, %v6361_v44 }
 0xb6c   : > { %2351 = vmatpush1.bf16.msra.mxu0 %v5065_v23  ;;  %2392 = vmatpush1.bf16.msra.mxu1 %v5067_v24  ;;  %v5080_v23 = vcombine.high %v1860_v17, %v1872_v18  ;;  %v1883_v24 = vld [vmem:[%s7295_s12 + $0x100] sm:$0xff]  ;;  %v5777_v17 = vld [vmem:[%s7297_s14 + $0x38] sm:$0xff]  }
 0xb6d   : > { %2352 = vmatprep.subr.bf16.mxu0 %v5090_v45  ;;  %2393 = vmatprep.subr.bf16.mxu1 %v5092_v46  ;;  %v5102_v30 = vcombine.high %v1883_v24, %v1895_v25  ;;  %v5101_v38 = vcombine.low %v1883_v24, %v1895_v25  ;;  %v1898_v45 = vld [vmem:[%s7295_s12 + $0x178] sm:$0xff]  ;;  %v5081_v46 = vcombine.low %v1861_v33, %v1873_v34  ;;  %v6603_v24 = vld [vmem:[%s7296_s13 + $0x8] sm:$0xff] }
 0xb6e   : > { %2382 = vmatprep.mubr.bf16.mxu0 %v6026_v20  ;;  %2423 = vmatprep.mubr.bf16.mxu1 %v6026_v20  ;;  %v5108_v49 = vcombine.high %v1886_v9, %v1898_v45  ;;  %v5778_v18 = vld [vmem:[%s7297_s14 + $0xb8] sm:$0xff]  }
 0xb70   : > { %2353 = vmatpush1.bf16.msra.mxu0 %v5089_v51  ;;  %2394 = vmatpush1.bf16.msra.mxu1 %v5091_v31  ;;  %v5107_v51 = vcombine.low %v1886_v9, %v1898_v45  ;;  %v5747_v31 = vld [vmem:[%s7297_s14 + $0x40] sm:$0xff]  }
 0xb71   : > { %2432 = vmatprep.subr.bf16.mxu0 %v5070_v52  ;;  %2473 = vmatprep.subr.bf16.mxu1 %v5072_v53  ;;  %v5748_v52 = vld [vmem:[%s7297_s14 + $0xc0] sm:$0xff]  }
 0xb72   : > { %v5749_v53 = vld [vmem:[%s7297_s14] sm:$0xff]  }
 0xb73   : > { %5111 = vmatmul.mubr.msk.bf16.vlgmr.msra.gmra.mrb[20].mxu0 %vm599_vm1, %v6361_v44  ;;  %5112 = vmatmul.mubr.msk.bf16.vlgmr.msra.gmra.mrb[20].mxu1 %vm599_vm1, %v6361_v44 }
 0xb74   : > { %2433 = vmatpush1.bf16.msra.mxu0 %v5069_v58  ;;  %2474 = vmatpush1.bf16.msra.mxu1 %v5071_v59  ;;  %v5755_v58 = vld [vmem:[%s7297_s14 + $0x50] sm:$0xff]  }
 0xb75   : > { %2434 = vmatprep.subr.bf16.mxu0 %v5094_v60  ;;  %2475 = vmatprep.subr.bf16.mxu1 %v5096_v61  ;;  %v5757_v59 = vld [vmem:[%s7297_s14 + $0x10] sm:$0xff]   ;;  %v5759_v61 = vld [vmem:[%s7297_s14 + $0x58] sm:$0xff]  }
 0xb76   : > { %2464 = vmatprep.mubr.bf16.mxu0 %v6026_v20  ;;  %2505 = vmatprep.mubr.bf16.mxu1 %v6026_v20  ;;  %v5758_v60 = vld [vmem:[%s7297_s14 + $0x90] sm:$0xff]  }
 0xb78   : > { %2435 = vmatpush1.bf16.msra.mxu0 %v5093_v2  ;;  %2476 = vmatpush1.bf16.msra.mxu1 %v5095_v3  ;;  %v5764_v2 = vld [vmem:[%s7297_s14 + $0xe0] sm:$0xff]  }
 0xb79   : > { %2514 = vmatprep.subr.bf16.mxu0 %v5074_v4  ;;  %2555 = vmatprep.subr.bf16.mxu1 %v5076_v5  ;;  %v5765_v3 = vld [vmem:[%s7297_s14 + $0x20] sm:$0xff]   ;;  %v5767_v5 = vld [vmem:[%s7297_s14 + $0x68] sm:$0xff]  }
 0xb7a   : > { %v5766_v4 = vld [vmem:[%s7297_s14 + $0xa0] sm:$0xff]  }
 0xb7b   : > { %5113 = vmatmul.mubr.msk.bf16.vlgmr.msra.gmra.mrb[24].mxu0 %vm599_vm1, %v6361_v44  ;;  %5114 = vmatmul.mubr.msk.bf16.vlgmr.msra.gmra.mrb[24].mxu1 %vm599_vm1, %v6361_v44 }
 0xb7c   : > { %2515 = vmatpush1.bf16.msra.mxu0 %v5073_v11  ;;  %2556 = vmatpush1.bf16.msra.mxu1 %v5075_v12  ;;  %v5772_v11 = vld [vmem:[%s7297_s14 + $0xf0] sm:$0xff]  }
 0xb7d   : > { %2516 = vmatprep.subr.bf16.mxu0 %v5098_v13  ;;  %2557 = vmatprep.subr.bf16.mxu1 %v5100_v14  ;;  %v5773_v12 = vld [vmem:[%s7297_s14 + $0x30] sm:$0xff]   ;;  %v1905_v14 = vlaneseq }
 0xb7e   : > { %2546 = vmatprep.mubr.bf16.mxu0 %v6026_v20  ;;  %2587 = vmatprep.mubr.bf16.mxu1 %v6026_v20  ;;  %v5774_v13 = vld [vmem:[%s7297_s14 + $0xb0] sm:$0xff]  }
 0xb80   : > { %2517 = vmatpush1.bf16.msra.mxu0 %v5097_v19  ;;  %2558 = vmatpush1.bf16.msra.mxu1 %v5099_v21  ;;  %v6589_v19 = vshrl.u32 %v1905_v14, 7 }
 0xb81   : > { %2596 = vmatprep.subr.bf16.mxu0 %v5078_v22  ;;  %2637 = vmatprep.subr.bf16.mxu1 %v5080_v23  ;;  %v5779_v22 = vld [vmem:[%s7297_s14 + $0x140] sm:$0xff]  }
 0xb82   : > { %v6592_v21 = vsub.s32 6, %v6589_v19  ;;  %v5780_v23 = vld [vmem:[%s7297_s14 + $0x1c0] sm:$0xff]   ;;  %v6608_v26 = vsub.s32 0, %v6589_v19  ;;  %v6611_v28 = vsub.s32 2, %v6589_v19 }
 0xb83   : > { %5115 = vmatmul.mubr.msk.bf16.vlgmr.msra.gmra.mrb[28].mxu0 %vm599_vm1, %v6361_v44  ;;  %5116 = vmatmul.mubr.msk.bf16.vlgmr.msra.gmra.mrb[28].mxu1 %vm599_vm1, %v6361_v44 }
 0xb84   : > { %2597 = vmatpush1.bf16.msra.mxu0 %v5077_v29  ;;  %2638 = vmatpush1.bf16.msra.mxu1 %v5079_v27  ;;  %v1964_v25 = vrot.slane %v6603_v24, %v6592_v21  ;;  %v6616_v29 = vld [vmem:[%s7296_s13] sm:$0xff]  ;;  %v6619_v27 = vsub.s32 1, %v6589_v19 }
 0xb85   : > { %2598 = vmatprep.subr.bf16.mxu0 %v5102_v30  ;;  %2639 = vmatprep.subr.bf16.mxu1 %v5104_v32  ;;  %v6622_v30 = vsub.s32 3, %v6589_v19  ;;  %v1908_v32 = vrot.slane %v6616_v29, %v6608_v26  ;;  %v1916_v33 = vrot.slane %v6616_v29, %v6611_v28 }
 0xb86   : > { %2628 = vmatprep.mubr.bf16.mxu0 %v6026_v20  ;;  %2669 = vmatprep.mubr.bf16.mxu1 %v6026_v20  ;;  %v1912_v34 = vrot.slane %v6616_v29, %v6619_v27 }
 0xb87   : > { %v1920_v35 = vrot.slane %v6616_v29, %v6622_v30 }
 0xb88   : > { %2599 = vmatpush1.bf16.msra.mxu0 %v5101_v38  ;;  %2640 = vmatpush1.bf16.msra.mxu1 %v5103_v39 }
 0xb89   : > { %2678 = vmatprep.subr.bf16.mxu0 %v5082_v40  ;;  %2719 = vmatprep.subr.bf16.mxu1 %v5084_v41 }
 0xb8b   : > { %5117 = vmatmul.mubr.msk.bf16.vlgmr.msra.gmra.mrb[32].mxu0 %vm599_vm1, %v6361_v44  ;;  %5118 = vmatmul.mubr.msk.bf16.vlgmr.msra.gmra.mrb[32].mxu1 %vm599_vm1, %v6361_v44 }
 0xb8c   : > { %2679 = vmatpush1.bf16.msra.mxu0 %v5081_v46  ;;  %2720 = vmatpush1.bf16.msra.mxu1 %v5083_v47  ;;  %v6633_v47 = vsub.s32 5, %v6589_v19 }
 0xb8d   : > { %2680 = vmatprep.subr.bf16.mxu0 %v5106_v48  ;;  %2721 = vmatprep.subr.bf16.mxu1 %v5108_v49  ;;  %v6636_v48 = vsub.s32 7, %v6589_v19 }
 0xb8e   : > { %2710 = vmatprep.mubr.bf16.mxu0 %v6026_v20  ;;  %2751 = vmatprep.mubr.bf16.mxu1 %v6026_v20  ;;  %v5752_v20 = vld [vmem:[%s7297_s14 + $0xc8] sm:$0xff]  }
 0xb90   : > { %2681 = vmatpush1.bf16.msra.mxu0 %v5105_v50  ;;  %2722 = vmatpush1.bf16.msra.mxu1 %v5107_v51 }
 0xb91   : > { %5357 = vmatprep.subr.bf16.mxu0 %v5747_v31  ;;  %5379 = vmatprep.subr.bf16.mxu1 %v5748_v52 }
 0xb93   : > { %5119 = vmatmul.mubr.msk.bf16.vlgmr.msra.gmra.mrb[36].mxu0 %vm599_vm1, %v6361_v44  ;;  %5120 = vmatmul.mubr.msk.bf16.vlgmr.msra.gmra.mrb[36].mxu1 %vm599_vm1, %v6361_v44  ;;  %v5756_v44 = vld [vmem:[%s7297_s14 + $0xd0] sm:$0xff]  }
 0xb94   : > { %5358 = vmatpush3.bf16.msra.mxu0 %v5749_v53  ;;  %5380 = vmatpush3.bf16.msra.mxu1 %v5750_v54  ;;  %v1928_v54 = vrot.slane %v6616_v29, %v6633_v47 }
 0xb95   : > { %5359 = vmatprep.subr.bf16.mxu0 %v5751_v55  ;;  %5381 = vmatprep.subr.bf16.mxu1 %v5752_v20  ;;  %v1936_v55 = vrot.slane %v6616_v29, %v6636_v48 }
 0xb98   : > { %5360 = vmatpush3.bf16.msra.mxu0 %v5753_v56  ;;  %5382 = vmatpush3.bf16.msra.mxu1 %v5754_v57 }
 0xb99   : > { %5361 = vmatprep.subr.bf16.mxu0 %v5755_v58  ;;  %5383 = vmatprep.subr.bf16.mxu1 %v5756_v44 }
 0xb9c   : > { %5362 = vmatpush3.bf16.msra.mxu0 %v5757_v59  ;;  %5384 = vmatpush3.bf16.msra.mxu1 %v5758_v60 }
 0xb9d   : > { %5363 = vmatprep.subr.bf16.mxu0 %v5759_v61  ;;  %5385 = vmatprep.subr.bf16.mxu1 %v5760_v62 }
 0xba0   : > { %5364 = vmatpush3.bf16.msra.mxu0 %v5761_v63  ;;  %5386 = vmatpush3.bf16.msra.mxu1 %v5762_v0 }
 0xba1   : > { %5365 = vmatprep.subr.bf16.mxu0 %v5763_v1  ;;  %5387 = vmatprep.subr.bf16.mxu1 %v5764_v2  ;;  %v1948_v2 = vrot.slane %v6603_v24, %v6611_v28 }
 0xba4   : > { %5366 = vmatpush3.bf16.msra.mxu0 %v5765_v3  ;;  %5388 = vmatpush3.bf16.msra.mxu1 %v5766_v4 }
 0xba5   : > { %5367 = vmatprep.subr.bf16.mxu0 %v5767_v5  ;;  %5389 = vmatprep.subr.bf16.mxu1 %v5768_v6 }
 0xba8   : > { %5368 = vmatpush3.bf16.msra.mxu0 %v5769_v7  ;;  %5390 = vmatpush3.bf16.msra.mxu1 %v5770_v8 }
 0xba9   : > { %5369 = vmatprep.subr.bf16.mxu0 %v5771_v10  ;;  %5391 = vmatprep.subr.bf16.mxu1 %v5772_v11 }
 0xbac   : > { %5370 = vmatpush3.bf16.msra.mxu0 %v5773_v12  ;;  %5392 = vmatpush3.bf16.msra.mxu1 %v5774_v13 }
 0xbad   : > { %5371 = vmatprep.subr.bf16.mxu0 %v5775_v15  ;;  %5393 = vmatprep.subr.bf16.mxu1 %v5776_v16 }
 0xbb0   : > { %5372 = vmatpush3.bf16.msra.mxu0 %v5777_v17  ;;  %5394 = vmatpush3.bf16.msra.mxu1 %v5778_v18 }
 0xbb1   : > { %5401 = vmatprep.subr.bf16.mxu0 %v5779_v22  ;;  %5423 = vmatprep.subr.bf16.mxu1 %v5780_v23 }
 0xc3e   : > { %v2302_v37 = vpop.f32.mrb[16].mxu0  ;;  %v2343_v38 = vpop.f32.mrb[16].mxu1 }
 0xc3f   : > { %v2303_v39 = vadd.f32 %v2302_v37, %v1908_v32  ;;  %v2344_v40 = vadd.f32 %v2343_v38, %v1916_v33  ;;  %v2304_v41 = vpop.f32.mrb[17].mxu0  ;;  %v2345_v42 = vpop.f32.mrb[17].mxu1  ;;  %v6661_v32 = vsub.s32 4, %v6589_v19  ;;  %v1944_v19 = vrot.slane %v6603_v24, %v6619_v27 }
 0xc40   : > { %v2305_v43 = vadd.f32 %v2304_v41, %v1912_v34  ;;  %v2346_v9 = vadd.f32 %v2345_v42, %v1920_v35  ;;  %v2306_v45 = vpop.f32.mrb[18].mxu0  ;;  %v2347_v46 = vpop.f32.mrb[18].mxu1 }
 0xc41   : > { %v2785_v49 = vmul.f32 0.70710677, %v2303_v39  ;;  %v2787_v50 = vmul.f32 0.70710677, %v2344_v40  ;;  %v2307_v52 = vpop.f32.mrb[19].mxu0  ;;  %v2348_v53 = vpop.f32.mrb[19].mxu1  ;;  %v1956_v42 = vrot.slane %v6603_v24, %v6661_v32 }
 0xc42   : > { %v2786_v51 = vmul.f32 0.70710677, %v2305_v43  ;;  %v2788_v31 = vmul.f32 0.70710677, %v2346_v9  ;;  %v2760_v18 = vmul.f32 0.5, %v2303_v39  ;;  %v2762_v22 = vmul.f32 0.5, %v2344_v40 }
 0xc43   : > { %5959 = verf.f32 %v2785_v49  ;;  %v2761_v35 = vmul.f32 0.5, %v2305_v43  ;;  %v2763_v37 = vmul.f32 0.5, %v2346_v9  ;;  %v1924_v49 = vrot.slane %v6616_v29, %v6661_v32 }
 0xc44   : > { %5961 = verf.f32 %v2787_v50  ;;  %v1932_v39 = vrot.slane %v6616_v29, %v6592_v21 }
 0xc45   : > { %5963 = verf.f32 %v2786_v51  ;;  %v5781_v51 = vld [vmem:[%s7297_s14 + $0x100] sm:$0xff]  }
 0xc46   : > { %5965 = verf.f32 %v2788_v31  ;;  %v6642_v20 = vpop.f32.mrb[20].mxu0  ;;  %v6644_v56 = vpop.f32.mrb[20].mxu1  ;;  %v5782_v31 = vld [vmem:[%s7297_s14 + $0x180] sm:$0xff]  }
 0xc47   : > { %v2386_v57 = vpop.f32.mrb[21].mxu0  ;;  %v2427_v58 = vpop.f32.mrb[21].mxu1 }
 0xc48   : > { %v6646_v44 = vadd.f32 %v2386_v57, %v1928_v54  ;;  %v6648_v59 = vadd.f32 %v2427_v58, %v1936_v55  ;;  %v2388_v60 = vpop.f32.mrb[22].mxu0  ;;  %v2429_v61 = vpop.f32.mrb[22].mxu1 }
 0xc49   : > { %v2389_v0 = vpop.f32.mrb[23].mxu0  ;;  %v2430_v1 = vpop.f32.mrb[23].mxu1  ;;  %v5783_v60 = vld [vmem:[%s7297_s14 + $0x148] sm:$0xff]  }
 0xc4a   : > { %v2790_v62 = vmul.f32 0.70710677, %v6646_v44  ;;  %v2792_v63 = vmul.f32 0.70710677, %v6648_v59  ;;  %v5784_v61 = vld [vmem:[%s7297_s14 + $0x1c8] sm:$0xff]   ;;  %v1952_v0 = vrot.slane %v6603_v24, %v6622_v30 }
 0xc4c   : > { %5967 = verf.f32 %v2790_v62 }
 0xc4d   : > { %v5960_v3 = vpop.eup %5959  ;;  %5969 = verf.f32 %v2792_v63 }
 0xc4e   : > { %v5962_v4 = vpop.eup %5961  ;;  %v6654_v5 = vpop.f32.mrb[24].mxu0  ;;  %v2833_v8 = vadd.f32 1.0, %v5960_v3  ;;  %v6702_v3 = vadd.f32 %v6642_v20, %v1924_v49  ;;  %v5786_v20 = vld [vmem:[%s7297_s14 + $0x188] sm:$0xff]   ;;  %v5792_v49 = vld [vmem:[%s7297_s14 + $0x1d8] sm:$0xff]  }
 0xc4f   : > { %v2507_v6 = vpop.f32.mrb[24].mxu1  ;;  %v5964_v7 = vpop.eup %5963  ;;  %v2835_v10 = vadd.f32 1.0, %v5962_v4 }
 0xc50   : > { %v6656_v11 = vadd.f32 %v2507_v6, %v1948_v2  ;;  %v2468_v12 = vpop.f32.mrb[25].mxu0  ;;  %v6658_v13 = vpop.f32.mrb[25].mxu1  ;;  %v2834_v15 = vadd.f32 1.0, %v5964_v7  ;;  %v2857_v38 = vmul.f32 %v2833_v8, %v2760_v18  ;;  %v6699_v2 = vld [vmem:[%s7296_s13 + $0x10] sm:$0xff]  ;;  %v6705_v8 = vadd.f32 %v6644_v56, %v1932_v39 }
 0xc51   : > { %v5966_v14 = vpop.eup %5965  ;;  %v2470_v16 = vpop.f32.mrb[26].mxu0  ;;  %v2859_v41 = vmul.f32 %v2835_v10, %v2762_v22  ;;  %v2765_v10 = vmul.f32 0.5, %v6646_v44  ;;  %v5787_v56 = vld [vmem:[%s7297_s14 + $0x150] sm:$0xff]   ;;  %v6728_v18 = vadd.f32 %v6658_v13, %v1952_v0 }
 0xc52   : > { %v2511_v17 = vpop.f32.mrb[26].mxu1  ;;  %v2836_v23 = vadd.f32 1.0, %v5966_v14  ;;  %v2471_v33 = vpop.f32.mrb[27].mxu0  ;;  %v2858_v45 = vmul.f32 %v2834_v15, %v2761_v35  ;;  %v2881_v53 = vpack.c.bf16 %v2857_v38, %v2857_v38  ;;  %v2767_v14 = vmul.f32 0.5, %v6648_v59  ;;  %v5785_v15 = vld [vmem:[%s7297_s14 + $0x108] sm:$0xff]   ;;  %v5788_v44 = vld [vmem:[%s7297_s14 + $0x1d0] sm:$0xff]  }
 0xc53   : > { %v2512_v34 = vpop.f32.mrb[27].mxu1  ;;  %v2883_v54 = vpack.c.bf16 %v2859_v41, %v2859_v41  ;;  %v6715_v16 = vadd.f32 %v2468_v12, %v1944_v19  ;;  %v1980_v59 = vrot.slane %v6699_v2, %v6611_v28  ;;  %v1976_v17 = vrot.slane %v6699_v2, %v6619_v27  ;;  %v5789_v27 = vld [vmem:[%s7297_s14 + $0x110] sm:$0xff]  }
 0xc54   : > { %v2860_v46 = vmul.f32 %v2836_v23, %v2763_v37  ;;  %v2882_v40 = vpack.c.bf16 %v2858_v45, %v2858_v45  ;;  %v1984_v23 = vrot.slane %v6699_v2, %v6622_v30  ;;  %v2789_v33 = vmul.f32 0.70710677, %v6702_v3  ;;  %v5790_v13 = vld [vmem:[%s7297_s14 + $0x190] sm:$0xff]  }
 0xc55   : > { %v2791_v34 = vmul.f32 0.70710677, %v6705_v8  ;;  %v2794_v30 = vmul.f32 0.70710677, %v6715_v16  ;;  %v2796_v39 = vmul.f32 0.70710677, %v6728_v18 }
 0xc56   : > { %v2884_v50 = vpack.c.bf16 %v2860_v46, %v2860_v46  ;;  %v2548_v43 = vpop.f32.mrb[28].mxu0  ;;  %v2589_v9 = vpop.f32.mrb[28].mxu1  ;;  %4480 = vmatprep.mubr.bf16.mxu0 %v2882_v40  ;;  %v5791_v46 = vld [vmem:[%s7297_s14 + $0x158] sm:$0xff]   ;;  %5971 = verf.f32 %v2789_v33  ;;  %v5803_v33 = vld [vmem:[%s7297_s14 + $0x170] sm:$0xff]  }
 0xc57   : > { %v5968_v52 = vpop.eup %5967  ;;  %v6677_v55 = vadd.f32 %v2548_v43, %v1956_v42  ;;  %v6682_v29 = vadd.f32 %v2589_v9, %v1964_v25  ;;  %v6684_v57 = vpop.f32.mrb[29].mxu0  ;;  %4481 = vmatmul.mubr.bf16.vlgmr.msra.gmra.mrb[40].mxu0 %v2881_v53  ;;  %5973 = verf.f32 %v2791_v34  ;;  %v5795_v53 = vld [vmem:[%s7297_s14 + $0x160] sm:$0xff]   ;;  %v5804_v34 = vld [vmem:[%s7297_s14 + $0x1f0] sm:$0xff]  }
 0xc58   : > { %v6686_v58 = vpop.f32.mrb[29].mxu1  ;;  %v5970_v62 = vpop.eup %5969  ;;  %v2838_v63 = vadd.f32 1.0, %v5968_v52  ;;  %4520 = vmatprep.mubr.bf16.mxu1 %v2884_v50  ;;  %5402 = vmatpush3.bf16.msra.mxu0 %v5781_v51  ;;  %v5794_v52 = vld [vmem:[%s7297_s14 + $0x198] sm:$0xff]   ;;  %5975 = verf.f32 %v2794_v30 }
 0xc59   : > { %v2552_v25 = vpop.f32.mrb[30].mxu0  ;;  %v2593_v1 = vpop.f32.mrb[30].mxu1  ;;  %v2840_v4 = vadd.f32 1.0, %v5970_v62  ;;  %4521 = vmatmul.mubr.bf16.vlgmr.msra.gmra.mrb[40].mxu1 %v2883_v54  ;;  %5403 = vmatprep.subr.bf16.mxu0 %v5783_v60  ;;  %v5796_v54 = vld [vmem:[%s7297_s14 + $0x1e0] sm:$0xff]   ;;  %v1988_v60 = vrot.slane %v6699_v2, %v6661_v32  ;;  %5977 = verf.f32 %v2796_v39  ;;  %v1992_v62 = vrot.slane %v6699_v2, %v6633_v47 }
 0xc5a   : > { %v2553_v6 = vpop.f32.mrb[31].mxu0  ;;  %v2594_v7 = vpop.f32.mrb[31].mxu1  ;;  %5424 = vmatpush3.bf16.msra.mxu1 %v5782_v31  ;;  %v2862_v12 = vmul.f32 %v2838_v63, %v2765_v10  ;;  %v5793_v31 = vld [vmem:[%s7297_s14 + $0x118] sm:$0xff]   ;;  %v2000_v63 = vrot.slane %v6699_v2, %v6636_v48  ;;  %v5797_v1 = vld [vmem:[%s7297_s14 + $0x120] sm:$0xff]   ;;  %v5799_v10 = vld [vmem:[%s7297_s14 + $0x168] sm:$0xff]   ;;  %v2764_v39 = vmul.f32 0.5, %v6702_v3 }
 0xc5b   : > { %5425 = vmatprep.subr.bf16.mxu1 %v5784_v61  ;;  %v2864_v22 = vmul.f32 %v2840_v4, %v2767_v14  ;;  %v1996_v61 = vrot.slane %v6699_v2, %v6592_v21  ;;  %v5798_v32 = vld [vmem:[%s7297_s14 + $0x1a0] sm:$0xff]   ;;  %v5800_v14 = vld [vmem:[%s7297_s14 + $0x1e8] sm:$0xff]  }
 0xc5c   : > { %5404 = vmatpush3.bf16.msra.mxu0 %v5785_v15  ;;  %v2886_v35 = vpack.c.bf16 %v2862_v12, %v2862_v12  ;;  %v5801_v12 = vld [vmem:[%s7297_s14 + $0x128] sm:$0xff]   ;;  %v5811_v3 = vld [vmem:[%s7297_s14 + $0x240] sm:$0xff]  }
 0xc5d   : > { %v2888_v37 = vpack.c.bf16 %v2864_v22, %v2864_v22  ;;  %5405 = vmatprep.subr.bf16.mxu0 %v5787_v56  ;;  %v5802_v22 = vld [vmem:[%s7297_s14 + $0x1a8] sm:$0xff]  }
 0xc5e   : > { %5426 = vmatpush3.bf16.msra.mxu1 %v5786_v20  ;;  %v6734_v28 = vpop.f32.mrb[32].mxu0  ;;  %v2671_v38 = vpop.f32.mrb[32].mxu1  ;;  %4560 = vmatprep.mubr.bf16.mxu0 %v2886_v35 }
 0xc5f   : > { %5427 = vmatprep.subr.bf16.mxu1 %v5788_v44  ;;  %v6743_v41 = vadd.f32 %v2671_v38, %v1980_v59  ;;  %v2632_v42 = vpop.f32.mrb[33].mxu0  ;;  %v2673_v45 = vpop.f32.mrb[33].mxu1  ;;  %4600 = vmatprep.mubr.bf16.mxu1 %v2888_v37 }
 0xc60   : > { %v6752_v19 = vadd.f32 %v2632_v42, %v1976_v17  ;;  %v6754_v40 = vadd.f32 %v2673_v45, %v1984_v23  ;;  %v2634_v50 = vpop.f32.mrb[34].mxu0  ;;  %v2675_v43 = vpop.f32.mrb[34].mxu1  ;;  %5406 = vmatpush3.bf16.msra.mxu0 %v5789_v27  ;;  %v5805_v27 = vld [vmem:[%s7297_s14 + $0x130] sm:$0xff]   ;;  %v5807_v45 = vld [vmem:[%s7297_s14 + $0x178] sm:$0xff]  }
 0xc61   : > { %v2635_v9 = vpop.f32.mrb[35].mxu0  ;;  %v2676_v51 = vpop.f32.mrb[35].mxu1  ;;  %5407 = vmatprep.subr.bf16.mxu0 %v5791_v46  ;;  %v5808_v46 = vld [vmem:[%s7297_s14 + $0x1f8] sm:$0xff]   ;;  %v2766_v50 = vmul.f32 0.5, %v6705_v8  ;;  %v5812_v8 = vld [vmem:[%s7297_s14 + $0x2c0] sm:$0xff]  }
 0xc62   : > { %5428 = vmatpush3.bf16.msra.mxu1 %v5790_v13  ;;  %v5972_v23 = vpop.eup %5971  ;;  %v5806_v13 = vld [vmem:[%s7297_s14 + $0x1b0] sm:$0xff]   ;;  %v2769_v9 = vmul.f32 0.5, %v6715_v16  ;;  %v5809_v51 = vld [vmem:[%s7297_s14 + $0x138] sm:$0xff]  }
 0xc63   : > { %5429 = vmatprep.subr.bf16.mxu1 %v5792_v49  ;;  %v5974_v35 = vpop.eup %5973  ;;  %v2837_v30 = vadd.f32 1.0, %v5972_v23  ;;  %v5824_v23 = vld [vmem:[%s7297_s14 + $0x2d8] sm:$0xff]  }
 0xc64   : > { %5408 = vmatpush3.bf16.msra.mxu0 %v5793_v31  ;;  %v5976_v37 = vpop.eup %5975  ;;  %v2839_v42 = vadd.f32 1.0, %v5974_v35  ;;  %v5810_v31 = vld [vmem:[%s7297_s14 + $0x1b8] sm:$0xff]  }
 0xc65   : > { %5409 = vmatprep.subr.bf16.mxu0 %v5795_v53  ;;  %v5978_v38 = vpop.eup %5977  ;;  %v2842_v49 = vadd.f32 1.0, %v5976_v37  ;;  %v5826_v35 = vld [vmem:[%s7297_s14 + $0x298] sm:$0xff]   ;;  %v5827_v37 = vld [vmem:[%s7297_s14 + $0x260] sm:$0xff]  }
 0xc66   : > { %5430 = vmatpush3.bf16.msra.mxu1 %v5794_v52  ;;  %v2712_v0 = vpop.f32.mrb[36].mxu0  ;;  %v2753_v25 = vpop.f32.mrb[36].mxu1  ;;  %v2844_v43 = vadd.f32 1.0, %v5978_v38  ;;  %v2861_v52 = vmul.f32 %v2837_v30, %v2764_v39  ;;  %v2863_v53 = vmul.f32 %v2839_v42, %v2766_v50  ;;  %v5828_v38 = vld [vmem:[%s7297_s14 + $0x2e0] sm:$0xff]   ;;  %v5831_v30 = vld [vmem:[%s7297_s14 + $0x268] sm:$0xff]   ;;  %v5836_v50 = vld [vmem:[%s7297_s14 + $0x2f0] sm:$0xff]  }
 0xc67   : > { %5431 = vmatprep.subr.bf16.mxu1 %v5796_v54  ;;  %v6782_v21 = vadd.f32 %v2712_v0, %v1988_v60  ;;  %v6784_v4 = vadd.f32 %v2753_v25, %v1996_v61  ;;  %v2714_v6 = vpop.f32.mrb[37].mxu0  ;;  %v2755_v7 = vpop.f32.mrb[37].mxu1  ;;  %v2771_v54 = vmul.f32 0.5, %v6728_v18  ;;  %v2866_v16 = vmul.f32 %v2842_v49, %v2769_v9  ;;  %v5813_v18 = vld [vmem:[%s7297_s14 + $0x200] sm:$0xff]   ;;  %v5832_v42 = vld [vmem:[%s7297_s14 + $0x2e8] sm:$0xff]   ;;  %v5835_v49 = vld [vmem:[%s7297_s14 + $0x270] sm:$0xff]  }
 0xc68   : > { %v6792_v15 = vadd.f32 %v2714_v6, %v1992_v62  ;;  %v6794_v20 = vadd.f32 %v2755_v7, %v2000_v63  ;;  %v2716_v56 = vpop.f32.mrb[38].mxu0  ;;  %v2757_v44 = vpop.f32.mrb[38].mxu1  ;;  %5410 = vmatpush3.bf16.msra.mxu0 %v5797_v1  ;;  %v1940_v61 = vrot.slane %v6603_v24, %v6608_v26  ;;  %v2885_v62 = vpack.c.bf16 %v2861_v52, %v2861_v52  ;;  %v5814_v0 = vld [vmem:[%s7297_s14 + $0x280] sm:$0xff]   ;;  %v5816_v6 = vld [vmem:[%s7297_s14 + $0x2c8] sm:$0xff]  }
 0xc69   : > { %v2717_v59 = vpop.f32.mrb[39].mxu0  ;;  %v2758_v17 = vpop.f32.mrb[39].mxu1  ;;  %5411 = vmatprep.subr.bf16.mxu0 %v5799_v10  ;;  %v2868_v60 = vmul.f32 %v2844_v43, %v2771_v54  ;;  %v2887_v63 = vpack.c.bf16 %v2863_v53, %v2863_v53  ;;  %v1960_v25 = vrot.slane %v6603_v24, %v6633_v47  ;;  %v2890_v1 = vpack.c.bf16 %v2866_v16, %v2866_v16  ;;  %v5817_v47 = vld [vmem:[%s7297_s14 + $0x208] sm:$0xff]   ;;  %v5838_v53 = vld [vmem:[%s7297_s14 + $0x2b0] sm:$0xff]   ;;  %v5839_v54 = vld [vmem:[%s7297_s14 + $0x278] sm:$0xff]  }
 0xc6a   : > { %5432 = vmatpush3.bf16.msra.mxu1 %v5798_v32  ;;  %v5815_v32 = vld [vmem:[%s7297_s14 + $0x248] sm:$0xff]   ;;  %v1968_v7 = vrot.slane %v6603_v24, %v6636_v48  ;;  %v5819_v24 = vld [vmem:[%s7297_s14 + $0x250] sm:$0xff]  }
 0xc6b   : > { %5433 = vmatprep.subr.bf16.mxu1 %v5800_v14  ;;  %v2892_v10 = vpack.c.bf16 %v2868_v60, %v2868_v60  ;;  %v6855_v14 = vadd.f32 %v6654_v5, %v1940_v61  ;;  %v5818_v56 = vld [vmem:[%s7297_s14 + $0x288] sm:$0xff]   ;;  %v6867_v48 = vadd.f32 %v6684_v57, %v1960_v25  ;;  %v5820_v5 = vld [vmem:[%s7297_s14 + $0x2d0] sm:$0xff]   ;;  %v2770_v61 = vmul.f32 0.5, %v6656_v11  ;;  %v5842_v25 = vld [vmem:[%s7297_s14 + $0x2b8] sm:$0xff]  }
 0xc6c   : > { %5412 = vmatpush3.bf16.msra.mxu0 %v5801_v12  ;;  %v6873_v44 = vadd.f32 %v6686_v58, %v1968_v7  ;;  %v5821_v17 = vld [vmem:[%s7297_s14 + $0x210] sm:$0xff]   ;;  %v2795_v12 = vmul.f32 0.70710677, %v6656_v11  ;;  %v5823_v58 = vld [vmem:[%s7297_s14 + $0x258] sm:$0xff]  }
 0xc6d   : > { %5413 = vmatprep.subr.bf16.mxu0 %v5803_v33  ;;  %v2793_v59 = vmul.f32 0.70710677, %v6855_v14  ;;  %v5822_v57 = vld [vmem:[%s7297_s14 + $0x290] sm:$0xff]   ;;  %v2768_v16 = vmul.f32 0.5, %v6855_v14 }
 0xc6e   : > { %5434 = vmatpush3.bf16.msra.mxu1 %v5802_v22  ;;  %v2798_v22 = vmul.f32 0.70710677, %v6867_v48  ;;  %v2800_v33 = vmul.f32 0.70710677, %v6873_v44 }
 0xc6f   : > { %5435 = vmatprep.subr.bf16.mxu1 %v5804_v34  ;;  %5979 = verf.f32 %v2793_v59  ;;  %v5825_v34 = vld [vmem:[%s7297_s14 + $0x218] sm:$0xff]  }
 0xc70   : > { %5414 = vmatpush3.bf16.msra.mxu0 %v5805_v27  ;;  %5981 = verf.f32 %v2795_v12  ;;  %v5829_v27 = vld [vmem:[%s7297_s14 + $0x220] sm:$0xff]   ;;  %v5850_v12 = vld [vmem:[%s7297_s14 + $0x388] sm:$0xff]  }
 0xc71   : > { %5415 = vmatprep.subr.bf16.mxu0 %v5807_v45  ;;  %5983 = verf.f32 %v2798_v22  ;;  %v5833_v45 = vld [vmem:[%s7297_s14 + $0x228] sm:$0xff]   ;;  %v2797_v22 = vmul.f32 0.70710677, %v6677_v55 }
 0xc72   : > { %5436 = vmatpush3.bf16.msra.mxu1 %v5806_v13  ;;  %5985 = verf.f32 %v2800_v33  ;;  %v5830_v13 = vld [vmem:[%s7297_s14 + $0x2a0] sm:$0xff]   ;;  %v2799_v33 = vmul.f32 0.70710677, %v6682_v29 }
 0xc73   : > { %5437 = vmatprep.subr.bf16.mxu1 %v5808_v46  ;;  %v5834_v46 = vld [vmem:[%s7297_s14 + $0x2a8] sm:$0xff]   ;;  %5987 = verf.f32 %v2797_v22 }
 0xc74   : > { %5416 = vmatpush3.bf16.msra.mxu0 %v5809_v51  ;;  %v5837_v51 = vld [vmem:[%s7297_s14 + $0x230] sm:$0xff]   ;;  %5989 = verf.f32 %v2799_v33  ;;  %v2803_v33 = vmul.f32 0.70710677, %v6743_v41 }
 0xc75   : > { %5445 = vmatprep.subr.bf16.mxu0 %v5811_v3 }
 0xc76   : > { %5438 = vmatpush3.bf16.msra.mxu1 %v5810_v31 }
 0xc77   : > { %5467 = vmatprep.subr.bf16.mxu1 %v5812_v8  ;;  %4561 = vmatmul.mubr.bf16.vlgmr.msra.gmra.mrb[44].mxu0 %v2885_v62  ;;  %v5840_v8 = vld [vmem:[%s7297_s14 + $0x2f8] sm:$0xff]  }
 0xc78   : > { %5446 = vmatpush3.bf16.msra.mxu0 %v5813_v18  ;;  %4640 = vmatprep.mubr.bf16.mxu0 %v2890_v1  ;;  %v5841_v62 = vld [vmem:[%s7297_s14 + $0x238] sm:$0xff]   ;;  %v5843_v1 = vld [vmem:[%s7297_s14 + $0x340] sm:$0xff]  }
 0xc79   : > { %4601 = vmatmul.mubr.bf16.vlgmr.msra.gmra.mrb[44].mxu1 %v2887_v63  ;;  %5447 = vmatprep.subr.bf16.mxu0 %v5815_v32  ;;  %v5980_v39 = vpop.eup %5979  ;;  %v2775_v32 = vmul.f32 0.5, %v6873_v44  ;;  %v5848_v44 = vld [vmem:[%s7297_s14 + $0x3c8] sm:$0xff]  }
 0xc7a   : > { %5468 = vmatpush3.bf16.msra.mxu1 %v5814_v0  ;;  %4680 = vmatprep.mubr.bf16.mxu1 %v2892_v10  ;;  %v5982_v43 = vpop.eup %5981  ;;  %v2841_v52 = vadd.f32 1.0, %v5980_v39  ;;  %v2773_v0 = vmul.f32 0.5, %v6867_v48  ;;  %v5845_v10 = vld [vmem:[%s7297_s14 + $0x300] sm:$0xff]   ;;  %v5847_v48 = vld [vmem:[%s7297_s14 + $0x348] sm:$0xff]  }
 0xc7b   : > { %5469 = vmatprep.subr.bf16.mxu1 %v5816_v6  ;;  %v5984_v9 = vpop.eup %5983  ;;  %v2843_v3 = vadd.f32 1.0, %v5982_v43  ;;  %v5844_v6 = vld [vmem:[%s7297_s14 + $0x3c0] sm:$0xff]   ;;  %v5863_v39 = vld [vmem:[%s7297_s14 + $0x368] sm:$0xff]  }
 0xc7c   : > { %5448 = vmatpush3.bf16.msra.mxu0 %v5817_v47  ;;  %v5986_v31 = vpop.eup %5985  ;;  %v2846_v60 = vadd.f32 1.0, %v5984_v9  ;;  %v2865_v63 = vmul.f32 %v2841_v52, %v2768_v16  ;;  %v5865_v43 = vld [vmem:[%s7297_s14 + $0x328] sm:$0xff]   ;;  %v5868_v52 = vld [vmem:[%s7297_s14 + $0x3f0] sm:$0xff]  }
 0xc7d   : > { %5449 = vmatprep.subr.bf16.mxu0 %v5819_v24  ;;  %v2848_v18 = vadd.f32 1.0, %v5986_v31  ;;  %v2867_v11 = vmul.f32 %v2843_v3, %v2770_v61  ;;  %v5866_v9 = vld [vmem:[%s7297_s14 + $0x3a8] sm:$0xff]   ;;  %v5988_v31 = vpop.eup %5987  ;;  %v5869_v3 = vld [vmem:[%s7297_s14 + $0x330] sm:$0xff]   ;;  %v5871_v61 = vld [vmem:[%s7297_s14 + $0x378] sm:$0xff]  }
 0xc7e   : > { %5470 = vmatpush3.bf16.msra.mxu1 %v5818_v56  ;;  %v2870_v7 = vmul.f32 %v2846_v60, %v2773_v0  ;;  %v2889_v47 = vpack.c.bf16 %v2865_v63, %v2865_v63  ;;  %v5846_v56 = vld [vmem:[%s7297_s14 + $0x380] sm:$0xff]   ;;  %v2845_v16 = vadd.f32 1.0, %v5988_v31  ;;  %v5870_v60 = vld [vmem:[%s7297_s14 + $0x3b0] sm:$0xff]   ;;  %v2772_v63 = vmul.f32 0.5, %v6677_v55 }
 0xc7f   : > { %5471 = vmatprep.subr.bf16.mxu1 %v5820_v5  ;;  %v2872_v14 = vmul.f32 %v2848_v18, %v2775_v32  ;;  %v2891_v24 = vpack.c.bf16 %v2867_v11, %v2867_v11  ;;  %v5873_v11 = vld [vmem:[%s7297_s14 + $0x338] sm:$0xff]   ;;  %v5875_v55 = vld [vmem:[%s7297_s14 + $0x440] sm:$0xff]  }
 0xc80   : > { %5450 = vmatpush3.bf16.msra.mxu0 %v5821_v17  ;;  %v2894_v5 = vpack.c.bf16 %v2870_v7, %v2870_v7  ;;  %v5849_v17 = vld [vmem:[%s7297_s14 + $0x308] sm:$0xff]   ;;  %v2869_v32 = vmul.f32 %v2845_v16, %v2772_v63  ;;  %v5874_v7 = vld [vmem:[%s7297_s14 + $0x3b8] sm:$0xff]  }
 0xc81   : > { %5451 = vmatprep.subr.bf16.mxu0 %v5823_v58  ;;  %v2896_v59 = vpack.c.bf16 %v2872_v14, %v2872_v14  ;;  %v5852_v58 = vld [vmem:[%s7297_s14 + $0x3d0] sm:$0xff]   ;;  %v5876_v14 = vld [vmem:[%s7297_s14 + $0x4c0] sm:$0xff]  }
 0xc82   : > { %5472 = vmatpush3.bf16.msra.mxu1 %v5822_v57  ;;  %v5851_v57 = vld [vmem:[%s7297_s14 + $0x350] sm:$0xff]  }
 0xc83   : > { %5473 = vmatprep.subr.bf16.mxu1 %v5824_v23  ;;  %v5853_v23 = vld [vmem:[%s7297_s14 + $0x310] sm:$0xff]  }
 0xc84   : > { %5452 = vmatpush3.bf16.msra.mxu0 %v5825_v34  ;;  %v5854_v34 = vld [vmem:[%s7297_s14 + $0x390] sm:$0xff]  }
 0xc85   : > { %5453 = vmatprep.subr.bf16.mxu0 %v5827_v37  ;;  %v2802_v37 = vmul.f32 0.70710677, %v6752_v19 }
 0xc86   : > { %5474 = vmatpush3.bf16.msra.mxu1 %v5826_v35  ;;  %v5855_v35 = vld [vmem:[%s7297_s14 + $0x358] sm:$0xff]  }
 0xc87   : > { %5475 = vmatprep.subr.bf16.mxu1 %v5828_v38  ;;  %v5856_v38 = vld [vmem:[%s7297_s14 + $0x3d8] sm:$0xff]   ;;  %5991 = verf.f32 %v2802_v37  ;;  %v2806_v37 = vmul.f32 0.70710677, %v6792_v15 }
 0xc88   : > { %5454 = vmatpush3.bf16.msra.mxu0 %v5829_v27  ;;  %v2804_v27 = vmul.f32 0.70710677, %v6754_v40 }
 0xc89   : > { %5455 = vmatprep.subr.bf16.mxu0 %v5831_v30  ;;  %v5858_v30 = vld [vmem:[%s7297_s14 + $0x398] sm:$0xff]  }
 0xc8a   : > { %5476 = vmatpush3.bf16.msra.mxu1 %v5830_v13  ;;  %v5857_v13 = vld [vmem:[%s7297_s14 + $0x318] sm:$0xff]   ;;  %5993 = verf.f32 %v2804_v27  ;;  %v2808_v27 = vmul.f32 0.70710677, %v6794_v20 }
 0xc8b   : > { %5477 = vmatprep.subr.bf16.mxu1 %v5832_v42  ;;  %v5859_v42 = vld [vmem:[%s7297_s14 + $0x360] sm:$0xff]  }
 0xc8c   : > { %5456 = vmatpush3.bf16.msra.mxu0 %v5833_v45  ;;  %v5860_v45 = vld [vmem:[%s7297_s14 + $0x3e0] sm:$0xff]  }
 0xc8d   : > { %5457 = vmatprep.subr.bf16.mxu0 %v5835_v49  ;;  %v5862_v49 = vld [vmem:[%s7297_s14 + $0x3a0] sm:$0xff]  }
 0xc8e   : > { %5478 = vmatpush3.bf16.msra.mxu1 %v5834_v46  ;;  %v5861_v46 = vld [vmem:[%s7297_s14 + $0x320] sm:$0xff]  }
 0xc8f   : > { %5479 = vmatprep.subr.bf16.mxu1 %v5836_v50  ;;  %v5864_v50 = vld [vmem:[%s7297_s14 + $0x3e8] sm:$0xff]  }
 0xc90   : > { %5458 = vmatpush3.bf16.msra.mxu0 %v5837_v51  ;;  %v5867_v51 = vld [vmem:[%s7297_s14 + $0x370] sm:$0xff]  }
 0xc91   : > { %5459 = vmatprep.subr.bf16.mxu0 %v5839_v54 }
 0xc92   : > { %5480 = vmatpush3.bf16.msra.mxu1 %v5838_v53  ;;  %v5990_v53 = vpop.eup %5989 }
 0xc93   : > { %5481 = vmatprep.subr.bf16.mxu1 %v5840_v8  ;;  %v5992_v54 = vpop.eup %5991  ;;  %v2847_v18 = vadd.f32 1.0, %v5990_v53 }
 0xc94   : > { %5460 = vmatpush3.bf16.msra.mxu0 %v5841_v62  ;;  %v5994_v8 = vpop.eup %5993  ;;  %v5872_v62 = vld [vmem:[%s7297_s14 + $0x3f8] sm:$0xff]   ;;  %v2850_v0 = vadd.f32 1.0, %v5992_v54 }
 0xc95   : > { %5489 = vmatprep.subr.bf16.mxu0 %v5843_v1  ;;  %v2852_v1 = vadd.f32 1.0, %v5994_v8 }
 0xc96   : > { %5482 = vmatpush3.bf16.msra.mxu1 %v5842_v25  ;;  %v2774_v25 = vmul.f32 0.5, %v6682_v29 }
 0xc97   : > { %5511 = vmatprep.subr.bf16.mxu1 %v5844_v6  ;;  %4641 = vmatmul.mubr.bf16.vlgmr.msra.gmra.mrb[48].mxu0 %v2889_v47  ;;  %v2777_v6 = vmul.f32 0.5, %v6752_v19  ;;  %v1972_v19 = vrot.slane %v6699_v2, %v6608_v26  ;;  %v5880_v2 = vld [vmem:[%s7297_s14 + $0x4c8] sm:$0xff]  }
 0xc98   : > { %5490 = vmatpush3.bf16.msra.mxu0 %v5845_v10  ;;  %4720 = vmatprep.mubr.bf16.mxu0 %v2894_v5  ;;  %v2871_v29 = vmul.f32 %v2847_v18, %v2774_v25  ;;  %v2779_v10 = vmul.f32 0.5, %v6754_v40  ;;  %v5878_v40 = vld [vmem:[%s7297_s14 + $0x480] sm:$0xff]   ;;  %v2778_v25 = vmul.f32 0.5, %v6743_v41 }
 0xc99   : > { %4681 = vmatmul.mubr.bf16.vlgmr.msra.gmra.mrb[48].mxu1 %v2891_v24  ;;  %5491 = vmatprep.subr.bf16.mxu0 %v5847_v48  ;;  %v2874_v47 = vmul.f32 %v2850_v0, %v2777_v6  ;;  %v2893_v48 = vpack.c.bf16 %v2869_v32, %v2869_v32  ;;  %v2781_v6 = vmul.f32 0.5, %v6792_v15  ;;  %v5909_v15 = vld [vmem:[%s7297_s14 + $0x500] sm:$0xff]  }
 0xc9a   : > { %5512 = vmatpush3.bf16.msra.mxu1 %v5846_v56  ;;  %4760 = vmatprep.mubr.bf16.mxu1 %v2896_v59  ;;  %v5877_v56 = vld [vmem:[%s7297_s14 + $0x400] sm:$0xff]   ;;  %v2876_v24 = vmul.f32 %v2852_v1, %v2779_v10  ;;  %v2895_v5 = vpack.c.bf16 %v2871_v29, %v2871_v29  ;;  %v7074_v59 = vadd.f32 %v6734_v28, %v1972_v19  ;;  %v5884_v28 = vld [vmem:[%s7297_s14 + $0x4d0] sm:$0xff]   ;;  %v2783_v29 = vmul.f32 0.5, %v6794_v20 }
 0xc9b   : > { %5513 = vmatprep.subr.bf16.mxu1 %v5848_v44  ;;  %v5879_v44 = vld [vmem:[%s7297_s14 + $0x448] sm:$0xff]   ;;  %v2898_v26 = vpack.c.bf16 %v2874_v47, %v2874_v47  ;;  %v5908_v10 = vld [vmem:[%s7297_s14 + $0x5c0] sm:$0xff]  }
 0xc9c   : > { %5492 = vmatpush3.bf16.msra.mxu0 %v5849_v17  ;;  %v2900_v17 = vpack.c.bf16 %v2876_v24, %v2876_v24  ;;  %v2801_v22 = vmul.f32 0.70710677, %v7074_v59  ;;  %v2776_v63 = vmul.f32 0.5, %v7074_v59  ;;  %v5911_v24 = vld [vmem:[%s7297_s14 + $0x548] sm:$0xff]   ;;  %v5916_v59 = vld [vmem:[%s7297_s14 + $0x5d0] sm:$0xff]  }
 0xc9d   : > { %5493 = vmatprep.subr.bf16.mxu0 %v5851_v57  ;;  %v5882_v57 = vld [vmem:[%s7297_s14 + $0x488] sm:$0xff]  }
 0xc9e   : > { %5514 = vmatpush3.bf16.msra.mxu1 %v5850_v12  ;;  %v5881_v12 = vld [vmem:[%s7297_s14 + $0x408] sm:$0xff]   ;;  %5995 = verf.f32 %v2801_v22  ;;  %v5920_v22 = vld [vmem:[%s7297_s14 + $0x5d8] sm:$0xff]  }
 0xc9f   : > { %5515 = vmatprep.subr.bf16.mxu1 %v5852_v58  ;;  %v5883_v58 = vld [vmem:[%s7297_s14 + $0x450] sm:$0xff]   ;;  %5997 = verf.f32 %v2803_v33  ;;  %v5922_v33 = vld [vmem:[%s7297_s14 + $0x598] sm:$0xff]  }
 0xca0   : > { %5494 = vmatpush3.bf16.msra.mxu0 %v5853_v23  ;;  %v5885_v23 = vld [vmem:[%s7297_s14 + $0x410] sm:$0xff]   ;;  %5999 = verf.f32 %v2806_v37  ;;  %v5925_v37 = vld [vmem:[%s7297_s14 + $0x520] sm:$0xff]  }
 0xca1   : > { %5495 = vmatprep.subr.bf16.mxu0 %v5855_v35  ;;  %v5887_v35 = vld [vmem:[%s7297_s14 + $0x458] sm:$0xff]   ;;  %6001 = verf.f32 %v2808_v27  ;;  %v5927_v27 = vld [vmem:[%s7297_s14 + $0x568] sm:$0xff]  }
 0xca2   : > { %5516 = vmatpush3.bf16.msra.mxu1 %v5854_v34  ;;  %v5886_v34 = vld [vmem:[%s7297_s14 + $0x490] sm:$0xff]  }
 0xca3   : > { %5517 = vmatprep.subr.bf16.mxu1 %v5856_v38  ;;  %v5888_v38 = vld [vmem:[%s7297_s14 + $0x4d8] sm:$0xff]  }
 0xca4   : > { %5496 = vmatpush3.bf16.msra.mxu0 %v5857_v13  ;;  %v5889_v13 = vld [vmem:[%s7297_s14 + $0x418] sm:$0xff]  }
 0xca5   : > { %5497 = vmatprep.subr.bf16.mxu0 %v5859_v42  ;;  %v5891_v42 = vld [vmem:[%s7297_s14 + $0x460] sm:$0xff]  }
 0xca6   : > { %5518 = vmatpush3.bf16.msra.mxu1 %v5858_v30  ;;  %v5890_v30 = vld [vmem:[%s7297_s14 + $0x498] sm:$0xff]  }
 0xca7   : > { %5519 = vmatprep.subr.bf16.mxu1 %v5860_v45  ;;  %v5892_v45 = vld [vmem:[%s7297_s14 + $0x4e0] sm:$0xff]  }
 0xca8   : > { %5498 = vmatpush3.bf16.msra.mxu0 %v5861_v46  ;;  %v5893_v46 = vld [vmem:[%s7297_s14 + $0x420] sm:$0xff]   ;;  %v5996_v31 = vpop.eup %5995 }
 0xca9   : > { %5499 = vmatprep.subr.bf16.mxu0 %v5863_v39  ;;  %v5895_v39 = vld [vmem:[%s7297_s14 + $0x468] sm:$0xff]   ;;  %v5998_v53 = vpop.eup %5997  ;;  %v2849_v16 = vadd.f32 1.0, %v5996_v31 }
 0xcaa   : > { %5520 = vmatpush3.bf16.msra.mxu1 %v5862_v49  ;;  %v5894_v49 = vld [vmem:[%s7297_s14 + $0x4a0] sm:$0xff]   ;;  %v6000_v54 = vpop.eup %5999  ;;  %v2851_v18 = vadd.f32 1.0, %v5998_v53  ;;  %v2780_v53 = vmul.f32 0.5, %v6782_v21 }
 0xcab   : > { %5521 = vmatprep.subr.bf16.mxu1 %v5864_v50  ;;  %v5896_v50 = vld [vmem:[%s7297_s14 + $0x4e8] sm:$0xff]   ;;  %v6002_v8 = vpop.eup %6001  ;;  %v2854_v0 = vadd.f32 1.0, %v6000_v54  ;;  %v2873_v32 = vmul.f32 %v2849_v16, %v2776_v63  ;;  %v2782_v54 = vmul.f32 0.5, %v6784_v4  ;;  %v5938_v16 = vld [vmem:[%s7297_s14 + $0x5b8] sm:$0xff]  }
 0xcac   : > { %5500 = vmatpush3.bf16.msra.mxu0 %v5865_v43  ;;  %v5897_v43 = vld [vmem:[%s7297_s14 + $0x428] sm:$0xff]   ;;  %v2856_v1 = vadd.f32 1.0, %v6002_v8  ;;  %v2875_v41 = vmul.f32 %v2851_v18, %v2778_v25 }
 0xcad   : > { %5501 = vmatprep.subr.bf16.mxu0 %v5867_v51  ;;  %v5899_v51 = vld [vmem:[%s7297_s14 + $0x470] sm:$0xff]   ;;  %v2897_v19 = vpack.c.bf16 %v2873_v32, %v2873_v32 }
 0xcae   : > { %5522 = vmatpush3.bf16.msra.mxu1 %v5866_v9  ;;  %v5898_v9 = vld [vmem:[%s7297_s14 + $0x4a8] sm:$0xff]   ;;  %v2880_v47 = vmul.f32 %v2856_v1, %v2783_v29  ;;  %v2899_v20 = vpack.c.bf16 %v2875_v41, %v2875_v41 }
 0xcaf   : > { %5523 = vmatprep.subr.bf16.mxu1 %v5868_v52  ;;  %v5900_v52 = vld [vmem:[%s7297_s14 + $0x4f0] sm:$0xff]  }
 0xcb0   : > { %5502 = vmatpush3.bf16.msra.mxu0 %v5869_v3  ;;  %v5901_v3 = vld [vmem:[%s7297_s14 + $0x430] sm:$0xff]  }
 0xcb1   : > { %5503 = vmatprep.subr.bf16.mxu0 %v5871_v61  ;;  %v5903_v61 = vld [vmem:[%s7297_s14 + $0x478] sm:$0xff]  }
 0xcb2   : > { %5524 = vmatpush3.bf16.msra.mxu1 %v5870_v60  ;;  %v5902_v60 = vld [vmem:[%s7297_s14 + $0x4b0] sm:$0xff]  }
 0xcb3   : > { %5525 = vmatprep.subr.bf16.mxu1 %v5872_v62  ;;  %v5904_v62 = vld [vmem:[%s7297_s14 + $0x4f8] sm:$0xff]  }
 0xcb4   : > { %5504 = vmatpush3.bf16.msra.mxu0 %v5873_v11  ;;  %v5905_v11 = vld [vmem:[%s7297_s14 + $0x438] sm:$0xff]  }
 0xcb5   : > { %5533 = vmatprep.subr.bf16.mxu0 %v5875_v55  ;;  %v5907_v55 = vld [vmem:[%s7297_s14 + $0x540] sm:$0xff]  }
 0xcb6   : > { %5526 = vmatpush3.bf16.msra.mxu1 %v5874_v7  ;;  %v5906_v7 = vld [vmem:[%s7297_s14 + $0x4b8] sm:$0xff]  }
 0xcb7   : > { %5555 = vmatprep.subr.bf16.mxu1 %v5876_v14  ;;  %4721 = vmatmul.mubr.bf16.vlgmr.msra.gmra.mrb[52].mxu0 %v2893_v48  ;;  %v2878_v14 = vmul.f32 %v2854_v0, %v2781_v6 }
 0xcb8   : > { %5534 = vmatpush3.bf16.msra.mxu0 %v5877_v56  ;;  %4800 = vmatprep.mubr.bf16.mxu0 %v2898_v26  ;;  %v5910_v56 = vld [vmem:[%s7297_s14 + $0x580] sm:$0xff]   ;;  %v5914_v26 = vld [vmem:[%s7297_s14 + $0x588] sm:$0xff]  }
 0xcb9   : > { %4761 = vmatmul.mubr.bf16.vlgmr.msra.gmra.mrb[52].mxu1 %v2895_v5  ;;  %5535 = vmatprep.subr.bf16.mxu0 %v5879_v44  ;;  %v2902_v48 = vpack.c.bf16 %v2878_v14, %v2878_v14  ;;  %v2904_v5 = vpack.c.bf16 %v2880_v47, %v2880_v47  ;;  %v5913_v44 = vld [vmem:[%s7297_s14 + $0x508] sm:$0xff]  }
 0xcba   : > { %5556 = vmatpush3.bf16.msra.mxu1 %v5878_v40  ;;  %4840 = vmatprep.mubr.bf16.mxu1 %v2900_v17  ;;  %v5912_v40 = vld [vmem:[%s7297_s14 + $0x5c8] sm:$0xff]   ;;  %v2805_v17 = vmul.f32 0.70710677, %v6782_v21 }
 0xcbb   : > { %5557 = vmatprep.subr.bf16.mxu1 %v5880_v2  ;;  %v5915_v2 = vld [vmem:[%s7297_s14 + $0x550] sm:$0xff]  }
 0xcbc   : > { %5536 = vmatpush3.bf16.msra.mxu0 %v5881_v12  ;;  %v5917_v12 = vld [vmem:[%s7297_s14 + $0x510] sm:$0xff]   ;;  %6003 = verf.f32 %v2805_v17 }
 0xcbd   : > { %5537 = vmatprep.subr.bf16.mxu0 %v5883_v58  ;;  %v5918_v58 = vld [vmem:[%s7297_s14 + $0x590] sm:$0xff]  }
 0xcbe   : > { %5558 = vmatpush3.bf16.msra.mxu1 %v5882_v57  ;;  %v2807_v57 = vmul.f32 0.70710677, %v6784_v4 }
 0xcbf   : > { %5559 = vmatprep.subr.bf16.mxu1 %v5884_v28  ;;  %v5919_v28 = vld [vmem:[%s7297_s14 + $0x558] sm:$0xff]  }
 0xcc0   : > { %5538 = vmatpush3.bf16.msra.mxu0 %v5885_v23  ;;  %v5921_v23 = vld [vmem:[%s7297_s14 + $0x518] sm:$0xff]   ;;  %6005 = verf.f32 %v2807_v57 }
 0xcc1   : > { %5539 = vmatprep.subr.bf16.mxu0 %v5887_v35  ;;  %v5924_v35 = vld [vmem:[%s7297_s14 + $0x5e0] sm:$0xff]  }
 0xcc2   : > { %5560 = vmatpush3.bf16.msra.mxu1 %v5886_v34  ;;  %v5923_v34 = vld [vmem:[%s7297_s14 + $0x560] sm:$0xff]  }
 0xcc3   : > { %5561 = vmatprep.subr.bf16.mxu1 %v5888_v38  ;;  %v5926_v38 = vld [vmem:[%s7297_s14 + $0x5a0] sm:$0xff]  }
 0xcc4   : > { %5540 = vmatpush3.bf16.msra.mxu0 %v5889_v13  ;;  %v5928_v13 = vld [vmem:[%s7297_s14 + $0x5e8] sm:$0xff]  }
 0xcc5   : > { %5541 = vmatprep.subr.bf16.mxu0 %v5891_v42  ;;  %v5930_v42 = vld [vmem:[%s7297_s14 + $0x5a8] sm:$0xff]  }
 0xcc6   : > { %5562 = vmatpush3.bf16.msra.mxu1 %v5890_v30  ;;  %v5929_v30 = vld [vmem:[%s7297_s14 + $0x528] sm:$0xff]  }
 0xcc7   : > { %5563 = vmatprep.subr.bf16.mxu1 %v5892_v45  ;;  %v5931_v45 = vld [vmem:[%s7297_s14 + $0x570] sm:$0xff]  }
 0xcc8   : > { %5542 = vmatpush3.bf16.msra.mxu0 %v5893_v46  ;;  %v6004_v46 = vpop.eup %6003 }
 0xcc9   : > { %5543 = vmatprep.subr.bf16.mxu0 %v5895_v39 }
 0xcca   : > { %5564 = vmatpush3.bf16.msra.mxu1 %v5894_v49  ;;  %v5932_v49 = vld [vmem:[%s7297_s14 + $0x5f0] sm:$0xff]   ;;  %v6006_v39 = vpop.eup %6005 }
 0xccb   : > { %5565 = vmatprep.subr.bf16.mxu1 %v5896_v50  ;;  %v5933_v50 = vld [vmem:[%s7297_s14 + $0x530] sm:$0xff]   ;;  %v2855_v31 = vadd.f32 1.0, %v6006_v39 }
 0xccc   : > { %5544 = vmatpush3.bf16.msra.mxu0 %v5897_v43  ;;  %v2853_v43 = vadd.f32 1.0, %v6004_v46 }
 0xccd   : > { %5545 = vmatprep.subr.bf16.mxu0 %v5899_v51  ;;  %v5935_v51 = vld [vmem:[%s7297_s14 + $0x578] sm:$0xff]  }
 0xcce   : > { %5566 = vmatpush3.bf16.msra.mxu1 %v5898_v9  ;;  %v5934_v9 = vld [vmem:[%s7297_s14 + $0x5b0] sm:$0xff]   ;;  %v2877_v8 = vmul.f32 %v2853_v43, %v2780_v53 }
 0xccf   : > { %5567 = vmatprep.subr.bf16.mxu1 %v5900_v52  ;;  %v5936_v52 = vld [vmem:[%s7297_s14 + $0x5f8] sm:$0xff]  }
 0xcd0   : > { %5546 = vmatpush3.bf16.msra.mxu0 %v5901_v3  ;;  %v5937_v3 = vld [vmem:[%s7297_s14 + $0x538] sm:$0xff]  }
 0xcd1   : > { %5547 = vmatprep.subr.bf16.mxu0 %v5903_v61  ;;  %v2901_v61 = vpack.c.bf16 %v2877_v8, %v2877_v8 }
 0xcd2   : > { %5568 = vmatpush3.bf16.msra.mxu1 %v5902_v60  ;;  %v2879_v60 = vmul.f32 %v2855_v31, %v2782_v54 }
 0xcd3   : > { %5569 = vmatprep.subr.bf16.mxu1 %v5904_v62  ;;  %v5121_v62 = vld [vmem:[%s7298_s15] ss:$0 sm:$0xff] }
 0xcd4   : > { %5548 = vmatpush3.bf16.msra.mxu0 %v5905_v11  ;;  %v2903_v21 = vpack.c.bf16 %v2879_v60, %v2879_v60 }
 0xcd5   : > { %5577 = vmatprep.subr.bf16.mxu0 %v5907_v55 }
 0xcd6   : > { %5570 = vmatpush3.bf16.msra.mxu1 %v5906_v7 }
 0xcd7   : > { %5599 = vmatprep.subr.bf16.mxu1 %v5908_v10  ;;  %4801 = vmatmul.mubr.bf16.vlgmr.msra.gmra.mrb[56].mxu0 %v2897_v19 }
 0xcd8   : > { %5578 = vmatpush3.bf16.msra.mxu0 %v5909_v15  ;;  %4880 = vmatprep.mubr.bf16.mxu0 %v2902_v48 }
 0xcd9   : > { %4841 = vmatmul.mubr.bf16.vlgmr.msra.gmra.mrb[56].mxu1 %v2899_v20  ;;  %5579 = vmatprep.subr.bf16.mxu0 %v5911_v24 }
 0xcda   : > { %5600 = vmatpush3.bf16.msra.mxu1 %v5910_v56  ;;  %4920 = vmatprep.mubr.bf16.mxu1 %v2904_v5 }
 0xcdb   : > { %5601 = vmatprep.subr.bf16.mxu1 %v5912_v40 }
 0xcdc   : > { %5580 = vmatpush3.bf16.msra.mxu0 %v5913_v44 }
 0xcdd   : > { %5581 = vmatprep.subr.bf16.mxu0 %v5915_v2 }
 0xcde   : > { %5602 = vmatpush3.bf16.msra.mxu1 %v5914_v26 }
 0xcdf   : > { %5603 = vmatprep.subr.bf16.mxu1 %v5916_v59 }
 0xce0   : > { %5582 = vmatpush3.bf16.msra.mxu0 %v5917_v12 }
 0xce1   : > { %5583 = vmatprep.subr.bf16.mxu0 %v5919_v28 }
 0xce2   : > { %5604 = vmatpush3.bf16.msra.mxu1 %v5918_v58 }
 0xce3   : > { %5605 = vmatprep.subr.bf16.mxu1 %v5920_v22 }
 0xce4   : > { %5584 = vmatpush3.bf16.msra.mxu0 %v5921_v23 }
 0xce5   : > { %5585 = vmatprep.subr.bf16.mxu0 %v5923_v34 }
 0xce6   : > { %5606 = vmatpush3.bf16.msra.mxu1 %v5922_v33 }
 0xce7   : > { %5607 = vmatprep.subr.bf16.mxu1 %v5924_v35 }
 0xce8   : > { %5586 = vmatpush3.bf16.msra.mxu0 %v5925_v37 }
 0xce9   : > { %5587 = vmatprep.subr.bf16.mxu0 %v5927_v27 }
 0xcea   : > { %5608 = vmatpush3.bf16.msra.mxu1 %v5926_v38 }
 0xceb   : > { %5609 = vmatprep.subr.bf16.mxu1 %v5928_v13 }
 0xcec   : > { %5588 = vmatpush3.bf16.msra.mxu0 %v5929_v30 }
 0xced   : > { %5589 = vmatprep.subr.bf16.mxu0 %v5931_v45 }
 0xcee   : > { %5610 = vmatpush3.bf16.msra.mxu1 %v5930_v42 }
 0xcef   : > { %5611 = vmatprep.subr.bf16.mxu1 %v5932_v49 }
 0xcf0   : > { %5590 = vmatpush3.bf16.msra.mxu0 %v5933_v50 }
 0xcf1   : > { %5591 = vmatprep.subr.bf16.mxu0 %v5935_v51 }
 0xcf2   : > { %5612 = vmatpush3.bf16.msra.mxu1 %v5934_v9 }
 0xcf3   : > { %5613 = vmatprep.subr.bf16.mxu1 %v5936_v52 }
 0xcf4   : > { %5592 = vmatpush3.bf16.msra.mxu0 %v5937_v3 }
 0xcf6   : > { %5614 = vmatpush3.bf16.msra.mxu1 %v5938_v16 }
 0xcf7   : > { %4881 = vmatmul.mubr.bf16.vlgmr.msra.gmra.mrb[60].mxu0 %v2901_v61 }
 0xcf9   : > { %4921 = vmatmul.mubr.bf16.vlgmr.msra.gmra.mrb[60].mxu1 %v2903_v21 }
 0xd2a   : > { %v5373_v4 = vpop.f32.mrb[40].mxu0 }
 0xd2b   : > { %v5374_v63 = vpop.f32.mrb[41].mxu0 }
 0xd2c   : > { %v5395_v18 = vpop.f32.mrb[40].mxu1  ;;  %v5375_v25 = vadd.f32 %v5374_v63, %v5373_v4  ;;  %v5376_v11 = vpop.f32.mrb[42].mxu0 }
 0xd2d   : > { %v5396_v0 = vpop.f32.mrb[41].mxu1  ;;  %v5377_v6 = vpop.f32.mrb[43].mxu0 }
 0xd2e   : > { %v5397_v1 = vadd.f32 %v5396_v0, %v5395_v18  ;;  %v5398_v32 = vpop.f32.mrb[42].mxu1  ;;  %v4483_v55 = vadd.f32 %v5375_v25, %v5121_v62 }
 0xd2f   : > { %v5399_v7 = vpop.f32.mrb[43].mxu1 }
 0xd30   : > { %v4523_v41 = vadd.f32 %v5397_v1, %v4483_v55 }
 0xd4a   : > { %v5417_v29 = vpop.f32.mrb[44].mxu0 }
 0xd4b   : > { %v5418_v14 = vpop.f32.mrb[45].mxu0 }
 0xd4c   : > { %v5439_v10 = vpop.f32.mrb[44].mxu1  ;;  %v5419_v47 = vadd.f32 %v5418_v14, %v5417_v29  ;;  %v5420_v56 = vpop.f32.mrb[46].mxu0 }
 0xd4d   : > { %v5440_v15 = vpop.f32.mrb[45].mxu1  ;;  %v5421_v24 = vpop.f32.mrb[47].mxu0 }
 0xd4e   : > { %v5441_v19 = vadd.f32 %v5440_v15, %v5439_v10  ;;  %v5442_v20 = vpop.f32.mrb[46].mxu1  ;;  %v4563_v40 = vadd.f32 %v5419_v47, %v4523_v41 }
 0xd4f   : > { %v5443_v48 = vpop.f32.mrb[47].mxu1 }
 0xd50   : > { %v4603_v5 = vadd.f32 %v5441_v19, %v4563_v40 }
 0xd6a   : > { %v5461_v44 = vpop.f32.mrb[48].mxu0 }
 0xd6b   : > { %v5462_v2 = vpop.f32.mrb[49].mxu0 }
 0xd6c   : > { %v5483_v26 = vpop.f32.mrb[48].mxu1  ;;  %v5463_v59 = vadd.f32 %v5462_v2, %v5461_v44  ;;  %v5464_v12 = vpop.f32.mrb[50].mxu0  ;;  %v5314_v44 = vld [vmem:[%s7299_s16] ss:$0 sm:$0xff] }
 0xd6d   : > { %v5484_v17 = vpop.f32.mrb[49].mxu1  ;;  %v5465_v28 = vpop.f32.mrb[51].mxu0  ;;  %v5315_v2 = vld [vmem:[%s7300_s17] ss:$0 sm:$0xff] }
 0xd6e   : > { %v5485_v57 = vadd.f32 %v5484_v17, %v5483_v26  ;;  %v5486_v58 = vpop.f32.mrb[50].mxu1  ;;  %v4643_v22 = vadd.f32 %v5463_v59, %v4603_v5 }
 0xd6f   : > { %v5487_v23 = vpop.f32.mrb[51].mxu1 }
 0xd70   : > { %v4683_v33 = vadd.f32 %v5485_v57, %v4643_v22 }
 0xd8a   : > { %v5505_v34 = vpop.f32.mrb[52].mxu0 }
 0xd8b   : > { %v5506_v37 = vpop.f32.mrb[53].mxu0 }
 0xd8c   : > { %v5527_v35 = vpop.f32.mrb[52].mxu1  ;;  %v5507_v38 = vadd.f32 %v5506_v37, %v5505_v34  ;;  %v5508_v13 = vpop.f32.mrb[54].mxu0 }
 0xd8d   : > { %v5528_v27 = vpop.f32.mrb[53].mxu1  ;;  %v5509_v45 = vpop.f32.mrb[55].mxu0 }
 0xd8e   : > { %v5529_v30 = vadd.f32 %v5528_v27, %v5527_v35  ;;  %v5530_v42 = vpop.f32.mrb[54].mxu1  ;;  %v4723_v46 = vadd.f32 %v5507_v38, %v4683_v33 }
 0xd8f   : > { %v5531_v49 = vpop.f32.mrb[55].mxu1 }
 0xd90   : > { %v4763_v39 = vadd.f32 %v5529_v30, %v4723_v46 }
 0xdaa   : > { %v5549_v50 = vpop.f32.mrb[56].mxu0 }
 0xdab   : > { %v5550_v9 = vpop.f32.mrb[57].mxu0 }
 0xdac   : > { %v5571_v43 = vpop.f32.mrb[56].mxu1  ;;  %v5551_v51 = vadd.f32 %v5550_v9, %v5549_v50  ;;  %v5552_v52 = vpop.f32.mrb[58].mxu0 }
 0xdad   : > { %v5572_v31 = vpop.f32.mrb[57].mxu1  ;;  %v5553_v3 = vpop.f32.mrb[59].mxu0 }
 0xdae   : > { %v5573_v53 = vadd.f32 %v5572_v31, %v5571_v43  ;;  %v5574_v54 = vpop.f32.mrb[58].mxu1  ;;  %v4803_v8 = vadd.f32 %v5551_v51, %v4763_v39 }
 0xdaf   : > { %v5575_v16 = vpop.f32.mrb[59].mxu1 }
 0xdb0   : > { %v4843_v60 = vadd.f32 %v5573_v53, %v4803_v8 }
 0xdca   : > { %v5593_v61 = vpop.f32.mrb[60].mxu0 }
 0xdcb   : > { %v5594_v4 = vpop.f32.mrb[61].mxu0 }
 0xdcc   : > { %v5615_v21 = vpop.f32.mrb[60].mxu1  ;;  %v5595_v18 = vadd.f32 %v5594_v4, %v5593_v61  ;;  %v5596_v63 = vpop.f32.mrb[62].mxu0 }
 0xdcd   : > { %v5616_v62 = vpop.f32.mrb[61].mxu1  ;;  %v5597_v1 = vpop.f32.mrb[63].mxu0 }
 0xdce   : > { %v5617_v0 = vadd.f32 %v5616_v62, %v5615_v21  ;;  %v5618_v25 = vpop.f32.mrb[62].mxu1  ;;  %v4883_v11 = vadd.f32 %v5595_v18, %v4843_v60 }
 0xdcf   : > { %v5619_v32 = vpop.f32.mrb[63].mxu1 }
 0xdd0   : > { %v4923_v6 = vadd.f32 %v5617_v0, %v4883_v11 }
 0xdd2   : > { %v4928_v7 = vadd.f32 %v4923_v6, %v6357_v36 }
 0xdd4   : > { %v4931_v55 = vsel %vm599_vm1, %v4928_v7, 0.0 }
 0xdd5   : > { %4932 = vadd.xlane.f32.xlu0 %v4931_v55 }
 0xe62   : > { %v4933_v41 = vpop.xlane.xlu0 %4932 }
 0xe63   : > { %v4934_v29 = vmul.f32 0.03125, %v4933_v41 }
 0xe65   : > { %v4935_v10 = vsub.f32 %v4928_v7, %v4934_v29 }
 0xe67   : > { %v4936_v14 = vmul.f32 %v4935_v10, %v4935_v10 }
 0xe69   : > { %v4937_v15 = vsel %vm599_vm1, %v4936_v14, 0.0 }
 0xe6a   : > { %4938 = vadd.xlane.f32.xlu0 %v4937_v15 }
 0xef7   : > { %v4939_v47 = vpop.xlane.xlu0 %4938 }
 0xef8   : > { %v4940_v19 = vmul.f32 0.03125, %v4939_v47 }
 0xefa   : > { %v4941_v56 = vadd.f32 1e-12, %v4940_v19 }
 0xefc   : > { %6007 = vrsqrt.f32 %v4941_v56  ;;  %vm4944_vm5 = vcmp.eq.f32.partialorder %v4941_v56, inf  ;;  %v4947_v48 = vand.u32 2147483648, %v4941_v56  ;;  %vm4946_vm6 = vcmp.eq.f32.partialorder %v4941_v56, 0.0 }
 0xf06   : > { %v6008_v20 = vpop.eup %6007 }
 0xf07   : > { %v4943_v24 = vmul.f32 %v6008_v20, %v4941_v56 }
 0xf09   : > { %v4945_v36 = vsel %vm4944_vm5, %v4941_v56, %v4943_v24 }
 0xf0a   : > { %v4948_v40 = vsel %vm4946_vm6, %v4947_v48, %v4945_v36 }
 0xf0b   : > { %6009 = vrcp.f32 %v4948_v40 }
 0xf15   : > { %v6010_v5 = vpop.eup %6009 }
 0xf16   : > { %v4950_v26 = vmul.f32 %v6010_v5, %v4935_v10 }
 0xf18   : > { %v4957_v59 = vmul.f32 %v5314_v44, %v4950_v26 }
 0xf1a   : > { %v4964_v17 = vadd.f32 %v5315_v2, %v4957_v59 }
 0xf1c   : > { %4965 = vst.msk [vmem:[%s584_s30] sm:$0xff] %vm599_vm1, %v4964_v17 }
 0xf1d PF: > { %s28_s27 = sadd.s32 1, %s6018_s27  }
 0xf1e   : > { %p25_p4 = scmp.ge.s32.totalorder %s28_s27, 4  }
 0xf20   :  { %27 = sbr.rel (!%p25_p4) target bundleno = 4 (0x4), region = 125 }

</bundles_post_ra>
